<compile_context>
chip_gen: v5e
topology: v5e:2x2
jax: 0.10.0
libtpu: 0.0.40
codegen_flags: <defaults>
</compile_context>

<pallas_src>
import functools

import jax
import jax.numpy as jnp
from jax.experimental import pallas as pl
from jax.experimental.pallas import tpu as pltpu

Z_DIM = 16
IN_FEATURES = 64 * 64      # 4096, fixed by the module
HIDDEN = 256
OUT_FEATURES = 2 * Z_DIM   # 32
OUT_PADDED = 128           # lane-dense output width (sliced back to 32 outside)

SELU_ALPHA = 1.6732632423543772
SELU_SCALE = 1.0507009873554805


def _selu(x):
    # F.selu semantics: scale * (x if x > 0 else alpha * (exp(x) - 1))
    return SELU_SCALE * jnp.where(x > 0, x, SELU_ALPHA * (jnp.exp(x) - 1.0))


def encoder_kernel(x_ref, w1_ref, b1_ref, w2_ref, b2_ref, o_ref):
    """Straight-line fused fc1 -> SELU -> fc2 -> SELU (single grid step).

    x_ref  : (B, 4096)    flattened input
    w1_ref : (4096, 256)  fc1 weight, stored (in, out)
    b1_ref : (1, 256)
    w2_ref : (256, 128)   fc2 weight, zero-padded from 32 -> 128 output lanes
    b2_ref : (1, 128)     zero-padded fc2 bias
    o_ref  : (B, 128)     padded output (wrapper slices [:, :32])
    """
    h = jnp.dot(x_ref[...], w1_ref[...], preferred_element_type=jnp.float32)
    h = _selu(h + b1_ref[...])
    z = jnp.dot(h, w2_ref[...], preferred_element_type=jnp.float32) + b2_ref[...]
    o_ref[...] = _selu(z).astype(o_ref.dtype)


@functools.partial(jax.jit, static_argnames=("nc",))
def forward_linear_encoder(x, w1, b1, w2, b2, *, nc=1):
    # Glue matching the PyTorch forward exactly: channel select + flatten.
    if nc == 3:
        h = x[:, 0]
    else:
        h = x
    h = h.reshape(-1, IN_FEATURES).astype(jnp.float32)
    B = h.shape[0]

    b1_2d = b1.reshape(1, HIDDEN).astype(jnp.float32)
    # Zero-pad fc2 weight / bias to a lane-dense 128-wide output slab.
    # SELU(0 + 0) = 0 in the padded lanes; they are sliced off below.
    w2_p = jnp.zeros((HIDDEN, OUT_PADDED), jnp.float32).at[:, :OUT_FEATURES].set(
        w2.astype(jnp.float32))
    b2_p = jnp.zeros((1, OUT_PADDED), jnp.float32).at[:, :OUT_FEATURES].set(
        b2.reshape(1, OUT_FEATURES).astype(jnp.float32))

    out_padded = pl.pallas_call(
        encoder_kernel,
        out_shape=jax.ShapeDtypeStruct((B, OUT_PADDED), jnp.float32),
        grid=(1,),
        in_specs=[
            pl.BlockSpec((B, IN_FEATURES), lambda i: (0, 0)),        # x
            pl.BlockSpec((IN_FEATURES, HIDDEN), lambda i: (0, 0)),   # W1
            pl.BlockSpec((1, HIDDEN), lambda i: (0, 0)),             # b1
            pl.BlockSpec((HIDDEN, OUT_PADDED), lambda i: (0, 0)),    # W2 (padded)
            pl.BlockSpec((1, OUT_PADDED), lambda i: (0, 0)),         # b2 (padded)
        ],
        out_specs=pl.BlockSpec((B, OUT_PADDED), lambda i: (0, 0)),
        compiler_params=pltpu.CompilerParams(
            dimension_semantics=("arbitrary",),
        ),
    )(h, w1.astype(jnp.float32), b1_2d, w2_p, b2_p)

    return out_padded[:, :OUT_FEATURES]


def _init_params(key):
    """Deterministic init mimicking nn.Linear defaults (U[-1/sqrt(fan_in), ...])."""
    k1, k2, k3, k4 = jax.random.split(key, 4)
    bound1 = 1.0 / jnp.sqrt(IN_FEATURES)
    bound2 = 1.0 / jnp.sqrt(HIDDEN)
    # Stored as (in, out) so the kernel does x @ W directly.
    w1 = jax.random.uniform(k1, (IN_FEATURES, HIDDEN), jnp.float32, -bound1, bound1)
    b1 = jax.random.uniform(k2, (HIDDEN,), jnp.float32, -bound1, bound1)
    w2 = jax.random.uniform(k3, (HIDDEN, OUT_FEATURES), jnp.float32, -bound2, bound2)
    b2 = jax.random.uniform(k4, (OUT_FEATURES,), jnp.float32, -bound2, bound2)
    return w1, b1, w2, b2


def _reference(x, w1, b1, w2, b2, nc=1):
    h = x[:, 0] if nc == 3 else x
    h = h.reshape(-1, IN_FEATURES).astype(jnp.float32)
    h = _selu(h @ w1 + b1)
    h = _selu(h @ w2 + b2)
    return h


if __name__ == "__main__":
    key = jax.random.PRNGKey(0)
    kx1, kx3, kp = jax.random.split(key, 3)

    w1, b1, w2, b2 = _init_params(kp)
    B = 2

    # nc == 1 path
    x1 = jax.random.normal(kx1, (B, 1, 64, 64), jnp.float32)  # NCHW, like PyTorch
    out1 = jax.block_until_ready(forward_linear_encoder(x1, w1, b1, w2, b2, nc=1))
    ref1 = _reference(x1, w1, b1, w2, b2, nc=1)
    assert out1.shape == (B, OUT_FEATURES)
    assert jnp.allclose(out1, ref1, atol=1e-4, rtol=1e-4)

    # nc == 3 path (channel-0 select)
    x3 = jax.random.normal(kx3, (B, 3, 64, 64), jnp.float32)
    out3 = jax.block_until_ready(forward_linear_encoder(x3, w1, b1, w2, b2, nc=3))
    ref3 = _reference(x3, w1, b1, w2, b2, nc=3)
    assert out3.shape == (B, OUT_FEATURES)
    assert jnp.allclose(out3, ref3, atol=1e-4, rtol=1e-4)

    print("KERNEL_OK")
</pallas_src>

<mosaic_0001>
module attributes {stable_mosaic.version = 11 : i64} {
  func.func @encoder_kernel(%arg0: i32, %arg1: memref<2x4096xf32, #tpu.memory_space<vmem>>, %arg2: memref<4096x256xf32, #tpu.memory_space<vmem>>, %arg3: memref<1x256xf32, #tpu.memory_space<vmem>>, %arg4: memref<256x128xf32, #tpu.memory_space<vmem>>, %arg5: memref<1x128xf32, #tpu.memory_space<vmem>>, %arg6: memref<2x128xf32, #tpu.memory_space<vmem>>) attributes {dimension_semantics = [#tpu.dimension_semantics<arbitrary>], iteration_bounds = array<i64: 1>, scalar_prefetch = 0 : i64, scratch_operands = 0 : i64, tpu.core_type = #tpu.core_type<tc>, window_params = [{pipeline_mode = #tpu.pipeline_mode<synchronous>, transform_indices = @transform_0, window_bounds = array<i64: 2, 4096>}, {pipeline_mode = #tpu.pipeline_mode<synchronous>, transform_indices = @transform_1, window_bounds = array<i64: 4096, 256>}, {pipeline_mode = #tpu.pipeline_mode<synchronous>, transform_indices = @transform_2, window_bounds = array<i64: 1, 256>}, {pipeline_mode = #tpu.pipeline_mode<synchronous>, transform_indices = @transform_3, window_bounds = array<i64: 256, 128>}, {pipeline_mode = #tpu.pipeline_mode<synchronous>, transform_indices = @transform_4, window_bounds = array<i64: 1, 128>}, {pipeline_mode = #tpu.pipeline_mode<synchronous>, transform_indices = @transform_5, window_bounds = array<i64: 2, 128>}]} {
    %c0 = arith.constant 0 : index
    %c0_0 = arith.constant 0 : index
    %0 = vector.load %arg1[%c0, %c0_0] : memref<2x4096xf32, #tpu.memory_space<vmem>>, vector<2x4096xf32>
    %c0_1 = arith.constant 0 : index
    %c0_2 = arith.constant 0 : index
    %1 = vector.load %arg2[%c0_1, %c0_2] : memref<4096x256xf32, #tpu.memory_space<vmem>>, vector<4096x256xf32>
    %cst = arith.constant dense<0.000000e+00> : vector<2x256xf32>
    %2 = tpu.matmul %0, %1, %cst {dimension_numbers = #tpu.dot_dimension_numbers<[1], [0], [0], [1], [0, 0, 1, 1], [], []>} : vector<2x4096xf32>, vector<4096x256xf32>, vector<2x256xf32> -> vector<2x256xf32>
    %c0_3 = arith.constant 0 : index
    %c0_4 = arith.constant 0 : index
    %3 = vector.load %arg3[%c0_3, %c0_4] : memref<1x256xf32, #tpu.memory_space<vmem>>, vector<1x256xf32>
    %4 = vector.broadcast %3 : vector<1x256xf32> to vector<2x256xf32>
    %5 = arith.addf %2, %4 : vector<2x256xf32>
    %cst_5 = arith.constant 0.000000e+00 : f32
    %6 = vector.broadcast %cst_5 : f32 to vector<2x256xf32>
    %7 = arith.cmpf ogt, %5, %6 : vector<2x256xf32>
    %8 = math.exp %5 : vector<2x256xf32>
    %cst_6 = arith.constant 1.000000e+00 : f32
    %9 = vector.broadcast %cst_6 : f32 to vector<2x256xf32>
    %10 = arith.subf %8, %9 : vector<2x256xf32>
    %cst_7 = arith.constant 1.67326319 : f32
    %11 = vector.broadcast %cst_7 : f32 to vector<2x256xf32>
    %12 = arith.mulf %11, %10 : vector<2x256xf32>
    %13 = arith.select %7, %5, %12 : vector<2x256xi1>, vector<2x256xf32>
    %cst_8 = arith.constant 1.05070102 : f32
    %14 = vector.broadcast %cst_8 : f32 to vector<2x256xf32>
    %15 = arith.mulf %14, %13 : vector<2x256xf32>
    %c0_9 = arith.constant 0 : index
    %c0_10 = arith.constant 0 : index
    %16 = vector.load %arg4[%c0_9, %c0_10] : memref<256x128xf32, #tpu.memory_space<vmem>>, vector<256x128xf32>
    %cst_11 = arith.constant dense<0.000000e+00> : vector<2x128xf32>
    %17 = tpu.matmul %15, %16, %cst_11 {dimension_numbers = #tpu.dot_dimension_numbers<[1], [0], [0], [1], [0, 0, 1, 1], [], []>} : vector<2x256xf32>, vector<256x128xf32>, vector<2x128xf32> -> vector<2x128xf32>
    %c0_12 = arith.constant 0 : index
    %c0_13 = arith.constant 0 : index
    %18 = vector.load %arg5[%c0_12, %c0_13] : memref<1x128xf32, #tpu.memory_space<vmem>>, vector<1x128xf32>
    %19 = vector.broadcast %18 : vector<1x128xf32> to vector<2x128xf32>
    %20 = arith.addf %17, %19 : vector<2x128xf32>
    %cst_14 = arith.constant 0.000000e+00 : f32
    %21 = vector.broadcast %cst_14 : f32 to vector<2x128xf32>
    %22 = arith.cmpf ogt, %20, %21 : vector<2x128xf32>
    %23 = math.exp %20 : vector<2x128xf32>
    %cst_15 = arith.constant 1.000000e+00 : f32
    %24 = vector.broadcast %cst_15 : f32 to vector<2x128xf32>
    %25 = arith.subf %23, %24 : vector<2x128xf32>
    %cst_16 = arith.constant 1.67326319 : f32
    %26 = vector.broadcast %cst_16 : f32 to vector<2x128xf32>
    %27 = arith.mulf %26, %25 : vector<2x128xf32>
    %28 = arith.select %22, %20, %27 : vector<2x128xi1>, vector<2x128xf32>
    %cst_17 = arith.constant 1.05070102 : f32
    %29 = vector.broadcast %cst_17 : f32 to vector<2x128xf32>
    %30 = arith.mulf %29, %28 : vector<2x128xf32>
    %c0_18 = arith.constant 0 : index
    %c0_19 = arith.constant 0 : index
    %31 = vector.load %arg6[%c0_18, %c0_19] : memref<2x128xf32, #tpu.memory_space<vmem>>, vector<2x128xf32>
    tpu.vector_store %arg6[%c0_18, %c0_19], %30 {strides = array<i32>} : memref<2x128xf32, #tpu.memory_space<vmem>>, vector<2x128xf32>,
    return
  }
  func.func @transform_0(%arg0: i32) -> (i32, i32) {
    %c0_i32 = arith.constant 0 : i32
    %c0_i32_0 = arith.constant 0 : i32
    %c0_i32_1 = arith.constant 0 : i32
    return %c0_i32, %c0_i32_0 : i32, i32
  }
  func.func @transform_1(%arg0: i32) -> (i32, i32) {
    %c0_i32 = arith.constant 0 : i32
    %c0_i32_0 = arith.constant 0 : i32
    %c0_i32_1 = arith.constant 0 : i32
    return %c0_i32, %c0_i32_0 : i32, i32
  }
  func.func @transform_2(%arg0: i32) -> (i32, i32) {
    %c0_i32 = arith.constant 0 : i32
    %c0_i32_0 = arith.constant 0 : i32
    %c0_i32_1 = arith.constant 0 : i32
    return %c0_i32, %c0_i32_0 : i32, i32
  }
  func.func @transform_3(%arg0: i32) -> (i32, i32) {
    %c0_i32 = arith.constant 0 : i32
    %c0_i32_0 = arith.constant 0 : i32
    %c0_i32_1 = arith.constant 0 : i32
    return %c0_i32, %c0_i32_0 : i32, i32
  }
  func.func @transform_4(%arg0: i32) -> (i32, i32) {
    %c0_i32 = arith.constant 0 : i32
    %c0_i32_0 = arith.constant 0 : i32
    %c0_i32_1 = arith.constant 0 : i32
    return %c0_i32, %c0_i32_0 : i32, i32
  }
  func.func @transform_5(%arg0: i32) -> (i32, i32) {
    %c0_i32 = arith.constant 0 : i32
    %c0_i32_0 = arith.constant 0 : i32
    %c0_i32_1 = arith.constant 0 : i32
    return %c0_i32, %c0_i32_0 : i32, i32
  }
}

</mosaic_0001>

<bundles_post_ra>
// kernel: forward_linear_encoder.1
= control target key start
LH: loop header
LB: loop body
LE: loop exit
PB: predicated region body
PF: predicated region fallthrough
CT: control target
= control target key end

     0   :  { %10 = vsyncpa [#allocation3], 0  ;;  %s2931_s0 = inlined_call_operand.vmem [shape: f32[2,4096], index: 0, kind: input, shape index: {}]   ;;  %s2932_s1 = inlined_call_operand.hbm [shape: f32[4096,256], index: 1, kind: input, shape index: {}]   ;;  %s2933_s2 = inlined_call_operand.hbm [shape: f32[1,256], index: 2, kind: input, shape index: {}]   ;;  %s2934_s3 = inlined_call_operand.vmem [shape: f32[256,128], index: 3, kind: input, shape index: {}]   ;;  %s2935_s4 = inlined_call_operand.vmem [shape: f32[1,128], index: 4, kind: input, shape index: {}]   ;;  %s2936_s5 = inlined_call_operand.hbm [shape: f32[2,128], index: 5, kind: output, shape index: {}]  }
   0x1   :  { %11 = vsyncpa [#allocation6], 0 }
   0x2   :  { %12 = vsyncpa [#allocation4], 0  ;;  %s19_s20 = sshll.u32 %s2932_s1, 4  ;;  %s2668_s21 = smov [#allocation2]   ;;  %s20_s20 = int_to_ptr.hbm [resolvable:$true] %s19_s20 }
   0x3   :  { %s21_s22 = sshll.u32 %s2668_s21, 4  ;;  %s33_s25 = sshll.u32 %s2933_s2, 4  ;;  %s22_s22 = int_to_ptr.vmem [resolvable:$true] %s21_s22  ;;  %s34_s25 = int_to_ptr.hbm [resolvable:$true] %s33_s25 }
   0x4   :  { %s2669_s26 = smov 256   ;;  %s2670_s27 = smov 16  }
   0x5   :  { %27 = dma.hbm_to_vmem [thread:$0]  %s20_s20, 131072, %s22_s22, [#allocation3], %s2669_s26, %s2669_s26, %s2670_s27  }
   0x6   :  { %s2671_s28 = smov [#allocation5]  }
   0x7   :  { %s35_s29 = sshll.u32 %s2671_s28, 4  ;;  %s36_s29 = int_to_ptr.vmem [resolvable:$true] %s35_s29 }
   0x8   :  { %38 = dma.hbm_to_vmem [thread:$0]  %s34_s25, 32, %s36_s29, [#allocation6]  }
   0x9   :  { %2662 = dma.done.wait [#allocation3], 131072  }
   0xa   :  { %2663 = vsyncadd [#allocation3], 4294836224 }
   0xb   :  { %2664 = dma.done.wait [#allocation6], 32  }
   0xc   :  { %2665 = vsyncadd [#allocation6], 4294967264  ;;  %v89_v0 = vld [vmem:[#allocation2 + $0xf0] sm:$0xff]  ;;  %v87_v2 = vld [vmem:[#allocation2 + $0xe0] sm:$0xff]  ;;  %s2672_s27 = smov [#allocation7]   ;;  %s2555_s2 = sshll.u32 %s2936_s5, 4  ;;  %s2556_s2 = int_to_ptr.hbm [resolvable:$true] %s2555_s2 }
   0xd   :  { %v153_v1 = vld [vmem:[#allocation2 + $0x2f0] sm:$0xff]  ;;  %1170 = vmatpush.msra.mxu0 %v89_v0  ;;  %v151_v4 = vld [vmem:[#allocation2 + $0x2e0] sm:$0xff]  ;;  %s2553_s28 = sshll.u32 %s2672_s27, 4  ;;  %s2554_s28 = int_to_ptr.vmem [resolvable:$true] %s2553_s28 }
   0xe   :  { %1210 = vmatpush.msra.mxu2 %v153_v1  ;;  %v121_v3 = vld [vmem:[#allocation2 + $0x1f0] sm:$0xff]  ;;  %v119_v7 = vld [vmem:[#allocation2 + $0x1e0] sm:$0xff] }
   0xf   :  { %v185_v5 = vld [vmem:[#allocation2 + $0x3f0] sm:$0xff]  ;;  %1190 = vmatpush.msra.mxu1 %v121_v3  ;;  %1171 = vmatpush.msra.mxu0 %v87_v2  ;;  %v183_v9 = vld [vmem:[#allocation2 + $0x3e0] sm:$0xff] }
  0x10   :  { %1230 = vmatpush.msra.mxu3 %v185_v5  ;;  %v85_v6 = vld [vmem:[#allocation2 + $0xd0] sm:$0xff]  ;;  %1211 = vmatpush.msra.mxu2 %v151_v4  ;;  %v83_v11 = vld [vmem:[#allocation2 + $0xc0] sm:$0xff] }
  0x11   :  { %v149_v8 = vld [vmem:[#allocation2 + $0x2d0] sm:$0xff]  ;;  %1191 = vmatpush.msra.mxu1 %v119_v7  ;;  %v147_v12 = vld [vmem:[#allocation2 + $0x2c0] sm:$0xff]  ;;  %1172 = vmatpush.msra.mxu0 %v85_v6 }
  0x12   :  { %v117_v10 = vld [vmem:[#allocation2 + $0x1d0] sm:$0xff]  ;;  %1231 = vmatpush.msra.mxu3 %v183_v9  ;;  %1212 = vmatpush.msra.mxu2 %v149_v8  ;;  %v115_v14 = vld [vmem:[#allocation2 + $0x1c0] sm:$0xff] }
  0x13   :  { %v181_v13 = vld [vmem:[#allocation2 + $0x3d0] sm:$0xff]  ;;  %v179_v15 = vld [vmem:[#allocation2 + $0x3c0] sm:$0xff]  ;;  %1192 = vmatpush.msra.mxu1 %v117_v10  ;;  %1173 = vmatpush.msra.mxu0 %v83_v11 }
  0x14   :  { %1232 = vmatpush.msra.mxu3 %v181_v13  ;;  %v81_v16 = vld [vmem:[#allocation2 + $0xb0] sm:$0xff]  ;;  %1213 = vmatpush.msra.mxu2 %v147_v12  ;;  %v79_v20 = vld [vmem:[#allocation2 + $0xa0] sm:$0xff] }
  0x15   :  { %v145_v17 = vld [vmem:[#allocation2 + $0x2b0] sm:$0xff]  ;;  %1193 = vmatpush.msra.mxu1 %v115_v14  ;;  %v143_v21 = vld [vmem:[#allocation2 + $0x2a0] sm:$0xff]  ;;  %1174 = vmatpush.msra.mxu0 %v81_v16 }
  0x16   :  { %v113_v18 = vld [vmem:[#allocation2 + $0x1b0] sm:$0xff]  ;;  %1233 = vmatpush.msra.mxu3 %v179_v15  ;;  %1214 = vmatpush.msra.mxu2 %v145_v17  ;;  %v111_v22 = vld [vmem:[#allocation2 + $0x1a0] sm:$0xff] }
  0x17   :  { %v177_v19 = vld [vmem:[#allocation2 + $0x3b0] sm:$0xff]  ;;  %v175_v23 = vld [vmem:[#allocation2 + $0x3a0] sm:$0xff]  ;;  %1194 = vmatpush.msra.mxu1 %v113_v18  ;;  %1175 = vmatpush.msra.mxu0 %v79_v20 }
  0x18   :  { %1234 = vmatpush.msra.mxu3 %v177_v19  ;;  %v77_v24 = vld [vmem:[#allocation2 + $0x90] sm:$0xff]  ;;  %1215 = vmatpush.msra.mxu2 %v143_v21  ;;  %v75_v28 = vld [vmem:[#allocation2 + $0x80] sm:$0xff] }
  0x19   :  { %v141_v25 = vld [vmem:[#allocation2 + $0x290] sm:$0xff]  ;;  %1195 = vmatpush.msra.mxu1 %v111_v22  ;;  %v139_v29 = vld [vmem:[#allocation2 + $0x280] sm:$0xff]  ;;  %1176 = vmatpush.msra.mxu0 %v77_v24 }
  0x1a   :  { %v109_v26 = vld [vmem:[#allocation2 + $0x190] sm:$0xff]  ;;  %1235 = vmatpush.msra.mxu3 %v175_v23  ;;  %1216 = vmatpush.msra.mxu2 %v141_v25  ;;  %v107_v30 = vld [vmem:[#allocation2 + $0x180] sm:$0xff] }
  0x1b   :  { %v173_v27 = vld [vmem:[#allocation2 + $0x390] sm:$0xff]  ;;  %v171_v31 = vld [vmem:[#allocation2 + $0x380] sm:$0xff]  ;;  %1196 = vmatpush.msra.mxu1 %v109_v26  ;;  %1177 = vmatpush.msra.mxu0 %v75_v28  ;;  %v51_v26 = vld [vmem:[%s2931_s0] sm:$0xff] }
  0x1c   :  { %1236 = vmatpush.msra.mxu3 %v173_v27  ;;  %v73_v32 = vld [vmem:[#allocation2 + $0x70] sm:$0xff]  ;;  %1217 = vmatpush.msra.mxu2 %v139_v29  ;;  %v71_v36 = vld [vmem:[#allocation2 + $0x60] sm:$0xff]  ;;  %1097 = vst [vmem:[#allocation1] ss:$4 sm:$0xff] %v51_v26 }
  0x1d   :  { %v137_v33 = vld [vmem:[#allocation2 + $0x270] sm:$0xff]  ;;  %1197 = vmatpush.msra.mxu1 %v107_v30  ;;  %v135_v37 = vld [vmem:[#allocation2 + $0x260] sm:$0xff]  ;;  %1178 = vmatpush.msra.mxu0 %v73_v32 }
  0x1e   :  { %v105_v34 = vld [vmem:[#allocation2 + $0x170] sm:$0xff]  ;;  %1237 = vmatpush.msra.mxu3 %v171_v31  ;;  %1218 = vmatpush.msra.mxu2 %v137_v33  ;;  %v103_v38 = vld [vmem:[#allocation2 + $0x160] sm:$0xff] }
  0x1f   :  { %v169_v35 = vld [vmem:[#allocation2 + $0x370] sm:$0xff]  ;;  %v167_v39 = vld [vmem:[#allocation2 + $0x360] sm:$0xff]  ;;  %1198 = vmatpush.msra.mxu1 %v105_v34  ;;  %1179 = vmatpush.msra.mxu0 %v71_v36 }
  0x20   :  { %1238 = vmatpush.msra.mxu3 %v169_v35  ;;  %v69_v40 = vld [vmem:[#allocation2 + $0x50] sm:$0xff]  ;;  %1219 = vmatpush.msra.mxu2 %v135_v37  ;;  %v67_v44 = vld [vmem:[#allocation2 + $0x40] sm:$0xff] }
  0x21   :  { %v133_v41 = vld [vmem:[#allocation2 + $0x250] sm:$0xff]  ;;  %1199 = vmatpush.msra.mxu1 %v103_v38  ;;  %v131_v45 = vld [vmem:[#allocation2 + $0x240] sm:$0xff]  ;;  %1180 = vmatpush.msra.mxu0 %v69_v40 }
  0x22   :  { %v101_v42 = vld [vmem:[#allocation2 + $0x150] sm:$0xff]  ;;  %1239 = vmatpush.msra.mxu3 %v167_v39  ;;  %1220 = vmatpush.msra.mxu2 %v133_v41  ;;  %v99_v46 = vld [vmem:[#allocation2 + $0x140] sm:$0xff] }
  0x23   :  { %v165_v43 = vld [vmem:[#allocation2 + $0x350] sm:$0xff]  ;;  %v163_v47 = vld [vmem:[#allocation2 + $0x340] sm:$0xff]  ;;  %1200 = vmatpush.msra.mxu1 %v101_v42  ;;  %1181 = vmatpush.msra.mxu0 %v67_v44 }
  0x24   :  { %1240 = vmatpush.msra.mxu3 %v165_v43  ;;  %v65_v48 = vld [vmem:[#allocation2 + $0x30] sm:$0xff]  ;;  %1221 = vmatpush.msra.mxu2 %v131_v45  ;;  %v63_v52 = vld [vmem:[#allocation2 + $0x20] sm:$0xff] }
  0x25   :  { %v129_v49 = vld [vmem:[#allocation2 + $0x230] sm:$0xff]  ;;  %1201 = vmatpush.msra.mxu1 %v99_v46  ;;  %v127_v53 = vld [vmem:[#allocation2 + $0x220] sm:$0xff]  ;;  %1182 = vmatpush.msra.mxu0 %v65_v48  ;;  %v53_v46 = vld [vmem:[%s2931_s0 + $0x10] sm:$0xff] }
  0x26   :  { %v97_v50 = vld [vmem:[#allocation2 + $0x130] sm:$0xff]  ;;  %1241 = vmatpush.msra.mxu3 %v163_v47  ;;  %1222 = vmatpush.msra.mxu2 %v129_v49  ;;  %v95_v54 = vld [vmem:[#allocation2 + $0x120] sm:$0xff]  ;;  %v2718_v48 = vld.sshfl [vmem:[#allocation1] sm:$0xff pattern:$0x73625140] }
  0x27   :  { %v161_v51 = vld [vmem:[#allocation2 + $0x330] sm:$0xff]  ;;  %v159_v55 = vld [vmem:[#allocation2 + $0x320] sm:$0xff]  ;;  %1202 = vmatpush.msra.mxu1 %v97_v50  ;;  %1183 = vmatpush.msra.mxu0 %v63_v52  ;;  %v2720_v49 = vld.sshfl [vmem:[#allocation1 + $0x10] sm:$0xff pattern:$0x73625140] }
  0x28   :  { %1242 = vmatpush.msra.mxu3 %v161_v51  ;;  %v61_v56 = vld [vmem:[#allocation2 + $0x10] sm:$0xff]  ;;  %1223 = vmatpush.msra.mxu2 %v127_v53  ;;  %v59_v60 = vld [vmem:[#allocation2] sm:$0xff] }
  0x29   :  { %v125_v57 = vld [vmem:[#allocation2 + $0x210] sm:$0xff]  ;;  %1203 = vmatpush.msra.mxu1 %v95_v54  ;;  %v123_v61 = vld [vmem:[#allocation2 + $0x200] sm:$0xff]  ;;  %1184 = vmatpush.msra.mxu0 %v61_v56 }
  0x2a   :  { %v93_v58 = vld [vmem:[#allocation2 + $0x110] sm:$0xff]  ;;  %1243 = vmatpush.msra.mxu3 %v159_v55  ;;  %1224 = vmatpush.msra.mxu2 %v125_v57  ;;  %v91_v0 = vld [vmem:[#allocation2 + $0x100] sm:$0xff] }
  0x2b   :  { %v157_v59 = vld [vmem:[#allocation2 + $0x310] sm:$0xff]  ;;  %1204 = vmatpush.msra.mxu1 %v93_v58  ;;  %v155_v1 = vld [vmem:[#allocation2 + $0x300] sm:$0xff]  ;;  %1185 = vmatpush.msra.mxu0 %v59_v60 }
  0x2c   :  { %v217_v62 = vld [vmem:[#allocation2 + $0x4f0] sm:$0xff]  ;;  %1244 = vmatpush.msra.mxu3 %v157_v59  ;;  %1225 = vmatpush.msra.mxu2 %v123_v61  ;;  %v215_v2 = vld [vmem:[#allocation2 + $0x4e0] sm:$0xff] }
  0x2d   :  { %v281_v63 = vld [vmem:[#allocation2 + $0x6f0] sm:$0xff]  ;;  %1250 = vmatpush.msrb.mxu0 %v217_v62  ;;  %v279_v4 = vld [vmem:[#allocation2 + $0x6e0] sm:$0xff]  ;;  %1205 = vmatpush.msra.mxu1 %v91_v0 }
  0x2e   :  { %v249_v3 = vld [vmem:[#allocation2 + $0x5f0] sm:$0xff]  ;;  %1290 = vmatpush.msrb.mxu2 %v281_v63  ;;  %1245 = vmatpush.msra.mxu3 %v155_v1  ;;  %v247_v7 = vld [vmem:[#allocation2 + $0x5e0] sm:$0xff] }
  0x2f   :  { %v313_v5 = vld [vmem:[#allocation2 + $0x7f0] sm:$0xff]  ;;  %1251 = vmatpush.msrb.mxu0 %v215_v2  ;;  %1270 = vmatpush.msrb.mxu1 %v249_v3  ;;  %v311_v9 = vld [vmem:[#allocation2 + $0x7e0] sm:$0xff] }
  0x30   :  { %v213_v6 = vld [vmem:[#allocation2 + $0x4d0] sm:$0xff]  ;;  %1291 = vmatpush.msrb.mxu2 %v279_v4  ;;  %1310 = vmatpush.msrb.mxu3 %v313_v5  ;;  %v211_v10 = vld [vmem:[#allocation2 + $0x4c0] sm:$0xff] }
  0x31   :  { %v277_v8 = vld [vmem:[#allocation2 + $0x6d0] sm:$0xff]  ;;  %1252 = vmatpush.msrb.mxu0 %v213_v6  ;;  %1271 = vmatpush.msrb.mxu1 %v247_v7  ;;  %v275_v12 = vld [vmem:[#allocation2 + $0x6c0] sm:$0xff] }
  0x32   :  { %v245_v11 = vld [vmem:[#allocation2 + $0x5d0] sm:$0xff]  ;;  %1292 = vmatpush.msrb.mxu2 %v277_v8  ;;  %1311 = vmatpush.msrb.mxu3 %v311_v9  ;;  %v243_v15 = vld [vmem:[#allocation2 + $0x5c0] sm:$0xff] }
  0x33   :  { %v309_v13 = vld [vmem:[#allocation2 + $0x7d0] sm:$0xff]  ;;  %1253 = vmatpush.msrb.mxu0 %v211_v10  ;;  %1272 = vmatpush.msrb.mxu1 %v245_v11  ;;  %v307_v17 = vld [vmem:[#allocation2 + $0x7c0] sm:$0xff] }
  0x34   :  { %v209_v14 = vld [vmem:[#allocation2 + $0x4b0] sm:$0xff]  ;;  %1293 = vmatpush.msrb.mxu2 %v275_v12  ;;  %1312 = vmatpush.msrb.mxu3 %v309_v13  ;;  %v207_v18 = vld [vmem:[#allocation2 + $0x4a0] sm:$0xff] }
  0x35   :  { %v273_v16 = vld [vmem:[#allocation2 + $0x6b0] sm:$0xff]  ;;  %1254 = vmatpush.msrb.mxu0 %v209_v14  ;;  %1273 = vmatpush.msrb.mxu1 %v243_v15  ;;  %v271_v20 = vld [vmem:[#allocation2 + $0x6a0] sm:$0xff] }
  0x36   :  { %v241_v19 = vld [vmem:[#allocation2 + $0x5b0] sm:$0xff]  ;;  %1294 = vmatpush.msrb.mxu2 %v273_v16  ;;  %1313 = vmatpush.msrb.mxu3 %v307_v17  ;;  %v239_v23 = vld [vmem:[#allocation2 + $0x5a0] sm:$0xff] }
  0x37   :  { %v305_v21 = vld [vmem:[#allocation2 + $0x7b0] sm:$0xff]  ;;  %1255 = vmatpush.msrb.mxu0 %v207_v18  ;;  %1274 = vmatpush.msrb.mxu1 %v241_v19  ;;  %v303_v25 = vld [vmem:[#allocation2 + $0x7a0] sm:$0xff] }
  0x38   :  { %v205_v22 = vld [vmem:[#allocation2 + $0x490] sm:$0xff]  ;;  %1295 = vmatpush.msrb.mxu2 %v271_v20  ;;  %1314 = vmatpush.msrb.mxu3 %v305_v21  ;;  %v203_v27 = vld [vmem:[#allocation2 + $0x480] sm:$0xff] }
  0x39   :  { %v269_v24 = vld [vmem:[#allocation2 + $0x690] sm:$0xff]  ;;  %1256 = vmatpush.msrb.mxu0 %v205_v22  ;;  %1275 = vmatpush.msrb.mxu1 %v239_v23  ;;  %v267_v29 = vld [vmem:[#allocation2 + $0x680] sm:$0xff] }
  0x3a   :  { %v237_v28 = vld [vmem:[#allocation2 + $0x590] sm:$0xff]  ;;  %1296 = vmatpush.msrb.mxu2 %v269_v24  ;;  %1315 = vmatpush.msrb.mxu3 %v303_v25  ;;  %v235_v32 = vld [vmem:[#allocation2 + $0x580] sm:$0xff] }
  0x3b   :  { %v301_v30 = vld [vmem:[#allocation2 + $0x790] sm:$0xff]  ;;  %v299_v34 = vld [vmem:[#allocation2 + $0x780] sm:$0xff]  ;;  %1257 = vmatpush.msrb.mxu0 %v203_v27  ;;  %1276 = vmatpush.msrb.mxu1 %v237_v28 }
  0x3c   :  { %v201_v31 = vld [vmem:[#allocation2 + $0x470] sm:$0xff]  ;;  %v199_v35 = vld [vmem:[#allocation2 + $0x460] sm:$0xff]  ;;  %1297 = vmatpush.msrb.mxu2 %v267_v29  ;;  %1316 = vmatpush.msrb.mxu3 %v301_v30  ;;  %v55_v30 = vld [vmem:[%s2931_s0 + $0x20] sm:$0xff] }
  0x3d   :  { %v265_v33 = vld [vmem:[#allocation2 + $0x670] sm:$0xff]  ;;  %v263_v37 = vld [vmem:[#allocation2 + $0x660] sm:$0xff]  ;;  %1258 = vmatpush.msrb.mxu0 %v201_v31  ;;  %1277 = vmatpush.msrb.mxu1 %v235_v32 }
  0x3e   :  { %v233_v36 = vld [vmem:[#allocation2 + $0x570] sm:$0xff]  ;;  %v231_v40 = vld [vmem:[#allocation2 + $0x560] sm:$0xff]  ;;  %1298 = vmatpush.msrb.mxu2 %v265_v33  ;;  %1317 = vmatpush.msrb.mxu3 %v299_v34 }
  0x3f   :  { %v297_v38 = vld [vmem:[#allocation2 + $0x770] sm:$0xff]  ;;  %v295_v42 = vld [vmem:[#allocation2 + $0x760] sm:$0xff]  ;;  %1259 = vmatpush.msrb.mxu0 %v199_v35  ;;  %1278 = vmatpush.msrb.mxu1 %v233_v36 }
  0x40   :  { %v197_v39 = vld [vmem:[#allocation2 + $0x450] sm:$0xff]  ;;  %v52_v43 = vld [vmem:[%s2931_s0 + $0x8] sm:$0xff]  ;;  %1299 = vmatpush.msrb.mxu2 %v263_v37  ;;  %1318 = vmatpush.msrb.mxu3 %v297_v38 }
  0x41   :  { %v261_v41 = vld [vmem:[#allocation2 + $0x650] sm:$0xff]  ;;  %v195_v44 = vld [vmem:[#allocation2 + $0x440] sm:$0xff]  ;;  %1099 = vst [vmem:[#allocation1 + $0x20] ss:$4 sm:$0xff] %v52_v43  ;;  %1260 = vmatpush.msrb.mxu0 %v197_v39  ;;  %1279 = vmatpush.msrb.mxu1 %v231_v40 }
  0x42   :  { %v229_v45 = vld [vmem:[#allocation2 + $0x550] sm:$0xff]  ;;  %v259_v47 = vld [vmem:[#allocation2 + $0x640] sm:$0xff]  ;;  %1300 = vmatpush.msrb.mxu2 %v261_v41  ;;  %1319 = vmatpush.msrb.mxu3 %v295_v42 }
  0x43   :  { %v2722_v50 = vld.sshfl [vmem:[#allocation1 + $0x8] sm:$0xff pattern:$0x73625140]  ;;  %v2724_v51 = vld.sshfl [vmem:[#allocation1 + $0x18] sm:$0xff pattern:$0x73625140]  ;;  %1261 = vmatpush.msrb.mxu0 %v195_v44  ;;  %1280 = vmatpush.msrb.mxu1 %v229_v45 }
  0x44   :  { %v293_v52 = vld [vmem:[#allocation2 + $0x750] sm:$0xff]  ;;  %v227_v54 = vld [vmem:[#allocation2 + $0x540] sm:$0xff]  ;;  %1108 = vst [vmem:[#allocation1] ss:$4 sm:$0xff] %v53_v46  ;;  %1301 = vmatpush.msrb.mxu2 %v259_v47  ;;  %1186 = vmatmul.f32.vlgmr.msra.gmra.mxu0 %v2718_v48 }
  0x45   :  { %v193_v53 = vld [vmem:[#allocation2 + $0x430] sm:$0xff]  ;;  %v291_v56 = vld [vmem:[#allocation2 + $0x740] sm:$0xff]  ;;  %1320 = vmatpush.msrb.mxu3 %v293_v52  ;;  %1281 = vmatpush.msrb.mxu1 %v227_v54 }
  0x46   :  { %v257_v55 = vld [vmem:[#allocation2 + $0x630] sm:$0xff]  ;;  %v191_v57 = vld [vmem:[#allocation2 + $0x420] sm:$0xff]  ;;  %1262 = vmatpush.msrb.mxu0 %v193_v53  ;;  %1226 = vmatmul.f32.vlgmr.msra.gmra.mxu2 %v2720_v49 }
  0x47   :  { %v225_v58 = vld [vmem:[#allocation2 + $0x530] sm:$0xff]  ;;  %v255_v59 = vld [vmem:[#allocation2 + $0x620] sm:$0xff]  ;;  %1302 = vmatpush.msrb.mxu2 %v257_v55  ;;  %1321 = vmatpush.msrb.mxu3 %v291_v56 }
  0x48   :  { %v289_v60 = vld [vmem:[#allocation2 + $0x730] sm:$0xff]  ;;  %v223_v62 = vld [vmem:[#allocation2 + $0x520] sm:$0xff]  ;;  %v2729_v0 = vld.sshfl [vmem:[#allocation1 + $0x30] sm:$0xff pattern:$0x73625140]  ;;  %1263 = vmatpush.msrb.mxu0 %v191_v57  ;;  %1282 = vmatpush.msrb.mxu1 %v225_v58 }
  0x49   :  { %v189_v61 = vld [vmem:[#allocation2 + $0x410] sm:$0xff]  ;;  %v2731_v1 = vld.sshfl [vmem:[#allocation1 + $0x20] sm:$0xff pattern:$0x73625140]  ;;  %v287_v5 = vld [vmem:[#allocation2 + $0x720] sm:$0xff]  ;;  %1303 = vmatpush.msrb.mxu2 %v255_v59  ;;  %1322 = vmatpush.msrb.mxu3 %v289_v60 }
  0x4a   :  { %v54_v63 = vld [vmem:[%s2931_s0 + $0x18] sm:$0xff]  ;;  %v2735_v3 = vld.sshfl [vmem:[#allocation1 + $0x28] sm:$0xff pattern:$0x73625140]  ;;  %1264 = vmatpush.msrb.mxu0 %v189_v61  ;;  %1283 = vmatpush.msrb.mxu1 %v223_v62 }
  0x4b   :  { %v2733_v2 = vld.sshfl [vmem:[#allocation1 + $0x38] sm:$0xff pattern:$0x73625140]  ;;  %v187_v6 = vld [vmem:[#allocation2 + $0x400] sm:$0xff]  ;;  %1323 = vmatpush.msrb.mxu3 %v287_v5  ;;  %1206 = vmatmul.f32.vlgmr.msra.gmra.mxu1 %v2722_v50 }
  0x4c   :  { %v253_v4 = vld [vmem:[#allocation2 + $0x610] sm:$0xff]  ;;  %1109 = vst [vmem:[#allocation1 + $0x20] ss:$4 sm:$0xff] %v54_v63  ;;  %v251_v8 = vld [vmem:[#allocation2 + $0x600] sm:$0xff]  ;;  %1265 = vmatpush.msrb.mxu0 %v187_v6  ;;  %1246 = vmatmul.f32.vlgmr.msra.gmra.mxu3 %v2724_v51 }
  0x4d   :  { %v221_v7 = vld [vmem:[#allocation2 + $0x510] sm:$0xff]  ;;  %1304 = vmatpush.msrb.mxu2 %v253_v4  ;;  %v219_v12 = vld [vmem:[#allocation2 + $0x500] sm:$0xff]  ;;  %v2741_v26 = vld.sshfl [vmem:[#allocation1] sm:$0xff pattern:$0x73625140]  ;;  %1266 = vmatmul.f32.vlgmr.msrb.gmra.mxu0 %v2731_v1 }
  0x4e   :  { %v285_v9 = vld [vmem:[#allocation2 + $0x710] sm:$0xff]  ;;  %1284 = vmatpush.msrb.mxu1 %v221_v7  ;;  %v283_v13 = vld [vmem:[#allocation2 + $0x700] sm:$0xff]  ;;  %v2743_v27 = vld.sshfl [vmem:[#allocation1 + $0x10] sm:$0xff pattern:$0x73625140] }
  0x4f   :  { %v345_v10 = vld [vmem:[#allocation2 + $0x8f0] sm:$0xff]  ;;  %1305 = vmatpush.msrb.mxu2 %v251_v8  ;;  %1324 = vmatpush.msrb.mxu3 %v285_v9  ;;  %v343_v14 = vld [vmem:[#allocation2 + $0x8e0] sm:$0xff] }
  0x50   :  { %v409_v11 = vld [vmem:[#allocation2 + $0xaf0] sm:$0xff]  ;;  %1330 = vmatpush.msra.mxu0 %v345_v10  ;;  %1285 = vmatpush.msrb.mxu1 %v219_v12  ;;  %v407_v16 = vld [vmem:[#allocation2 + $0xae0] sm:$0xff] }
  0x51   :  { %1370 = vmatpush.msra.mxu2 %v409_v11  ;;  %v377_v15 = vld [vmem:[#allocation2 + $0x9f0] sm:$0xff]  ;;  %1325 = vmatpush.msrb.mxu3 %v283_v13  ;;  %v375_v19 = vld [vmem:[#allocation2 + $0x9e0] sm:$0xff] }
  0x52   :  { %v441_v17 = vld [vmem:[#allocation2 + $0xbf0] sm:$0xff]  ;;  %1331 = vmatpush.msra.mxu0 %v343_v14  ;;  %1350 = vmatpush.msra.mxu1 %v377_v15  ;;  %v439_v21 = vld [vmem:[#allocation2 + $0xbe0] sm:$0xff] }
  0x53   :  { %v341_v18 = vld [vmem:[#allocation2 + $0x8d0] sm:$0xff]  ;;  %v339_v22 = vld [vmem:[#allocation2 + $0x8c0] sm:$0xff]  ;;  %1371 = vmatpush.msra.mxu2 %v407_v16  ;;  %1390 = vmatpush.msra.mxu3 %v441_v17 }
  0x54   :  { %v405_v20 = vld [vmem:[#allocation2 + $0xad0] sm:$0xff]  ;;  %v403_v24 = vld [vmem:[#allocation2 + $0xac0] sm:$0xff]  ;;  %1332 = vmatpush.msra.mxu0 %v341_v18  ;;  %1351 = vmatpush.msra.mxu1 %v375_v19 }
  0x55   :  { %v373_v23 = vld [vmem:[#allocation2 + $0x9d0] sm:$0xff]  ;;  %v2745_v28 = vld.sshfl [vmem:[#allocation1 + $0x8] sm:$0xff pattern:$0x73625140]  ;;  %1372 = vmatpush.msra.mxu2 %v405_v20  ;;  %1391 = vmatpush.msra.mxu3 %v439_v21 }
  0x56   :  { %v437_v25 = vld [vmem:[#allocation2 + $0xbd0] sm:$0xff]  ;;  %1333 = vmatpush.msra.mxu0 %v339_v22  ;;  %1352 = vmatpush.msra.mxu1 %v373_v23  ;;  %v371_v32 = vld [vmem:[#allocation2 + $0x9c0] sm:$0xff] }
  0x57   :  { %v337_v29 = vld [vmem:[#allocation2 + $0x8b0] sm:$0xff]  ;;  %1373 = vmatpush.msra.mxu2 %v403_v24  ;;  %1392 = vmatpush.msra.mxu3 %v437_v25  ;;  %v435_v34 = vld [vmem:[#allocation2 + $0xbc0] sm:$0xff] }
  0x58   :  { %v2750_v31 = vld.sshfl [vmem:[#allocation1 + $0x18] sm:$0xff pattern:$0x73625140]  ;;  %1306 = vmatmul.f32.vlgmr.msrb.gmra.mxu2 %v2729_v0  ;;  %1334 = vmatpush.msra.mxu0 %v337_v29  ;;  %v335_v35 = vld [vmem:[#allocation2 + $0x8a0] sm:$0xff] }
  0x59   :  { %v401_v33 = vld [vmem:[#allocation2 + $0xab0] sm:$0xff]  ;;  %1118 = vst [vmem:[#allocation1] ss:$4 sm:$0xff] %v55_v30  ;;  %1353 = vmatpush.msra.mxu1 %v371_v32  ;;  %v399_v37 = vld [vmem:[#allocation2 + $0xaa0] sm:$0xff]  ;;  %1393 = vmatpush.msra.mxu3 %v435_v34 }
  0x5a   :  { %1374 = vmatpush.msra.mxu2 %v401_v33  ;;  %v369_v36 = vld [vmem:[#allocation2 + $0x9b0] sm:$0xff]  ;;  %1326 = vmatmul.f32.vlgmr.msrb.gmra.mxu3 %v2733_v2  ;;  %v367_v40 = vld [vmem:[#allocation2 + $0x9a0] sm:$0xff] }
  0x5b   :  { %v433_v38 = vld [vmem:[#allocation2 + $0xbb0] sm:$0xff]  ;;  %1335 = vmatpush.msra.mxu0 %v335_v35  ;;  %1354 = vmatpush.msra.mxu1 %v369_v36  ;;  %v431_v42 = vld [vmem:[#allocation2 + $0xba0] sm:$0xff] }
  0x5c   :  { %v333_v39 = vld [vmem:[#allocation2 + $0x890] sm:$0xff]  ;;  %1375 = vmatpush.msra.mxu2 %v399_v37  ;;  %1394 = vmatpush.msra.mxu3 %v433_v38  ;;  %v331_v43 = vld [vmem:[#allocation2 + $0x880] sm:$0xff] }
  0x5d   :  { %v397_v41 = vld [vmem:[#allocation2 + $0xa90] sm:$0xff]  ;;  %1286 = vmatmul.f32.vlgmr.msrb.gmra.mxu1 %v2735_v3  ;;  %1336 = vmatpush.msra.mxu0 %v333_v39  ;;  %v395_v45 = vld [vmem:[#allocation2 + $0xa80] sm:$0xff] }
  0x5e   :  { %v365_v44 = vld [vmem:[#allocation2 + $0x990] sm:$0xff]  ;;  %1355 = vmatpush.msra.mxu1 %v367_v40  ;;  %1376 = vmatpush.msra.mxu2 %v397_v41  ;;  %v363_v52 = vld [vmem:[#allocation2 + $0x980] sm:$0xff]  ;;  %v2760_v40 = vld.sshfl [vmem:[#allocation1 + $0x20] sm:$0xff pattern:$0x73625140] }
  0x5f   :  { %v429_v46 = vld [vmem:[#allocation2 + $0xb90] sm:$0xff]  ;;  %1395 = vmatpush.msra.mxu3 %v431_v42  ;;  %1337 = vmatpush.msra.mxu0 %v331_v43  ;;  %v427_v54 = vld [vmem:[#allocation2 + $0xb80] sm:$0xff]  ;;  %v2762_v41 = vld.sshfl [vmem:[#allocation1 + $0x30] sm:$0xff pattern:$0x73625140] }
  0x60   :  { %v329_v47 = vld [vmem:[#allocation2 + $0x870] sm:$0xff]  ;;  %1356 = vmatpush.msra.mxu1 %v365_v44  ;;  %1377 = vmatpush.msra.mxu2 %v395_v45  ;;  %v327_v55 = vld [vmem:[#allocation2 + $0x860] sm:$0xff] }
  0x61   :  { %v393_v53 = vld [vmem:[#allocation2 + $0xa70] sm:$0xff]  ;;  %1396 = vmatpush.msra.mxu3 %v429_v46  ;;  %1338 = vmatpush.msra.mxu0 %v329_v47  ;;  %v391_v57 = vld [vmem:[#allocation2 + $0xa60] sm:$0xff] }
  0x62   :  { %v361_v56 = vld [vmem:[#allocation2 + $0x970] sm:$0xff]  ;;  %1357 = vmatpush.msra.mxu1 %v363_v52  ;;  %1378 = vmatpush.msra.mxu2 %v393_v53  ;;  %v359_v60 = vld [vmem:[#allocation2 + $0x960] sm:$0xff] }
  0x63   :  { %v425_v58 = vld [vmem:[#allocation2 + $0xb70] sm:$0xff]  ;;  %1397 = vmatpush.msra.mxu3 %v427_v54  ;;  %1339 = vmatpush.msra.mxu0 %v327_v55  ;;  %v423_v62 = vld [vmem:[#allocation2 + $0xb60] sm:$0xff] }
  0x64   :  { %v325_v59 = vld [vmem:[#allocation2 + $0x850] sm:$0xff]  ;;  %1358 = vmatpush.msra.mxu1 %v361_v56  ;;  %1379 = vmatpush.msra.mxu2 %v391_v57  ;;  %v323_v63 = vld [vmem:[#allocation2 + $0x840] sm:$0xff] }
  0x65   :  { %v389_v61 = vld [vmem:[#allocation2 + $0xa50] sm:$0xff]  ;;  %1398 = vmatpush.msra.mxu3 %v425_v58  ;;  %1340 = vmatpush.msra.mxu0 %v325_v59  ;;  %v387_v5 = vld [vmem:[#allocation2 + $0xa40] sm:$0xff] }
  0x66   :  { %v357_v4 = vld [vmem:[#allocation2 + $0x950] sm:$0xff]  ;;  %1359 = vmatpush.msra.mxu1 %v359_v60  ;;  %1380 = vmatpush.msra.mxu2 %v389_v61  ;;  %v355_v8 = vld [vmem:[#allocation2 + $0x940] sm:$0xff] }
  0x67   :  { %v421_v6 = vld [vmem:[#allocation2 + $0xb50] sm:$0xff]  ;;  %1399 = vmatpush.msra.mxu3 %v423_v62  ;;  %1341 = vmatpush.msra.mxu0 %v323_v63  ;;  %v419_v10 = vld [vmem:[#allocation2 + $0xb40] sm:$0xff] }
  0x68   :  { %v321_v7 = vld [vmem:[#allocation2 + $0x830] sm:$0xff]  ;;  %1360 = vmatpush.msra.mxu1 %v357_v4  ;;  %1381 = vmatpush.msra.mxu2 %v387_v5  ;;  %v319_v11 = vld [vmem:[#allocation2 + $0x820] sm:$0xff] }
  0x69   :  { %v385_v9 = vld [vmem:[#allocation2 + $0xa30] sm:$0xff]  ;;  %1400 = vmatpush.msra.mxu3 %v421_v6  ;;  %1342 = vmatpush.msra.mxu0 %v321_v7  ;;  %v383_v13 = vld [vmem:[#allocation2 + $0xa20] sm:$0xff] }
  0x6a   :  { %v353_v12 = vld [vmem:[#allocation2 + $0x930] sm:$0xff]  ;;  %1361 = vmatpush.msra.mxu1 %v355_v8  ;;  %1382 = vmatpush.msra.mxu2 %v385_v9  ;;  %v351_v16 = vld [vmem:[#allocation2 + $0x920] sm:$0xff] }
  0x6b   :  { %v417_v14 = vld [vmem:[#allocation2 + $0xb30] sm:$0xff]  ;;  %1401 = vmatpush.msra.mxu3 %v419_v10  ;;  %1343 = vmatpush.msra.mxu0 %v319_v11  ;;  %v415_v18 = vld [vmem:[#allocation2 + $0xb20] sm:$0xff] }
  0x6c   :  { %v317_v15 = vld [vmem:[#allocation2 + $0x810] sm:$0xff]  ;;  %1362 = vmatpush.msra.mxu1 %v353_v12  ;;  %1383 = vmatpush.msra.mxu2 %v383_v13  ;;  %v315_v19 = vld [vmem:[#allocation2 + $0x800] sm:$0xff] }
  0x6d   :  { %v381_v17 = vld [vmem:[#allocation2 + $0xa10] sm:$0xff]  ;;  %1402 = vmatpush.msra.mxu3 %v417_v14  ;;  %1344 = vmatpush.msra.mxu0 %v317_v15  ;;  %v379_v21 = vld [vmem:[#allocation2 + $0xa00] sm:$0xff] }
  0x6e   :  { %v349_v20 = vld [vmem:[#allocation2 + $0x910] sm:$0xff]  ;;  %1363 = vmatpush.msra.mxu1 %v351_v16  ;;  %1384 = vmatpush.msra.mxu2 %v381_v17  ;;  %v347_v25 = vld [vmem:[#allocation2 + $0x900] sm:$0xff] }
  0x6f   :  { %v413_v22 = vld [vmem:[#allocation2 + $0xb10] sm:$0xff]  ;;  %1403 = vmatpush.msra.mxu3 %v415_v18  ;;  %1345 = vmatpush.msra.mxu0 %v315_v19  ;;  %v411_v29 = vld [vmem:[#allocation2 + $0xb00] sm:$0xff] }
  0x70   :  { %1364 = vmatpush.msra.mxu1 %v349_v20  ;;  %v473_v23 = vld [vmem:[#allocation2 + $0xcf0] sm:$0xff]  ;;  %1385 = vmatpush.msra.mxu2 %v379_v21  ;;  %v471_v30 = vld [vmem:[#allocation2 + $0xce0] sm:$0xff] }
  0x71   :  { %v537_v24 = vld [vmem:[#allocation2 + $0xef0] sm:$0xff]  ;;  %1404 = vmatpush.msra.mxu3 %v413_v22  ;;  %1346 = vmatmul.f32.vlgmr.msra.gmra.mxu0 %v2741_v26  ;;  %v535_v33 = vld [vmem:[#allocation2 + $0xee0] sm:$0xff] }
  0x72   :  { %1386 = vmatmul.f32.vlgmr.msra.gmra.mxu2 %v2743_v27  ;;  %1410 = vmatpush.msrb.mxu0 %v473_v23  ;;  %v505_v32 = vld [vmem:[#allocation2 + $0xdf0] sm:$0xff]  ;;  %v503_v36 = vld [vmem:[#allocation2 + $0xde0] sm:$0xff] }
  0x73   :  { %1450 = vmatpush.msrb.mxu2 %v537_v24  ;;  %v569_v34 = vld [vmem:[#allocation2 + $0xff0] sm:$0xff]  ;;  %1365 = vmatpush.msra.mxu1 %v347_v25  ;;  %v567_v38 = vld [vmem:[#allocation2 + $0xfe0] sm:$0xff] }
  0x74   :  { %1405 = vmatpush.msra.mxu3 %v411_v29  ;;  %v469_v35 = vld [vmem:[#allocation2 + $0xcd0] sm:$0xff]  ;;  %1366 = vmatmul.f32.vlgmr.msra.gmra.mxu1 %v2745_v28  ;;  %v467_v39 = vld [vmem:[#allocation2 + $0xcc0] sm:$0xff] }
  0x75   :  { %v533_v37 = vld [vmem:[#allocation2 + $0xed0] sm:$0xff]  ;;  %1406 = vmatmul.f32.vlgmr.msra.gmra.mxu3 %v2750_v31  ;;  %1411 = vmatpush.msrb.mxu0 %v471_v30  ;;  %v2764_v42 = vld.sshfl [vmem:[#allocation1 + $0x28] sm:$0xff pattern:$0x73625140] }
  0x76   :  { %1430 = vmatpush.msrb.mxu1 %v505_v32  ;;  %1451 = vmatpush.msrb.mxu2 %v535_v33  ;;  %v501_v43 = vld [vmem:[#allocation2 + $0xdd0] sm:$0xff]  ;;  %v56_v44 = vld [vmem:[%s2931_s0 + $0x28] sm:$0xff] }
  0x77   :  { %1470 = vmatpush.msrb.mxu3 %v569_v34  ;;  %v2769_v45 = vld.sshfl [vmem:[#allocation1 + $0x38] sm:$0xff pattern:$0x73625140]  ;;  %1412 = vmatpush.msrb.mxu0 %v469_v35  ;;  %v531_v46 = vld [vmem:[#allocation2 + $0xec0] sm:$0xff] }
  0x78   :  { %1431 = vmatpush.msrb.mxu1 %v503_v36  ;;  %v565_v47 = vld [vmem:[#allocation2 + $0xfd0] sm:$0xff]  ;;  %1119 = vst [vmem:[#allocation1 + $0x20] ss:$4 sm:$0xff] %v56_v44  ;;  %1452 = vmatpush.msrb.mxu2 %v533_v37  ;;  %v499_v53 = vld [vmem:[#allocation2 + $0xdc0] sm:$0xff] }
  0x79   :  { %1471 = vmatpush.msrb.mxu3 %v567_v38  ;;  %v465_v52 = vld [vmem:[#allocation2 + $0xcb0] sm:$0xff]  ;;  %1413 = vmatpush.msrb.mxu0 %v467_v39  ;;  %v563_v55 = vld [vmem:[#allocation2 + $0xfc0] sm:$0xff] }
  0x7a   :  { %1432 = vmatpush.msrb.mxu1 %v501_v43  ;;  %v529_v54 = vld [vmem:[#allocation2 + $0xeb0] sm:$0xff]  ;;  %1453 = vmatpush.msrb.mxu2 %v531_v46  ;;  %v463_v56 = vld [vmem:[#allocation2 + $0xca0] sm:$0xff] }
  0x7b   :  { %1472 = vmatpush.msrb.mxu3 %v565_v47  ;;  %v497_v57 = vld [vmem:[#allocation2 + $0xdb0] sm:$0xff]  ;;  %1414 = vmatpush.msrb.mxu0 %v465_v52  ;;  %v527_v58 = vld [vmem:[#allocation2 + $0xea0] sm:$0xff] }
  0x7c   :  { %1433 = vmatpush.msrb.mxu1 %v499_v53  ;;  %v561_v59 = vld [vmem:[#allocation2 + $0xfb0] sm:$0xff]  ;;  %1454 = vmatpush.msrb.mxu2 %v529_v54  ;;  %v495_v61 = vld [vmem:[#allocation2 + $0xda0] sm:$0xff] }
  0x7d   :  { %1473 = vmatpush.msrb.mxu3 %v563_v55  ;;  %v461_v60 = vld [vmem:[#allocation2 + $0xc90] sm:$0xff]  ;;  %1415 = vmatpush.msrb.mxu0 %v463_v56  ;;  %v559_v63 = vld [vmem:[#allocation2 + $0xfa0] sm:$0xff] }
  0x7e   :  { %1434 = vmatpush.msrb.mxu1 %v497_v57  ;;  %v525_v62 = vld [vmem:[#allocation2 + $0xe90] sm:$0xff]  ;;  %1455 = vmatpush.msrb.mxu2 %v527_v58  ;;  %v459_v4 = vld [vmem:[#allocation2 + $0xc80] sm:$0xff] }
  0x7f   :  { %1474 = vmatpush.msrb.mxu3 %v561_v59  ;;  %v493_v5 = vld [vmem:[#allocation2 + $0xd90] sm:$0xff]  ;;  %1416 = vmatpush.msrb.mxu0 %v461_v60  ;;  %v523_v6 = vld [vmem:[#allocation2 + $0xe80] sm:$0xff] }
  0x80   :  { %1435 = vmatpush.msrb.mxu1 %v495_v61  ;;  %v557_v7 = vld [vmem:[#allocation2 + $0xf90] sm:$0xff]  ;;  %1456 = vmatpush.msrb.mxu2 %v525_v62  ;;  %v491_v9 = vld [vmem:[#allocation2 + $0xd80] sm:$0xff] }
  0x81   :  { %1475 = vmatpush.msrb.mxu3 %v559_v63  ;;  %v457_v8 = vld [vmem:[#allocation2 + $0xc70] sm:$0xff]  ;;  %1417 = vmatpush.msrb.mxu0 %v459_v4  ;;  %v555_v11 = vld [vmem:[#allocation2 + $0xf80] sm:$0xff] }
  0x82   :  { %1436 = vmatpush.msrb.mxu1 %v493_v5  ;;  %v521_v10 = vld [vmem:[#allocation2 + $0xe70] sm:$0xff]  ;;  %1457 = vmatpush.msrb.mxu2 %v523_v6  ;;  %v455_v12 = vld [vmem:[#allocation2 + $0xc60] sm:$0xff] }
  0x83   :  { %1476 = vmatpush.msrb.mxu3 %v557_v7  ;;  %v489_v13 = vld [vmem:[#allocation2 + $0xd70] sm:$0xff]  ;;  %1418 = vmatpush.msrb.mxu0 %v457_v8  ;;  %v519_v14 = vld [vmem:[#allocation2 + $0xe60] sm:$0xff] }
  0x84   :  { %1437 = vmatpush.msrb.mxu1 %v491_v9  ;;  %v553_v15 = vld [vmem:[#allocation2 + $0xf70] sm:$0xff]  ;;  %1458 = vmatpush.msrb.mxu2 %v521_v10  ;;  %v487_v17 = vld [vmem:[#allocation2 + $0xd60] sm:$0xff] }
  0x85   :  { %1477 = vmatpush.msrb.mxu3 %v555_v11  ;;  %v453_v16 = vld [vmem:[#allocation2 + $0xc50] sm:$0xff]  ;;  %1419 = vmatpush.msrb.mxu0 %v455_v12  ;;  %v551_v19 = vld [vmem:[#allocation2 + $0xf60] sm:$0xff] }
  0x86   :  { %1438 = vmatpush.msrb.mxu1 %v489_v13  ;;  %v517_v18 = vld [vmem:[#allocation2 + $0xe50] sm:$0xff]  ;;  %1459 = vmatpush.msrb.mxu2 %v519_v14  ;;  %v451_v20 = vld [vmem:[#allocation2 + $0xc40] sm:$0xff] }
  0x87   :  { %1478 = vmatpush.msrb.mxu3 %v553_v15  ;;  %v485_v21 = vld [vmem:[#allocation2 + $0xd50] sm:$0xff]  ;;  %1420 = vmatpush.msrb.mxu0 %v453_v16  ;;  %v515_v22 = vld [vmem:[#allocation2 + $0xe40] sm:$0xff] }
  0x88   :  { %1439 = vmatpush.msrb.mxu1 %v487_v17  ;;  %v549_v23 = vld [vmem:[#allocation2 + $0xf50] sm:$0xff]  ;;  %1460 = vmatpush.msrb.mxu2 %v517_v18  ;;  %v483_v25 = vld [vmem:[#allocation2 + $0xd40] sm:$0xff] }
  0x89   :  { %1479 = vmatpush.msrb.mxu3 %v551_v19  ;;  %v449_v24 = vld [vmem:[#allocation2 + $0xc30] sm:$0xff]  ;;  %1421 = vmatpush.msrb.mxu0 %v451_v20  ;;  %v547_v30 = vld [vmem:[#allocation2 + $0xf40] sm:$0xff] }
  0x8a   :  { %1440 = vmatpush.msrb.mxu1 %v485_v21  ;;  %v513_v29 = vld [vmem:[#allocation2 + $0xe30] sm:$0xff]  ;;  %1461 = vmatpush.msrb.mxu2 %v515_v22  ;;  %v447_v32 = vld [vmem:[#allocation2 + $0xc20] sm:$0xff] }
  0x8b   :  { %1480 = vmatpush.msrb.mxu3 %v549_v23  ;;  %v481_v33 = vld [vmem:[#allocation2 + $0xd30] sm:$0xff]  ;;  %1422 = vmatpush.msrb.mxu0 %v449_v24  ;;  %v511_v34 = vld [vmem:[#allocation2 + $0xe20] sm:$0xff] }
  0x8c   :  { %1441 = vmatpush.msrb.mxu1 %v483_v25  ;;  %v545_v35 = vld [vmem:[#allocation2 + $0xf30] sm:$0xff]  ;;  %1462 = vmatpush.msrb.mxu2 %v513_v29  ;;  %v479_v37 = vld [vmem:[#allocation2 + $0xd20] sm:$0xff] }
  0x8d   :  { %1481 = vmatpush.msrb.mxu3 %v547_v30  ;;  %v445_v36 = vld [vmem:[#allocation2 + $0xc10] sm:$0xff]  ;;  %1423 = vmatpush.msrb.mxu0 %v447_v32  ;;  %v543_v39 = vld [vmem:[#allocation2 + $0xf20] sm:$0xff] }
  0x8e   :  { %1442 = vmatpush.msrb.mxu1 %v481_v33  ;;  %v509_v38 = vld [vmem:[#allocation2 + $0xe10] sm:$0xff]  ;;  %1463 = vmatpush.msrb.mxu2 %v511_v34  ;;  %v443_v43 = vld [vmem:[#allocation2 + $0xc00] sm:$0xff] }
  0x8f   :  { %1482 = vmatpush.msrb.mxu3 %v545_v35  ;;  %v477_v44 = vld [vmem:[#allocation2 + $0xd10] sm:$0xff]  ;;  %1424 = vmatpush.msrb.mxu0 %v445_v36  ;;  %v507_v46 = vld [vmem:[#allocation2 + $0xe00] sm:$0xff] }
  0x90   :  { %1443 = vmatpush.msrb.mxu1 %v479_v37  ;;  %v541_v47 = vld [vmem:[#allocation2 + $0xf10] sm:$0xff]  ;;  %1464 = vmatpush.msrb.mxu2 %v509_v38  ;;  %v475_v54 = vld [vmem:[#allocation2 + $0xd00] sm:$0xff] }
  0x91   :  { %1483 = vmatpush.msrb.mxu3 %v543_v39  ;;  %1425 = vmatpush.msrb.mxu0 %v443_v43  ;;  %v601_v52 = vld [vmem:[#allocation2 + $0x10f0] sm:$0xff]  ;;  %v539_v55 = vld [vmem:[#allocation2 + $0xf00] sm:$0xff] }
  0x92   :  { %1444 = vmatpush.msrb.mxu1 %v477_v44  ;;  %v665_v53 = vld [vmem:[#allocation2 + $0x12f0] sm:$0xff]  ;;  %1465 = vmatpush.msrb.mxu2 %v507_v46  ;;  %v599_v56 = vld [vmem:[#allocation2 + $0x10e0] sm:$0xff] }
  0x93   :  { %1484 = vmatpush.msrb.mxu3 %v541_v47  ;;  %1426 = vmatmul.f32.vlgmr.msrb.gmra.mxu0 %v2760_v40  ;;  %v633_v57 = vld [vmem:[#allocation2 + $0x11f0] sm:$0xff]  ;;  %v663_v58 = vld [vmem:[#allocation2 + $0x12e0] sm:$0xff] }
  0x94   :  { %1466 = vmatmul.f32.vlgmr.msrb.gmra.mxu2 %v2762_v41  ;;  %1490 = vmatpush.msra.mxu0 %v601_v52  ;;  %v697_v59 = vld [vmem:[#allocation2 + $0x13f0] sm:$0xff]  ;;  %v631_v61 = vld [vmem:[#allocation2 + $0x11e0] sm:$0xff] }
  0x95   :  { %1530 = vmatpush.msra.mxu2 %v665_v53  ;;  %1445 = vmatpush.msrb.mxu1 %v475_v54  ;;  %v597_v60 = vld [vmem:[#allocation2 + $0x10d0] sm:$0xff]  ;;  %v695_v63 = vld [vmem:[#allocation2 + $0x13e0] sm:$0xff] }
  0x96   :  { %1485 = vmatpush.msrb.mxu3 %v539_v55  ;;  %1446 = vmatmul.f32.vlgmr.msrb.gmra.mxu1 %v2764_v42  ;;  %v661_v62 = vld [vmem:[#allocation2 + $0x12d0] sm:$0xff]  ;;  %v595_v4 = vld [vmem:[#allocation2 + $0x10c0] sm:$0xff] }
  0x97   :  { %1486 = vmatmul.f32.vlgmr.msrb.gmra.mxu3 %v2769_v45  ;;  %1491 = vmatpush.msra.mxu0 %v599_v56  ;;  %v629_v5 = vld [vmem:[#allocation2 + $0x11d0] sm:$0xff]  ;;  %v659_v6 = vld [vmem:[#allocation2 + $0x12c0] sm:$0xff] }
  0x98   :  { %1510 = vmatpush.msra.mxu1 %v633_v57  ;;  %1531 = vmatpush.msra.mxu2 %v663_v58  ;;  %v693_v7 = vld [vmem:[#allocation2 + $0x13d0] sm:$0xff]  ;;  %v627_v9 = vld [vmem:[#allocation2 + $0x11c0] sm:$0xff] }
  0x99   :  { %1550 = vmatpush.msra.mxu3 %v697_v59  ;;  %1492 = vmatpush.msra.mxu0 %v597_v60  ;;  %v593_v8 = vld [vmem:[#allocation2 + $0x10b0] sm:$0xff]  ;;  %v691_v11 = vld [vmem:[#allocation2 + $0x13c0] sm:$0xff] }
  0x9a   :  { %1511 = vmatpush.msra.mxu1 %v631_v61  ;;  %1532 = vmatpush.msra.mxu2 %v661_v62  ;;  %v657_v10 = vld [vmem:[#allocation2 + $0x12b0] sm:$0xff]  ;;  %v591_v12 = vld [vmem:[#allocation2 + $0x10a0] sm:$0xff] }
  0x9b   :  { %1551 = vmatpush.msra.mxu3 %v695_v63  ;;  %1493 = vmatpush.msra.mxu0 %v595_v4  ;;  %v625_v13 = vld [vmem:[#allocation2 + $0x11b0] sm:$0xff]  ;;  %v655_v14 = vld [vmem:[#allocation2 + $0x12a0] sm:$0xff] }
  0x9c   :  { %1512 = vmatpush.msra.mxu1 %v629_v5  ;;  %1533 = vmatpush.msra.mxu2 %v659_v6  ;;  %v689_v15 = vld [vmem:[#allocation2 + $0x13b0] sm:$0xff]  ;;  %v623_v17 = vld [vmem:[#allocation2 + $0x11a0] sm:$0xff] }
  0x9d   :  { %1552 = vmatpush.msra.mxu3 %v693_v7  ;;  %1494 = vmatpush.msra.mxu0 %v593_v8  ;;  %v589_v16 = vld [vmem:[#allocation2 + $0x1090] sm:$0xff]  ;;  %v687_v19 = vld [vmem:[#allocation2 + $0x13a0] sm:$0xff]  ;;  %v2775_v8 = vld.sshfl [vmem:[#allocation1] sm:$0xff pattern:$0x73625140] }
  0x9e   :  { %1513 = vmatpush.msra.mxu1 %v627_v9  ;;  %1534 = vmatpush.msra.mxu2 %v657_v10  ;;  %v653_v18 = vld [vmem:[#allocation2 + $0x1290] sm:$0xff]  ;;  %v587_v20 = vld [vmem:[#allocation2 + $0x1080] sm:$0xff]  ;;  %v2777_v9 = vld.sshfl [vmem:[#allocation1 + $0x10] sm:$0xff pattern:$0x73625140] }
  0x9f   :  { %1553 = vmatpush.msra.mxu3 %v691_v11  ;;  %1495 = vmatpush.msra.mxu0 %v591_v12  ;;  %v621_v21 = vld [vmem:[#allocation2 + $0x1190] sm:$0xff]  ;;  %v651_v22 = vld [vmem:[#allocation2 + $0x1280] sm:$0xff] }
  0xa0   :  { %1514 = vmatpush.msra.mxu1 %v625_v13  ;;  %1535 = vmatpush.msra.mxu2 %v655_v14  ;;  %v685_v23 = vld [vmem:[#allocation2 + $0x1390] sm:$0xff]  ;;  %v619_v25 = vld [vmem:[#allocation2 + $0x1180] sm:$0xff] }
  0xa1   :  { %1554 = vmatpush.msra.mxu3 %v689_v15  ;;  %1496 = vmatpush.msra.mxu0 %v589_v16  ;;  %v585_v24 = vld [vmem:[#allocation2 + $0x1070] sm:$0xff]  ;;  %v683_v30 = vld [vmem:[#allocation2 + $0x1380] sm:$0xff] }
  0xa2   :  { %1515 = vmatpush.msra.mxu1 %v623_v17  ;;  %1536 = vmatpush.msra.mxu2 %v653_v18  ;;  %v649_v29 = vld [vmem:[#allocation2 + $0x1270] sm:$0xff]  ;;  %v583_v32 = vld [vmem:[#allocation2 + $0x1060] sm:$0xff] }
  0xa3   :  { %1555 = vmatpush.msra.mxu3 %v687_v19  ;;  %1497 = vmatpush.msra.mxu0 %v587_v20  ;;  %v617_v33 = vld [vmem:[#allocation2 + $0x1170] sm:$0xff]  ;;  %v647_v34 = vld [vmem:[#allocation2 + $0x1260] sm:$0xff] }
  0xa4   :  { %1516 = vmatpush.msra.mxu1 %v621_v21  ;;  %1537 = vmatpush.msra.mxu2 %v651_v22  ;;  %v681_v35 = vld [vmem:[#allocation2 + $0x1370] sm:$0xff]  ;;  %v615_v37 = vld [vmem:[#allocation2 + $0x1160] sm:$0xff] }
  0xa5   :  { %1556 = vmatpush.msra.mxu3 %v685_v23  ;;  %1498 = vmatpush.msra.mxu0 %v585_v24  ;;  %v581_v36 = vld [vmem:[#allocation2 + $0x1050] sm:$0xff]  ;;  %v679_v39 = vld [vmem:[#allocation2 + $0x1360] sm:$0xff] }
  0xa6   :  { %1517 = vmatpush.msra.mxu1 %v619_v25  ;;  %1538 = vmatpush.msra.mxu2 %v649_v29  ;;  %v645_v38 = vld [vmem:[#allocation2 + $0x1250] sm:$0xff]  ;;  %v579_v43 = vld [vmem:[#allocation2 + $0x1040] sm:$0xff] }
  0xa7   :  { %1557 = vmatpush.msra.mxu3 %v683_v30  ;;  %1499 = vmatpush.msra.mxu0 %v583_v32  ;;  %v613_v44 = vld [vmem:[#allocation2 + $0x1150] sm:$0xff]  ;;  %v643_v46 = vld [vmem:[#allocation2 + $0x1240] sm:$0xff] }
  0xa8   :  { %1518 = vmatpush.msra.mxu1 %v617_v33  ;;  %1539 = vmatpush.msra.mxu2 %v647_v34  ;;  %v677_v47 = vld [vmem:[#allocation2 + $0x1350] sm:$0xff]  ;;  %v611_v53 = vld [vmem:[#allocation2 + $0x1140] sm:$0xff] }
  0xa9   :  { %1558 = vmatpush.msra.mxu3 %v681_v35  ;;  %1500 = vmatpush.msra.mxu0 %v581_v36  ;;  %v577_v52 = vld [vmem:[#allocation2 + $0x1030] sm:$0xff]  ;;  %v675_v55 = vld [vmem:[#allocation2 + $0x1340] sm:$0xff] }
  0xaa   :  { %1519 = vmatpush.msra.mxu1 %v615_v37  ;;  %1540 = vmatpush.msra.mxu2 %v645_v38  ;;  %v641_v54 = vld [vmem:[#allocation2 + $0x1230] sm:$0xff]  ;;  %v575_v56 = vld [vmem:[#allocation2 + $0x1020] sm:$0xff] }
  0xab   :  { %1559 = vmatpush.msra.mxu3 %v679_v39  ;;  %1501 = vmatpush.msra.mxu0 %v579_v43  ;;  %v609_v57 = vld [vmem:[#allocation2 + $0x1130] sm:$0xff]  ;;  %v639_v58 = vld [vmem:[#allocation2 + $0x1220] sm:$0xff] }
  0xac   :  { %1520 = vmatpush.msra.mxu1 %v613_v44  ;;  %1541 = vmatpush.msra.mxu2 %v643_v46  ;;  %v673_v59 = vld [vmem:[#allocation2 + $0x1330] sm:$0xff]  ;;  %v607_v61 = vld [vmem:[#allocation2 + $0x1120] sm:$0xff] }
  0xad   :  { %1560 = vmatpush.msra.mxu3 %v677_v47  ;;  %1502 = vmatpush.msra.mxu0 %v577_v52  ;;  %v573_v60 = vld [vmem:[#allocation2 + $0x1010] sm:$0xff]  ;;  %v671_v63 = vld [vmem:[#allocation2 + $0x1320] sm:$0xff] }
  0xae   :  { %1521 = vmatpush.msra.mxu1 %v611_v53  ;;  %1542 = vmatpush.msra.mxu2 %v641_v54  ;;  %v637_v62 = vld [vmem:[#allocation2 + $0x1210] sm:$0xff]  ;;  %v571_v4 = vld [vmem:[#allocation2 + $0x1000] sm:$0xff] }
  0xaf   :  { %1561 = vmatpush.msra.mxu3 %v675_v55  ;;  %1503 = vmatpush.msra.mxu0 %v575_v56  ;;  %v605_v5 = vld [vmem:[#allocation2 + $0x1110] sm:$0xff]  ;;  %v635_v6 = vld [vmem:[#allocation2 + $0x1200] sm:$0xff] }
  0xb0   :  { %1522 = vmatpush.msra.mxu1 %v609_v57  ;;  %1543 = vmatpush.msra.mxu2 %v639_v58  ;;  %v669_v7 = vld [vmem:[#allocation2 + $0x1310] sm:$0xff]  ;;  %v603_v12 = vld [vmem:[#allocation2 + $0x1100] sm:$0xff] }
  0xb1   :  { %1562 = vmatpush.msra.mxu3 %v673_v59  ;;  %1504 = vmatpush.msra.mxu0 %v573_v60  ;;  %v729_v10 = vld [vmem:[#allocation2 + $0x14f0] sm:$0xff]  ;;  %v667_v13 = vld [vmem:[#allocation2 + $0x1300] sm:$0xff] }
  0xb2   :  { %1523 = vmatpush.msra.mxu1 %v607_v61  ;;  %1544 = vmatpush.msra.mxu2 %v637_v62  ;;  %v793_v11 = vld [vmem:[#allocation2 + $0x16f0] sm:$0xff]  ;;  %v2781_v14 = vld.sshfl [vmem:[#allocation1 + $0x8] sm:$0xff pattern:$0x73625140] }
  0xb3   :  { %1563 = vmatpush.msra.mxu3 %v671_v63  ;;  %1505 = vmatpush.msra.mxu0 %v571_v4  ;;  %v2783_v15 = vld.sshfl [vmem:[#allocation1 + $0x18] sm:$0xff pattern:$0x73625140]  ;;  %v727_v16 = vld [vmem:[#allocation2 + $0x14e0] sm:$0xff] }
  0xb4   :  { %1524 = vmatpush.msra.mxu1 %v605_v5  ;;  %1545 = vmatpush.msra.mxu2 %v635_v6  ;;  %v761_v17 = vld [vmem:[#allocation2 + $0x15f0] sm:$0xff]  ;;  %v791_v18 = vld [vmem:[#allocation2 + $0x16e0] sm:$0xff] }
  0xb5   :  { %1564 = vmatpush.msra.mxu3 %v669_v7  ;;  %1506 = vmatmul.f32.vlgmr.msra.gmra.mxu0 %v2775_v8  ;;  %v825_v19 = vld [vmem:[#allocation2 + $0x17f0] sm:$0xff]  ;;  %v759_v21 = vld [vmem:[#allocation2 + $0x15e0] sm:$0xff] }
  0xb6   :  { %1546 = vmatmul.f32.vlgmr.msra.gmra.mxu2 %v2777_v9  ;;  %1570 = vmatpush.msrb.mxu0 %v729_v10  ;;  %v725_v20 = vld [vmem:[#allocation2 + $0x14d0] sm:$0xff]  ;;  %v823_v23 = vld [vmem:[#allocation2 + $0x17e0] sm:$0xff] }
  0xb7   :  { %1610 = vmatpush.msrb.mxu2 %v793_v11  ;;  %1525 = vmatpush.msra.mxu1 %v603_v12  ;;  %v789_v22 = vld [vmem:[#allocation2 + $0x16d0] sm:$0xff]  ;;  %v723_v24 = vld [vmem:[#allocation2 + $0x14c0] sm:$0xff] }
  0xb8   :  { %1565 = vmatpush.msra.mxu3 %v667_v13  ;;  %1526 = vmatmul.f32.vlgmr.msra.gmra.mxu1 %v2781_v14  ;;  %v757_v25 = vld [vmem:[#allocation2 + $0x15d0] sm:$0xff]  ;;  %v787_v29 = vld [vmem:[#allocation2 + $0x16c0] sm:$0xff] }
  0xb9   :  { %1566 = vmatmul.f32.vlgmr.msra.gmra.mxu3 %v2783_v15  ;;  %1571 = vmatpush.msrb.mxu0 %v727_v16  ;;  %v821_v30 = vld [vmem:[#allocation2 + $0x17d0] sm:$0xff]  ;;  %v755_v33 = vld [vmem:[#allocation2 + $0x15c0] sm:$0xff] }
  0xba   :  { %1590 = vmatpush.msrb.mxu1 %v761_v17  ;;  %1611 = vmatpush.msrb.mxu2 %v791_v18  ;;  %v721_v32 = vld [vmem:[#allocation2 + $0x14b0] sm:$0xff]  ;;  %v819_v35 = vld [vmem:[#allocation2 + $0x17c0] sm:$0xff] }
  0xbb   :  { %1630 = vmatpush.msrb.mxu3 %v825_v19  ;;  %1572 = vmatpush.msrb.mxu0 %v725_v20  ;;  %v785_v34 = vld [vmem:[#allocation2 + $0x16b0] sm:$0xff]  ;;  %v719_v36 = vld [vmem:[#allocation2 + $0x14a0] sm:$0xff] }
  0xbc   :  { %1591 = vmatpush.msrb.mxu1 %v759_v21  ;;  %1612 = vmatpush.msrb.mxu2 %v789_v22  ;;  %v753_v37 = vld [vmem:[#allocation2 + $0x15b0] sm:$0xff]  ;;  %v783_v38 = vld [vmem:[#allocation2 + $0x16a0] sm:$0xff] }
  0xbd   :  { %1631 = vmatpush.msrb.mxu3 %v823_v23  ;;  %1573 = vmatpush.msrb.mxu0 %v723_v24  ;;  %v817_v39 = vld [vmem:[#allocation2 + $0x17b0] sm:$0xff]  ;;  %v751_v44 = vld [vmem:[#allocation2 + $0x15a0] sm:$0xff] }
  0xbe   :  { %1592 = vmatpush.msrb.mxu1 %v757_v25  ;;  %1613 = vmatpush.msrb.mxu2 %v787_v29  ;;  %v717_v43 = vld [vmem:[#allocation2 + $0x1490] sm:$0xff]  ;;  %v815_v47 = vld [vmem:[#allocation2 + $0x17a0] sm:$0xff]  ;;  %v57_v29 = vld [vmem:[%s2931_s0 + $0x30] sm:$0xff] }
  0xbf   :  { %1632 = vmatpush.msrb.mxu3 %v821_v30  ;;  %1574 = vmatpush.msrb.mxu0 %v721_v32  ;;  %v781_v46 = vld [vmem:[#allocation2 + $0x1690] sm:$0xff]  ;;  %v715_v52 = vld [vmem:[#allocation2 + $0x1480] sm:$0xff]  ;;  %1128 = vst [vmem:[#allocation1] ss:$4 sm:$0xff] %v57_v29 }
  0xc0   :  { %1593 = vmatpush.msrb.mxu1 %v755_v33  ;;  %1614 = vmatpush.msrb.mxu2 %v785_v34  ;;  %v749_v53 = vld [vmem:[#allocation2 + $0x1590] sm:$0xff]  ;;  %v779_v54 = vld [vmem:[#allocation2 + $0x1680] sm:$0xff] }
  0xc1   :  { %1633 = vmatpush.msrb.mxu3 %v819_v35  ;;  %1575 = vmatpush.msrb.mxu0 %v719_v36  ;;  %v813_v55 = vld [vmem:[#allocation2 + $0x1790] sm:$0xff]  ;;  %v747_v57 = vld [vmem:[#allocation2 + $0x1580] sm:$0xff] }
  0xc2   :  { %1594 = vmatpush.msrb.mxu1 %v753_v37  ;;  %1615 = vmatpush.msrb.mxu2 %v783_v38  ;;  %v713_v56 = vld [vmem:[#allocation2 + $0x1470] sm:$0xff]  ;;  %v811_v59 = vld [vmem:[#allocation2 + $0x1780] sm:$0xff]  ;;  %v2790_v37 = vld.sshfl [vmem:[#allocation1 + $0x20] sm:$0xff pattern:$0x73625140] }
  0xc3   :  { %1634 = vmatpush.msrb.mxu3 %v817_v39  ;;  %1576 = vmatpush.msrb.mxu0 %v717_v43  ;;  %v777_v58 = vld [vmem:[#allocation2 + $0x1670] sm:$0xff]  ;;  %v711_v60 = vld [vmem:[#allocation2 + $0x1460] sm:$0xff]  ;;  %v2792_v38 = vld.sshfl [vmem:[#allocation1 + $0x30] sm:$0xff pattern:$0x73625140] }
  0xc4   :  { %1595 = vmatpush.msrb.mxu1 %v751_v44  ;;  %1616 = vmatpush.msrb.mxu2 %v781_v46  ;;  %v745_v61 = vld [vmem:[#allocation2 + $0x1570] sm:$0xff]  ;;  %v775_v62 = vld [vmem:[#allocation2 + $0x1660] sm:$0xff] }
  0xc5   :  { %1635 = vmatpush.msrb.mxu3 %v815_v47  ;;  %1577 = vmatpush.msrb.mxu0 %v715_v52  ;;  %v809_v63 = vld [vmem:[#allocation2 + $0x1770] sm:$0xff]  ;;  %v743_v5 = vld [vmem:[#allocation2 + $0x1560] sm:$0xff] }
  0xc6   :  { %1596 = vmatpush.msrb.mxu1 %v749_v53  ;;  %1617 = vmatpush.msrb.mxu2 %v779_v54  ;;  %v709_v4 = vld [vmem:[#allocation2 + $0x1450] sm:$0xff]  ;;  %v807_v7 = vld [vmem:[#allocation2 + $0x1760] sm:$0xff] }
  0xc7   :  { %1636 = vmatpush.msrb.mxu3 %v813_v55  ;;  %1578 = vmatpush.msrb.mxu0 %v713_v56  ;;  %v773_v6 = vld [vmem:[#allocation2 + $0x1650] sm:$0xff]  ;;  %v707_v10 = vld [vmem:[#allocation2 + $0x1440] sm:$0xff] }
  0xc8   :  { %1597 = vmatpush.msrb.mxu1 %v747_v57  ;;  %1618 = vmatpush.msrb.mxu2 %v777_v58  ;;  %v741_v11 = vld [vmem:[#allocation2 + $0x1550] sm:$0xff]  ;;  %v771_v12 = vld [vmem:[#allocation2 + $0x1640] sm:$0xff] }
  0xc9   :  { %1637 = vmatpush.msrb.mxu3 %v811_v59  ;;  %1579 = vmatpush.msrb.mxu0 %v711_v60  ;;  %v805_v13 = vld [vmem:[#allocation2 + $0x1750] sm:$0xff]  ;;  %v739_v17 = vld [vmem:[#allocation2 + $0x1540] sm:$0xff] }
  0xca   :  { %1598 = vmatpush.msrb.mxu1 %v745_v61  ;;  %1619 = vmatpush.msrb.mxu2 %v775_v62  ;;  %v705_v16 = vld [vmem:[#allocation2 + $0x1430] sm:$0xff]  ;;  %v803_v19 = vld [vmem:[#allocation2 + $0x1740] sm:$0xff] }
  0xcb   :  { %1638 = vmatpush.msrb.mxu3 %v809_v63  ;;  %1580 = vmatpush.msrb.mxu0 %v709_v4  ;;  %v769_v18 = vld [vmem:[#allocation2 + $0x1630] sm:$0xff]  ;;  %v703_v20 = vld [vmem:[#allocation2 + $0x1420] sm:$0xff] }
  0xcc   :  { %1599 = vmatpush.msrb.mxu1 %v743_v5  ;;  %1620 = vmatpush.msrb.mxu2 %v773_v6  ;;  %v737_v21 = vld [vmem:[#allocation2 + $0x1530] sm:$0xff]  ;;  %v767_v22 = vld [vmem:[#allocation2 + $0x1620] sm:$0xff] }
  0xcd   :  { %1639 = vmatpush.msrb.mxu3 %v807_v7  ;;  %1581 = vmatpush.msrb.mxu0 %v707_v10  ;;  %v801_v23 = vld [vmem:[#allocation2 + $0x1730] sm:$0xff]  ;;  %v735_v25 = vld [vmem:[#allocation2 + $0x1520] sm:$0xff] }
  0xce   :  { %1600 = vmatpush.msrb.mxu1 %v741_v11  ;;  %1621 = vmatpush.msrb.mxu2 %v771_v12  ;;  %v701_v24 = vld [vmem:[#allocation2 + $0x1410] sm:$0xff]  ;;  %v799_v32 = vld [vmem:[#allocation2 + $0x1720] sm:$0xff] }
  0xcf   :  { %1640 = vmatpush.msrb.mxu3 %v805_v13  ;;  %1582 = vmatpush.msrb.mxu0 %v705_v16  ;;  %v765_v30 = vld [vmem:[#allocation2 + $0x1610] sm:$0xff]  ;;  %v699_v33 = vld [vmem:[#allocation2 + $0x1400] sm:$0xff] }
  0xd0   :  { %1601 = vmatpush.msrb.mxu1 %v739_v17  ;;  %1622 = vmatpush.msrb.mxu2 %v769_v18  ;;  %v733_v34 = vld [vmem:[#allocation2 + $0x1510] sm:$0xff]  ;;  %v763_v35 = vld [vmem:[#allocation2 + $0x1600] sm:$0xff] }
  0xd1   :  { %1641 = vmatpush.msrb.mxu3 %v803_v19  ;;  %1583 = vmatpush.msrb.mxu0 %v703_v20  ;;  %v797_v36 = vld [vmem:[#allocation2 + $0x1710] sm:$0xff]  ;;  %v731_v44 = vld [vmem:[#allocation2 + $0x1500] sm:$0xff] }
  0xd2   :  { %1602 = vmatpush.msrb.mxu1 %v737_v21  ;;  %1623 = vmatpush.msrb.mxu2 %v767_v22  ;;  %v857_v39 = vld [vmem:[#allocation2 + $0x18f0] sm:$0xff]  ;;  %v795_v46 = vld [vmem:[#allocation2 + $0x1700] sm:$0xff] }
  0xd3   :  { %1642 = vmatpush.msrb.mxu3 %v801_v23  ;;  %1584 = vmatpush.msrb.mxu0 %v701_v24  ;;  %v921_v43 = vld [vmem:[#allocation2 + $0x1af0] sm:$0xff]  ;;  %v2796_v47 = vld.sshfl [vmem:[#allocation1 + $0x28] sm:$0xff pattern:$0x73625140] }
  0xd4   :  { %1603 = vmatpush.msrb.mxu1 %v735_v25  ;;  %1624 = vmatpush.msrb.mxu2 %v765_v30  ;;  %v2798_v52 = vld.sshfl [vmem:[#allocation1 + $0x38] sm:$0xff pattern:$0x73625140]  ;;  %v855_v53 = vld [vmem:[#allocation2 + $0x18e0] sm:$0xff] }
  0xd5   :  { %1643 = vmatpush.msrb.mxu3 %v799_v32  ;;  %1585 = vmatpush.msrb.mxu0 %v699_v33  ;;  %v889_v54 = vld [vmem:[#allocation2 + $0x19f0] sm:$0xff]  ;;  %v919_v55 = vld [vmem:[#allocation2 + $0x1ae0] sm:$0xff] }
  0xd6   :  { %1604 = vmatpush.msrb.mxu1 %v733_v34  ;;  %1625 = vmatpush.msrb.mxu2 %v763_v35  ;;  %v953_v56 = vld [vmem:[#allocation2 + $0x1bf0] sm:$0xff]  ;;  %v887_v58 = vld [vmem:[#allocation2 + $0x19e0] sm:$0xff] }
  0xd7   :  { %1644 = vmatpush.msrb.mxu3 %v797_v36  ;;  %1586 = vmatmul.f32.vlgmr.msrb.gmra.mxu0 %v2790_v37  ;;  %v853_v57 = vld [vmem:[#allocation2 + $0x18d0] sm:$0xff]  ;;  %v951_v60 = vld [vmem:[#allocation2 + $0x1be0] sm:$0xff] }
  0xd8   :  { %1626 = vmatmul.f32.vlgmr.msrb.gmra.mxu2 %v2792_v38  ;;  %1650 = vmatpush.msra.mxu0 %v857_v39  ;;  %v917_v59 = vld [vmem:[#allocation2 + $0x1ad0] sm:$0xff]  ;;  %v851_v61 = vld [vmem:[#allocation2 + $0x18c0] sm:$0xff] }
  0xd9   :  { %1690 = vmatpush.msra.mxu2 %v921_v43  ;;  %1605 = vmatpush.msrb.mxu1 %v731_v44  ;;  %v885_v62 = vld [vmem:[#allocation2 + $0x19d0] sm:$0xff]  ;;  %v915_v63 = vld [vmem:[#allocation2 + $0x1ac0] sm:$0xff] }
  0xda   :  { %1645 = vmatpush.msrb.mxu3 %v795_v46  ;;  %1606 = vmatmul.f32.vlgmr.msrb.gmra.mxu1 %v2796_v47  ;;  %v949_v4 = vld [vmem:[#allocation2 + $0x1bd0] sm:$0xff]  ;;  %v883_v6 = vld [vmem:[#allocation2 + $0x19c0] sm:$0xff] }
  0xdb   :  { %1646 = vmatmul.f32.vlgmr.msrb.gmra.mxu3 %v2798_v52  ;;  %1651 = vmatpush.msra.mxu0 %v855_v53  ;;  %v849_v5 = vld [vmem:[#allocation2 + $0x18b0] sm:$0xff]  ;;  %v947_v10 = vld [vmem:[#allocation2 + $0x1bc0] sm:$0xff] }
  0xdc   :  { %1670 = vmatpush.msra.mxu1 %v889_v54  ;;  %1691 = vmatpush.msra.mxu2 %v919_v55  ;;  %v913_v7 = vld [vmem:[#allocation2 + $0x1ab0] sm:$0xff]  ;;  %v847_v11 = vld [vmem:[#allocation2 + $0x18a0] sm:$0xff] }
  0xdd   :  { %1710 = vmatpush.msra.mxu3 %v953_v56  ;;  %1652 = vmatpush.msra.mxu0 %v853_v57  ;;  %v881_v12 = vld [vmem:[#allocation2 + $0x19b0] sm:$0xff]  ;;  %v911_v13 = vld [vmem:[#allocation2 + $0x1aa0] sm:$0xff] }
  0xde   :  { %1671 = vmatpush.msra.mxu1 %v887_v58  ;;  %1692 = vmatpush.msra.mxu2 %v917_v59  ;;  %v945_v16 = vld [vmem:[#allocation2 + $0x1bb0] sm:$0xff]  ;;  %v879_v18 = vld [vmem:[#allocation2 + $0x19a0] sm:$0xff] }
  0xdf   :  { %1711 = vmatpush.msra.mxu3 %v951_v60  ;;  %1653 = vmatpush.msra.mxu0 %v851_v61  ;;  %v845_v17 = vld [vmem:[#allocation2 + $0x1890] sm:$0xff]  ;;  %v943_v20 = vld [vmem:[#allocation2 + $0x1ba0] sm:$0xff] }
  0xe0   :  { %1672 = vmatpush.msra.mxu1 %v885_v62  ;;  %1693 = vmatpush.msra.mxu2 %v915_v63  ;;  %v909_v19 = vld [vmem:[#allocation2 + $0x1a90] sm:$0xff]  ;;  %v843_v21 = vld [vmem:[#allocation2 + $0x1880] sm:$0xff] }
  0xe1   :  { %1712 = vmatpush.msra.mxu3 %v949_v4  ;;  %1654 = vmatpush.msra.mxu0 %v849_v5  ;;  %v877_v22 = vld [vmem:[#allocation2 + $0x1990] sm:$0xff]  ;;  %v907_v23 = vld [vmem:[#allocation2 + $0x1a80] sm:$0xff] }
  0xe2   :  { %1673 = vmatpush.msra.mxu1 %v883_v6  ;;  %1694 = vmatpush.msra.mxu2 %v913_v7  ;;  %v941_v24 = vld [vmem:[#allocation2 + $0x1b90] sm:$0xff]  ;;  %v875_v29 = vld [vmem:[#allocation2 + $0x1980] sm:$0xff] }
  0xe3   :  { %1713 = vmatpush.msra.mxu3 %v947_v10  ;;  %1655 = vmatpush.msra.mxu0 %v847_v11  ;;  %v841_v25 = vld [vmem:[#allocation2 + $0x1870] sm:$0xff]  ;;  %v939_v32 = vld [vmem:[#allocation2 + $0x1b80] sm:$0xff] }
  0xe4   :  { %1674 = vmatpush.msra.mxu1 %v881_v12  ;;  %1695 = vmatpush.msra.mxu2 %v911_v13  ;;  %v905_v30 = vld [vmem:[#allocation2 + $0x1a70] sm:$0xff]  ;;  %v839_v33 = vld [vmem:[#allocation2 + $0x1860] sm:$0xff] }
  0xe5   :  { %1714 = vmatpush.msra.mxu3 %v945_v16  ;;  %1656 = vmatpush.msra.mxu0 %v845_v17  ;;  %v873_v34 = vld [vmem:[#allocation2 + $0x1970] sm:$0xff]  ;;  %v903_v35 = vld [vmem:[#allocation2 + $0x1a60] sm:$0xff] }
  0xe6   :  { %1675 = vmatpush.msra.mxu1 %v879_v18  ;;  %1696 = vmatpush.msra.mxu2 %v909_v19  ;;  %v937_v36 = vld [vmem:[#allocation2 + $0x1b70] sm:$0xff]  ;;  %v871_v43 = vld [vmem:[#allocation2 + $0x1960] sm:$0xff]  ;;  %v1130_v18 = vld.sshfl [vmem:[#allocation1] sm:$0xff pattern:$0x73625140] }
  0xe7   :  { %1715 = vmatpush.msra.mxu3 %v943_v20  ;;  %1657 = vmatpush.msra.mxu0 %v843_v21  ;;  %v837_v39 = vld [vmem:[#allocation2 + $0x1850] sm:$0xff]  ;;  %v935_v46 = vld [vmem:[#allocation2 + $0x1b60] sm:$0xff]  ;;  %v1132_v19 = vld.sshfl [vmem:[#allocation1 + $0x10] sm:$0xff pattern:$0x73625140] }
  0xe8   :  { %1676 = vmatpush.msra.mxu1 %v877_v22  ;;  %1697 = vmatpush.msra.mxu2 %v907_v23  ;;  %v901_v44 = vld [vmem:[#allocation2 + $0x1a50] sm:$0xff]  ;;  %v835_v53 = vld [vmem:[#allocation2 + $0x1840] sm:$0xff] }
  0xe9   :  { %1716 = vmatpush.msra.mxu3 %v941_v24  ;;  %1658 = vmatpush.msra.mxu0 %v841_v25  ;;  %v869_v54 = vld [vmem:[#allocation2 + $0x1950] sm:$0xff]  ;;  %v899_v55 = vld [vmem:[#allocation2 + $0x1a40] sm:$0xff] }
  0xea   :  { %1677 = vmatpush.msra.mxu1 %v875_v29  ;;  %1698 = vmatpush.msra.mxu2 %v905_v30  ;;  %v933_v56 = vld [vmem:[#allocation2 + $0x1b50] sm:$0xff]  ;;  %v867_v58 = vld [vmem:[#allocation2 + $0x1940] sm:$0xff] }
  0xeb   :  { %1717 = vmatpush.msra.mxu3 %v939_v32  ;;  %1659 = vmatpush.msra.mxu0 %v839_v33  ;;  %v833_v57 = vld [vmem:[#allocation2 + $0x1830] sm:$0xff]  ;;  %v931_v60 = vld [vmem:[#allocation2 + $0x1b40] sm:$0xff] }
  0xec   :  { %1678 = vmatpush.msra.mxu1 %v873_v34  ;;  %1699 = vmatpush.msra.mxu2 %v903_v35  ;;  %v897_v59 = vld [vmem:[#allocation2 + $0x1a30] sm:$0xff]  ;;  %v831_v61 = vld [vmem:[#allocation2 + $0x1820] sm:$0xff] }
  0xed   :  { %1718 = vmatpush.msra.mxu3 %v937_v36  ;;  %1660 = vmatpush.msra.mxu0 %v837_v39  ;;  %v865_v62 = vld [vmem:[#allocation2 + $0x1930] sm:$0xff]  ;;  %v895_v63 = vld [vmem:[#allocation2 + $0x1a20] sm:$0xff] }
  0xee   :  { %1679 = vmatpush.msra.mxu1 %v871_v43  ;;  %1700 = vmatpush.msra.mxu2 %v901_v44  ;;  %v929_v4 = vld [vmem:[#allocation2 + $0x1b30] sm:$0xff]  ;;  %v863_v6 = vld [vmem:[#allocation2 + $0x1920] sm:$0xff] }
  0xef   :  { %1719 = vmatpush.msra.mxu3 %v935_v46  ;;  %1661 = vmatpush.msra.mxu0 %v835_v53  ;;  %v829_v5 = vld [vmem:[#allocation2 + $0x1810] sm:$0xff]  ;;  %v927_v11 = vld [vmem:[#allocation2 + $0x1b20] sm:$0xff] }
  0xf0   :  { %1680 = vmatpush.msra.mxu1 %v869_v54  ;;  %1701 = vmatpush.msra.mxu2 %v899_v55  ;;  %v58_v7 = vld [vmem:[%s2931_s0 + $0x38] sm:$0xff]  ;;  %v827_v12 = vld [vmem:[#allocation2 + $0x1800] sm:$0xff] }
  0xf1   :  { %1720 = vmatpush.msra.mxu3 %v933_v56  ;;  %1662 = vmatpush.msra.mxu0 %v833_v57  ;;  %v893_v10 = vld [vmem:[#allocation2 + $0x1a10] sm:$0xff]  ;;  %1129 = vst [vmem:[#allocation1 + $0x20] ss:$4 sm:$0xff] %v58_v7  ;;  %v891_v16 = vld [vmem:[#allocation2 + $0x1a00] sm:$0xff] }
  0xf2   :  { %1681 = vmatpush.msra.mxu1 %v867_v58  ;;  %1702 = vmatpush.msra.mxu2 %v897_v59  ;;  %v861_v13 = vld [vmem:[#allocation2 + $0x1910] sm:$0xff]  ;;  %v859_v22 = vld [vmem:[#allocation2 + $0x1900] sm:$0xff] }
  0xf3   :  { %1721 = vmatpush.msra.mxu3 %v931_v60  ;;  %1663 = vmatpush.msra.mxu0 %v831_v61  ;;  %v925_v17 = vld [vmem:[#allocation2 + $0x1b10] sm:$0xff]  ;;  %v923_v23 = vld [vmem:[#allocation2 + $0x1b00] sm:$0xff] }
  0xf4   :  { %1682 = vmatpush.msra.mxu1 %v865_v62  ;;  %1703 = vmatpush.msra.mxu2 %v895_v63  ;;  %v985_v20 = vld [vmem:[#allocation2 + $0x1cf0] sm:$0xff]  ;;  %v1131_v24 = vld.sshfl [vmem:[#allocation1 + $0x8] sm:$0xff pattern:$0x73625140] }
  0xf5   :  { %1722 = vmatpush.msra.mxu3 %v929_v4  ;;  %1664 = vmatpush.msra.mxu0 %v829_v5  ;;  %v1049_v21 = vld [vmem:[#allocation2 + $0x1ef0] sm:$0xff]  ;;  %v983_v29 = vld [vmem:[#allocation2 + $0x1ce0] sm:$0xff] }
  0xf6   :  { %1683 = vmatpush.msra.mxu1 %v863_v6  ;;  %1704 = vmatpush.msra.mxu2 %v893_v10  ;;  %v1133_v25 = vld.sshfl [vmem:[#allocation1 + $0x18] sm:$0xff pattern:$0x73625140]  ;;  %v1047_v32 = vld [vmem:[#allocation2 + $0x1ee0] sm:$0xff] }
  0xf7   :  { %1723 = vmatpush.msra.mxu3 %v927_v11  ;;  %1665 = vmatpush.msra.mxu0 %v827_v12  ;;  %v1017_v30 = vld [vmem:[#allocation2 + $0x1df0] sm:$0xff]  ;;  %v1015_v35 = vld [vmem:[#allocation2 + $0x1de0] sm:$0xff] }
  0xf8   :  { %1684 = vmatpush.msra.mxu1 %v861_v13  ;;  %1705 = vmatpush.msra.mxu2 %v891_v16  ;;  %v1081_v33 = vld [vmem:[#allocation2 + $0x1ff0] sm:$0xff]  ;;  %v1079_v39 = vld [vmem:[#allocation2 + $0x1fe0] sm:$0xff] }
  0xf9   :  { %1724 = vmatpush.msra.mxu3 %v925_v17  ;;  %1666 = vmatmul.f32.vlgmr.msra.gmra.mxu0 %v1130_v18  ;;  %v981_v34 = vld [vmem:[#allocation2 + $0x1cd0] sm:$0xff]  ;;  %v979_v43 = vld [vmem:[#allocation2 + $0x1cc0] sm:$0xff] }
  0xfa   :  { %1706 = vmatmul.f32.vlgmr.msra.gmra.mxu2 %v1132_v19  ;;  %1730 = vmatpush.msrb.mxu0 %v985_v20  ;;  %v1045_v36 = vld [vmem:[#allocation2 + $0x1ed0] sm:$0xff]  ;;  %v1043_v46 = vld [vmem:[#allocation2 + $0x1ec0] sm:$0xff] }
  0xfb   :  { %1770 = vmatpush.msrb.mxu2 %v1049_v21  ;;  %1685 = vmatpush.msra.mxu1 %v859_v22  ;;  %v1013_v44 = vld [vmem:[#allocation2 + $0x1dd0] sm:$0xff]  ;;  %v1011_v55 = vld [vmem:[#allocation2 + $0x1dc0] sm:$0xff] }
  0xfc   :  { %1725 = vmatpush.msra.mxu3 %v923_v23  ;;  %1686 = vmatmul.f32.vlgmr.msra.gmra.mxu1 %v1131_v24  ;;  %v1077_v53 = vld [vmem:[#allocation2 + $0x1fd0] sm:$0xff]  ;;  %v1075_v57 = vld [vmem:[#allocation2 + $0x1fc0] sm:$0xff] }
  0xfd   :  { %1726 = vmatmul.f32.vlgmr.msra.gmra.mxu3 %v1133_v25  ;;  %1731 = vmatpush.msrb.mxu0 %v983_v29  ;;  %v977_v54 = vld [vmem:[#allocation2 + $0x1cb0] sm:$0xff]  ;;  %v975_v58 = vld [vmem:[#allocation2 + $0x1ca0] sm:$0xff] }
  0xfe   :  { %1750 = vmatpush.msrb.mxu1 %v1017_v30  ;;  %1771 = vmatpush.msrb.mxu2 %v1047_v32  ;;  %v1041_v56 = vld [vmem:[#allocation2 + $0x1eb0] sm:$0xff]  ;;  %v1039_v60 = vld [vmem:[#allocation2 + $0x1ea0] sm:$0xff] }
  0xff   :  { %1790 = vmatpush.msrb.mxu3 %v1081_v33  ;;  %1732 = vmatpush.msrb.mxu0 %v981_v34  ;;  %v1009_v59 = vld [vmem:[#allocation2 + $0x1db0] sm:$0xff]  ;;  %v1007_v63 = vld [vmem:[#allocation2 + $0x1da0] sm:$0xff] }
 0x100   :  { %1751 = vmatpush.msrb.mxu1 %v1015_v35  ;;  %1772 = vmatpush.msrb.mxu2 %v1045_v36  ;;  %v1073_v61 = vld [vmem:[#allocation2 + $0x1fb0] sm:$0xff]  ;;  %v1071_v5 = vld [vmem:[#allocation2 + $0x1fa0] sm:$0xff] }
 0x101   :  { %1791 = vmatpush.msrb.mxu3 %v1079_v39  ;;  %1733 = vmatpush.msrb.mxu0 %v979_v43  ;;  %v973_v62 = vld [vmem:[#allocation2 + $0x1c90] sm:$0xff]  ;;  %v971_v6 = vld [vmem:[#allocation2 + $0x1c80] sm:$0xff] }
 0x102   :  { %1752 = vmatpush.msrb.mxu1 %v1013_v44  ;;  %1773 = vmatpush.msrb.mxu2 %v1043_v46  ;;  %v1037_v4 = vld [vmem:[#allocation2 + $0x1e90] sm:$0xff]  ;;  %v1035_v10 = vld [vmem:[#allocation2 + $0x1e80] sm:$0xff] }
 0x103   :  { %1792 = vmatpush.msrb.mxu3 %v1077_v53  ;;  %1734 = vmatpush.msrb.mxu0 %v977_v54  ;;  %v1005_v7 = vld [vmem:[#allocation2 + $0x1d90] sm:$0xff]  ;;  %v1003_v13 = vld [vmem:[#allocation2 + $0x1d80] sm:$0xff] }
 0x104   :  { %1753 = vmatpush.msrb.mxu1 %v1011_v55  ;;  %1774 = vmatpush.msrb.mxu2 %v1041_v56  ;;  %v1069_v11 = vld [vmem:[#allocation2 + $0x1f90] sm:$0xff]  ;;  %v1067_v17 = vld [vmem:[#allocation2 + $0x1f80] sm:$0xff] }
 0x105   :  { %1793 = vmatpush.msrb.mxu3 %v1075_v57  ;;  %1735 = vmatpush.msrb.mxu0 %v975_v58  ;;  %v969_v12 = vld [vmem:[#allocation2 + $0x1c70] sm:$0xff]  ;;  %v967_v18 = vld [vmem:[#allocation2 + $0x1c60] sm:$0xff] }
 0x106   :  { %1754 = vmatpush.msrb.mxu1 %v1009_v59  ;;  %1775 = vmatpush.msrb.mxu2 %v1039_v60  ;;  %v1033_v16 = vld [vmem:[#allocation2 + $0x1e70] sm:$0xff]  ;;  %v1031_v20 = vld [vmem:[#allocation2 + $0x1e60] sm:$0xff] }
 0x107   :  { %1794 = vmatpush.msrb.mxu3 %v1073_v61  ;;  %1736 = vmatpush.msrb.mxu0 %v973_v62  ;;  %v1001_v19 = vld [vmem:[#allocation2 + $0x1d70] sm:$0xff]  ;;  %v999_v23 = vld [vmem:[#allocation2 + $0x1d60] sm:$0xff]  ;;  %v1134_v62 = vld.sshfl [vmem:[#allocation1 + $0x20] sm:$0xff pattern:$0x73625140] }
 0x108   :  { %1755 = vmatpush.msrb.mxu1 %v1007_v63  ;;  %1776 = vmatpush.msrb.mxu2 %v1037_v4  ;;  %v1065_v21 = vld [vmem:[#allocation2 + $0x1f70] sm:$0xff]  ;;  %v1063_v25 = vld [vmem:[#allocation2 + $0x1f60] sm:$0xff]  ;;  %v1136_v63 = vld.sshfl [vmem:[#allocation1 + $0x30] sm:$0xff pattern:$0x73625140] }
 0x109   :  { %1795 = vmatpush.msrb.mxu3 %v1071_v5  ;;  %1737 = vmatpush.msrb.mxu0 %v971_v6  ;;  %v965_v22 = vld [vmem:[#allocation2 + $0x1c50] sm:$0xff]  ;;  %v963_v29 = vld [vmem:[#allocation2 + $0x1c40] sm:$0xff]  ;;  %v90_v4 = vld [vmem:[#allocation2 + $0xf8] sm:$0xff] }
 0x10a   :  { %1756 = vmatpush.msrb.mxu1 %v1005_v7  ;;  %1777 = vmatpush.msrb.mxu2 %v1035_v10  ;;  %v1029_v24 = vld [vmem:[#allocation2 + $0x1e50] sm:$0xff]  ;;  %v1027_v32 = vld [vmem:[#allocation2 + $0x1e40] sm:$0xff]  ;;  %v154_v5 = vld [vmem:[#allocation2 + $0x2f8] sm:$0xff] }
 0x10b   :  { %1796 = vmatpush.msrb.mxu3 %v1069_v11  ;;  %1738 = vmatpush.msrb.mxu0 %v969_v12  ;;  %v997_v30 = vld [vmem:[#allocation2 + $0x1d50] sm:$0xff]  ;;  %v995_v35 = vld [vmem:[#allocation2 + $0x1d40] sm:$0xff]  ;;  %v88_v12 = vld [vmem:[#allocation2 + $0xe8] sm:$0xff] }
 0x10c   :  { %1757 = vmatpush.msrb.mxu1 %v1003_v13  ;;  %1778 = vmatpush.msrb.mxu2 %v1033_v16  ;;  %v1061_v33 = vld [vmem:[#allocation2 + $0x1f50] sm:$0xff]  ;;  %v1059_v39 = vld [vmem:[#allocation2 + $0x1f40] sm:$0xff]  ;;  %v122_v13 = vld [vmem:[#allocation2 + $0x1f8] sm:$0xff] }
 0x10d   :  { %1797 = vmatpush.msrb.mxu3 %v1067_v17  ;;  %1739 = vmatpush.msrb.mxu0 %v967_v18  ;;  %v961_v34 = vld [vmem:[#allocation2 + $0x1c30] sm:$0xff]  ;;  %v959_v43 = vld [vmem:[#allocation2 + $0x1c20] sm:$0xff]  ;;  %v152_v16 = vld [vmem:[#allocation2 + $0x2e8] sm:$0xff] }
 0x10e   :  { %1758 = vmatpush.msrb.mxu1 %v1001_v19  ;;  %1779 = vmatpush.msrb.mxu2 %v1031_v20  ;;  %v1025_v36 = vld [vmem:[#allocation2 + $0x1e30] sm:$0xff]  ;;  %v1023_v46 = vld [vmem:[#allocation2 + $0x1e20] sm:$0xff]  ;;  %v186_v17 = vld [vmem:[#allocation2 + $0x3f8] sm:$0xff] }
 0x10f   :  { %1798 = vmatpush.msrb.mxu3 %v1065_v21  ;;  %1740 = vmatpush.msrb.mxu0 %v965_v22  ;;  %v993_v44 = vld [vmem:[#allocation2 + $0x1d30] sm:$0xff]  ;;  %v991_v55 = vld [vmem:[#allocation2 + $0x1d20] sm:$0xff]  ;;  %v86_v18 = vld [vmem:[#allocation2 + $0xd8] sm:$0xff] }
 0x110   :  { %1759 = vmatpush.msrb.mxu1 %v999_v23  ;;  %1780 = vmatpush.msrb.mxu2 %v1029_v24  ;;  %v1057_v53 = vld [vmem:[#allocation2 + $0x1f30] sm:$0xff]  ;;  %v1055_v57 = vld [vmem:[#allocation2 + $0x1f20] sm:$0xff]  ;;  %v120_v19 = vld [vmem:[#allocation2 + $0x1e8] sm:$0xff] }
 0x111   :  { %1799 = vmatpush.msrb.mxu3 %v1063_v25  ;;  %1741 = vmatpush.msrb.mxu0 %v963_v29  ;;  %v957_v54 = vld [vmem:[#allocation2 + $0x1c10] sm:$0xff]  ;;  %v955_v58 = vld [vmem:[#allocation2 + $0x1c00] sm:$0xff]  ;;  %v150_v20 = vld [vmem:[#allocation2 + $0x2d8] sm:$0xff] }
 0x112   :  { %1760 = vmatpush.msrb.mxu1 %v997_v30  ;;  %1781 = vmatpush.msrb.mxu2 %v1027_v32  ;;  %v1021_v56 = vld [vmem:[#allocation2 + $0x1e10] sm:$0xff]  ;;  %v1019_v60 = vld [vmem:[#allocation2 + $0x1e00] sm:$0xff]  ;;  %v184_v21 = vld [vmem:[#allocation2 + $0x3e8] sm:$0xff] }
 0x113   :  { %1800 = vmatpush.msrb.mxu3 %v1061_v33  ;;  %1742 = vmatpush.msrb.mxu0 %v961_v34  ;;  %v989_v59 = vld [vmem:[#allocation2 + $0x1d10] sm:$0xff]  ;;  %v987_v6 = vld [vmem:[#allocation2 + $0x1d00] sm:$0xff]  ;;  %v84_v22 = vld [vmem:[#allocation2 + $0xc8] sm:$0xff] }
 0x114   :  { %1761 = vmatpush.msrb.mxu1 %v995_v35  ;;  %1782 = vmatpush.msrb.mxu2 %v1025_v36  ;;  %v1053_v61 = vld [vmem:[#allocation2 + $0x1f10] sm:$0xff]  ;;  %v1051_v7 = vld [vmem:[#allocation2 + $0x1f00] sm:$0xff]  ;;  %v118_v23 = vld [vmem:[#allocation2 + $0x1d8] sm:$0xff] }
 0x115   :  { %1801 = vmatpush.msrb.mxu3 %v1059_v39  ;;  %1743 = vmatpush.msrb.mxu0 %v959_v43  ;;  %v1135_v10 = vld.sshfl [vmem:[#allocation1 + $0x28] sm:$0xff pattern:$0x73625140]  ;;  %v1137_v11 = vld.sshfl [vmem:[#allocation1 + $0x38] sm:$0xff pattern:$0x73625140] }
 0x116   :  { %1762 = vmatpush.msrb.mxu1 %v993_v44  ;;  %1783 = vmatpush.msrb.mxu2 %v1023_v46  ;;  %v148_v24 = vld [vmem:[#allocation2 + $0x2c8] sm:$0xff]  ;;  %v182_v25 = vld [vmem:[#allocation2 + $0x3d8] sm:$0xff] }
 0x117   :  { %1802 = vmatpush.msrb.mxu3 %v1057_v53  ;;  %1744 = vmatpush.msrb.mxu0 %v957_v54  ;;  %v82_v29 = vld [vmem:[#allocation2 + $0xb8] sm:$0xff]  ;;  %v116_v30 = vld [vmem:[#allocation2 + $0x1c8] sm:$0xff] }
 0x118   :  { %1763 = vmatpush.msrb.mxu1 %v991_v55  ;;  %1784 = vmatpush.msrb.mxu2 %v1021_v56  ;;  %v146_v32 = vld [vmem:[#allocation2 + $0x2b8] sm:$0xff]  ;;  %v180_v33 = vld [vmem:[#allocation2 + $0x3c8] sm:$0xff] }
 0x119   :  { %1803 = vmatpush.msrb.mxu3 %v1055_v57  ;;  %1745 = vmatpush.msrb.mxu0 %v955_v58  ;;  %v80_v34 = vld [vmem:[#allocation2 + $0xa8] sm:$0xff]  ;;  %v114_v35 = vld [vmem:[#allocation2 + $0x1b8] sm:$0xff] }
 0x11a   :  { %1764 = vmatpush.msrb.mxu1 %v989_v59  ;;  %1785 = vmatpush.msrb.mxu2 %v1019_v60  ;;  %v144_v36 = vld [vmem:[#allocation2 + $0x2a8] sm:$0xff]  ;;  %v178_v39 = vld [vmem:[#allocation2 + $0x3b8] sm:$0xff] }
 0x11b   :  { %1804 = vmatpush.msrb.mxu3 %v1053_v61  ;;  %1746 = vmatmul.f32.vlgmr.msrb.gmra.mxu0 %v1134_v62  ;;  %v78_v43 = vld [vmem:[#allocation2 + $0x98] sm:$0xff]  ;;  %v112_v44 = vld [vmem:[#allocation2 + $0x1a8] sm:$0xff] }
 0x11c   :  { %1786 = vmatmul.f32.vlgmr.msrb.gmra.mxu2 %v1136_v63  ;;  %1810 = vmatpush.msra.mxu0 %v90_v4  ;;  %v142_v46 = vld [vmem:[#allocation2 + $0x298] sm:$0xff]  ;;  %v176_v53 = vld [vmem:[#allocation2 + $0x3a8] sm:$0xff] }
 0x11d   :  { %1850 = vmatpush.msra.mxu2 %v154_v5  ;;  %1765 = vmatpush.msrb.mxu1 %v987_v6  ;;  %v76_v54 = vld [vmem:[#allocation2 + $0x88] sm:$0xff]  ;;  %v110_v55 = vld [vmem:[#allocation2 + $0x198] sm:$0xff] }
 0x11e   :  { %1805 = vmatpush.msrb.mxu3 %v1051_v7  ;;  %1766 = vmatmul.f32.vlgmr.msrb.gmra.mxu1 %v1135_v10  ;;  %v140_v56 = vld [vmem:[#allocation2 + $0x288] sm:$0xff]  ;;  %v174_v57 = vld [vmem:[#allocation2 + $0x398] sm:$0xff] }
 0x11f   :  { %1806 = vmatmul.f32.vlgmr.msrb.gmra.mxu3 %v1137_v11  ;;  %1811 = vmatpush.msra.mxu0 %v88_v12  ;;  %v74_v58 = vld [vmem:[#allocation2 + $0x78] sm:$0xff]  ;;  %v108_v59 = vld [vmem:[#allocation2 + $0x188] sm:$0xff] }
 0x120   :  { %1830 = vmatpush.msra.mxu1 %v122_v13  ;;  %1851 = vmatpush.msra.mxu2 %v152_v16  ;;  %v138_v60 = vld [vmem:[#allocation2 + $0x278] sm:$0xff]  ;;  %v172_v61 = vld [vmem:[#allocation2 + $0x388] sm:$0xff] }
 0x121   :  { %1870 = vmatpush.msra.mxu3 %v186_v17  ;;  %1812 = vmatpush.msra.mxu0 %v86_v18  ;;  %v72_v62 = vld [vmem:[#allocation2 + $0x68] sm:$0xff]  ;;  %v106_v63 = vld [vmem:[#allocation2 + $0x178] sm:$0xff] }
 0x122   :  { %1831 = vmatpush.msra.mxu1 %v120_v19  ;;  %1852 = vmatpush.msra.mxu2 %v150_v20  ;;  %v136_v4 = vld [vmem:[#allocation2 + $0x268] sm:$0xff]  ;;  %v170_v5 = vld [vmem:[#allocation2 + $0x378] sm:$0xff] }
 0x123   :  { %1871 = vmatpush.msra.mxu3 %v184_v21  ;;  %1813 = vmatpush.msra.mxu0 %v84_v22  ;;  %v70_v6 = vld [vmem:[#allocation2 + $0x58] sm:$0xff]  ;;  %v104_v7 = vld [vmem:[#allocation2 + $0x168] sm:$0xff] }
 0x124   :  { %1832 = vmatpush.msra.mxu1 %v118_v23  ;;  %1853 = vmatpush.msra.mxu2 %v148_v24  ;;  %v134_v10 = vld [vmem:[#allocation2 + $0x258] sm:$0xff]  ;;  %v168_v11 = vld [vmem:[#allocation2 + $0x368] sm:$0xff] }
 0x125   :  { %1872 = vmatpush.msra.mxu3 %v182_v25  ;;  %1814 = vmatpush.msra.mxu0 %v82_v29  ;;  %v68_v12 = vld [vmem:[#allocation2 + $0x48] sm:$0xff]  ;;  %v102_v13 = vld [vmem:[#allocation2 + $0x158] sm:$0xff] }
 0x126   :  { %1833 = vmatpush.msra.mxu1 %v116_v30  ;;  %1854 = vmatpush.msra.mxu2 %v146_v32  ;;  %v132_v16 = vld [vmem:[#allocation2 + $0x248] sm:$0xff]  ;;  %v166_v17 = vld [vmem:[#allocation2 + $0x358] sm:$0xff] }
 0x127   :  { %1873 = vmatpush.msra.mxu3 %v180_v33  ;;  %1815 = vmatpush.msra.mxu0 %v80_v34  ;;  %v66_v18 = vld [vmem:[#allocation2 + $0x38] sm:$0xff]  ;;  %v100_v19 = vld [vmem:[#allocation2 + $0x148] sm:$0xff] }
 0x128   :  { %1834 = vmatpush.msra.mxu1 %v114_v35  ;;  %1855 = vmatpush.msra.mxu2 %v144_v36  ;;  %v130_v20 = vld [vmem:[#allocation2 + $0x238] sm:$0xff]  ;;  %v164_v21 = vld [vmem:[#allocation2 + $0x348] sm:$0xff] }
 0x129   :  { %1874 = vmatpush.msra.mxu3 %v178_v39  ;;  %1816 = vmatpush.msra.mxu0 %v78_v43  ;;  %v64_v22 = vld [vmem:[#allocation2 + $0x28] sm:$0xff]  ;;  %v98_v23 = vld [vmem:[#allocation2 + $0x138] sm:$0xff] }
 0x12a   :  { %1835 = vmatpush.msra.mxu1 %v112_v44  ;;  %1856 = vmatpush.msra.mxu2 %v142_v46  ;;  %v128_v24 = vld [vmem:[#allocation2 + $0x228] sm:$0xff]  ;;  %v162_v25 = vld [vmem:[#allocation2 + $0x338] sm:$0xff] }
 0x12b   :  { %1875 = vmatpush.msra.mxu3 %v176_v53  ;;  %1817 = vmatpush.msra.mxu0 %v76_v54  ;;  %v62_v29 = vld [vmem:[#allocation2 + $0x18] sm:$0xff]  ;;  %v96_v30 = vld [vmem:[#allocation2 + $0x128] sm:$0xff] }
 0x12c   :  { %1836 = vmatpush.msra.mxu1 %v110_v55  ;;  %1857 = vmatpush.msra.mxu2 %v140_v56  ;;  %v126_v32 = vld [vmem:[#allocation2 + $0x218] sm:$0xff]  ;;  %v160_v33 = vld [vmem:[#allocation2 + $0x328] sm:$0xff] }
 0x12d   :  { %1876 = vmatpush.msra.mxu3 %v174_v57  ;;  %1818 = vmatpush.msra.mxu0 %v74_v58  ;;  %v60_v34 = vld [vmem:[#allocation2 + $0x8] sm:$0xff]  ;;  %v94_v35 = vld [vmem:[#allocation2 + $0x118] sm:$0xff] }
 0x12e   :  { %1837 = vmatpush.msra.mxu1 %v108_v59  ;;  %1858 = vmatpush.msra.mxu2 %v138_v60  ;;  %v124_v36 = vld [vmem:[#allocation2 + $0x208] sm:$0xff]  ;;  %v158_v39 = vld [vmem:[#allocation2 + $0x318] sm:$0xff] }
 0x12f   :  { %1877 = vmatpush.msra.mxu3 %v172_v61  ;;  %1819 = vmatpush.msra.mxu0 %v72_v62  ;;  %v218_v43 = vld [vmem:[#allocation2 + $0x4f8] sm:$0xff]  ;;  %v92_v46 = vld [vmem:[#allocation2 + $0x108] sm:$0xff] }
 0x130   :  { %1838 = vmatpush.msra.mxu1 %v106_v63  ;;  %1859 = vmatpush.msra.mxu2 %v136_v4  ;;  %v282_v44 = vld [vmem:[#allocation2 + $0x6f8] sm:$0xff]  ;;  %v156_v53 = vld [vmem:[#allocation2 + $0x308] sm:$0xff] }
 0x131   :  { %1878 = vmatpush.msra.mxu3 %v170_v5  ;;  %1820 = vmatpush.msra.mxu0 %v70_v6  ;;  %v216_v54 = vld [vmem:[#allocation2 + $0x4e8] sm:$0xff]  ;;  %v250_v55 = vld [vmem:[#allocation2 + $0x5f8] sm:$0xff] }
 0x132   :  { %1839 = vmatpush.msra.mxu1 %v104_v7  ;;  %1860 = vmatpush.msra.mxu2 %v134_v10  ;;  %v280_v56 = vld [vmem:[#allocation2 + $0x6e8] sm:$0xff]  ;;  %v314_v57 = vld [vmem:[#allocation2 + $0x7f8] sm:$0xff] }
 0x133   :  { %1879 = vmatpush.msra.mxu3 %v168_v11  ;;  %1821 = vmatpush.msra.mxu0 %v68_v12  ;;  %v214_v58 = vld [vmem:[#allocation2 + $0x4d8] sm:$0xff]  ;;  %v248_v59 = vld [vmem:[#allocation2 + $0x5e8] sm:$0xff] }
 0x134   :  { %1840 = vmatpush.msra.mxu1 %v102_v13  ;;  %1861 = vmatpush.msra.mxu2 %v132_v16  ;;  %v278_v60 = vld [vmem:[#allocation2 + $0x6d8] sm:$0xff]  ;;  %v312_v61 = vld [vmem:[#allocation2 + $0x7e8] sm:$0xff] }
 0x135   :  { %1880 = vmatpush.msra.mxu3 %v166_v17  ;;  %1822 = vmatpush.msra.mxu0 %v66_v18  ;;  %v212_v62 = vld [vmem:[#allocation2 + $0x4c8] sm:$0xff]  ;;  %v246_v63 = vld [vmem:[#allocation2 + $0x5d8] sm:$0xff] }
 0x136   :  { %1841 = vmatpush.msra.mxu1 %v100_v19  ;;  %1862 = vmatpush.msra.mxu2 %v130_v20  ;;  %v276_v4 = vld [vmem:[#allocation2 + $0x6c8] sm:$0xff]  ;;  %v310_v5 = vld [vmem:[#allocation2 + $0x7d8] sm:$0xff] }
 0x137   :  { %1881 = vmatpush.msra.mxu3 %v164_v21  ;;  %1823 = vmatpush.msra.mxu0 %v64_v22  ;;  %v210_v6 = vld [vmem:[#allocation2 + $0x4b8] sm:$0xff]  ;;  %v244_v7 = vld [vmem:[#allocation2 + $0x5c8] sm:$0xff] }
 0x138   :  { %1842 = vmatpush.msra.mxu1 %v98_v23  ;;  %1863 = vmatpush.msra.mxu2 %v128_v24  ;;  %v274_v10 = vld [vmem:[#allocation2 + $0x6b8] sm:$0xff]  ;;  %v308_v11 = vld [vmem:[#allocation2 + $0x7c8] sm:$0xff] }
 0x139   :  { %1882 = vmatpush.msra.mxu3 %v162_v25  ;;  %1824 = vmatpush.msra.mxu0 %v62_v29  ;;  %v208_v12 = vld [vmem:[#allocation2 + $0x4a8] sm:$0xff]  ;;  %v242_v13 = vld [vmem:[#allocation2 + $0x5b8] sm:$0xff] }
 0x13a   :  { %1843 = vmatpush.msra.mxu1 %v96_v30  ;;  %1864 = vmatpush.msra.mxu2 %v126_v32  ;;  %v272_v16 = vld [vmem:[#allocation2 + $0x6a8] sm:$0xff]  ;;  %v306_v17 = vld [vmem:[#allocation2 + $0x7b8] sm:$0xff] }
 0x13b   :  { %1883 = vmatpush.msra.mxu3 %v160_v33  ;;  %1825 = vmatpush.msra.mxu0 %v60_v34  ;;  %v206_v18 = vld [vmem:[#allocation2 + $0x498] sm:$0xff]  ;;  %v240_v19 = vld [vmem:[#allocation2 + $0x5a8] sm:$0xff] }
 0x13c   :  { %1844 = vmatpush.msra.mxu1 %v94_v35  ;;  %1865 = vmatpush.msra.mxu2 %v124_v36  ;;  %v270_v20 = vld [vmem:[#allocation2 + $0x698] sm:$0xff]  ;;  %v304_v21 = vld [vmem:[#allocation2 + $0x7a8] sm:$0xff] }
 0x13d   :  { %1884 = vmatpush.msra.mxu3 %v158_v39  ;;  %1890 = vmatpush.msrb.mxu0 %v218_v43  ;;  %v204_v22 = vld [vmem:[#allocation2 + $0x488] sm:$0xff]  ;;  %v238_v23 = vld [vmem:[#allocation2 + $0x598] sm:$0xff] }
 0x13e   :  { %1930 = vmatpush.msrb.mxu2 %v282_v44  ;;  %1845 = vmatpush.msra.mxu1 %v92_v46  ;;  %v268_v24 = vld [vmem:[#allocation2 + $0x688] sm:$0xff]  ;;  %v302_v25 = vld [vmem:[#allocation2 + $0x798] sm:$0xff] }
 0x13f   :  { %1885 = vmatpush.msra.mxu3 %v156_v53  ;;  %1891 = vmatpush.msrb.mxu0 %v216_v54  ;;  %v202_v29 = vld [vmem:[#allocation2 + $0x478] sm:$0xff]  ;;  %v236_v30 = vld [vmem:[#allocation2 + $0x588] sm:$0xff] }
 0x140   :  { %1910 = vmatpush.msrb.mxu1 %v250_v55  ;;  %1931 = vmatpush.msrb.mxu2 %v280_v56  ;;  %v266_v32 = vld [vmem:[#allocation2 + $0x678] sm:$0xff]  ;;  %v300_v33 = vld [vmem:[#allocation2 + $0x788] sm:$0xff] }
 0x141   :  { %1950 = vmatpush.msrb.mxu3 %v314_v57  ;;  %1892 = vmatpush.msrb.mxu0 %v214_v58  ;;  %v200_v34 = vld [vmem:[#allocation2 + $0x468] sm:$0xff]  ;;  %v234_v35 = vld [vmem:[#allocation2 + $0x578] sm:$0xff] }
 0x142   :  { %1911 = vmatpush.msrb.mxu1 %v248_v59  ;;  %1932 = vmatpush.msrb.mxu2 %v278_v60  ;;  %v264_v36 = vld [vmem:[#allocation2 + $0x668] sm:$0xff]  ;;  %v298_v39 = vld [vmem:[#allocation2 + $0x778] sm:$0xff] }
 0x143   :  { %1951 = vmatpush.msrb.mxu3 %v312_v61  ;;  %1893 = vmatpush.msrb.mxu0 %v212_v62  ;;  %v198_v43 = vld [vmem:[#allocation2 + $0x458] sm:$0xff]  ;;  %v232_v44 = vld [vmem:[#allocation2 + $0x568] sm:$0xff] }
 0x144   :  { %1912 = vmatpush.msrb.mxu1 %v246_v63  ;;  %1933 = vmatpush.msrb.mxu2 %v276_v4  ;;  %v262_v46 = vld [vmem:[#allocation2 + $0x658] sm:$0xff]  ;;  %v296_v53 = vld [vmem:[#allocation2 + $0x768] sm:$0xff] }
 0x145   :  { %1952 = vmatpush.msrb.mxu3 %v310_v5  ;;  %1894 = vmatpush.msrb.mxu0 %v210_v6  ;;  %v196_v54 = vld [vmem:[#allocation2 + $0x448] sm:$0xff]  ;;  %v230_v55 = vld [vmem:[#allocation2 + $0x558] sm:$0xff] }
 0x146   :  { %1913 = vmatpush.msrb.mxu1 %v244_v7  ;;  %1934 = vmatpush.msrb.mxu2 %v274_v10  ;;  %v260_v56 = vld [vmem:[#allocation2 + $0x648] sm:$0xff]  ;;  %v294_v57 = vld [vmem:[#allocation2 + $0x758] sm:$0xff] }
 0x147   :  { %1953 = vmatpush.msrb.mxu3 %v308_v11  ;;  %1895 = vmatpush.msrb.mxu0 %v208_v12  ;;  %v194_v58 = vld [vmem:[#allocation2 + $0x438] sm:$0xff]  ;;  %v228_v59 = vld [vmem:[#allocation2 + $0x548] sm:$0xff] }
 0x148   :  { %1914 = vmatpush.msrb.mxu1 %v242_v13  ;;  %1935 = vmatpush.msrb.mxu2 %v272_v16  ;;  %v258_v60 = vld [vmem:[#allocation2 + $0x638] sm:$0xff]  ;;  %v292_v61 = vld [vmem:[#allocation2 + $0x748] sm:$0xff] }
 0x149   :  { %1954 = vmatpush.msrb.mxu3 %v306_v17  ;;  %1896 = vmatpush.msrb.mxu0 %v206_v18  ;;  %v192_v62 = vld [vmem:[#allocation2 + $0x428] sm:$0xff]  ;;  %v226_v63 = vld [vmem:[#allocation2 + $0x538] sm:$0xff] }
 0x14a   :  { %1915 = vmatpush.msrb.mxu1 %v240_v19  ;;  %1936 = vmatpush.msrb.mxu2 %v270_v20  ;;  %v256_v4 = vld [vmem:[#allocation2 + $0x628] sm:$0xff]  ;;  %v290_v5 = vld [vmem:[#allocation2 + $0x738] sm:$0xff] }
 0x14b   :  { %1955 = vmatpush.msrb.mxu3 %v304_v21  ;;  %1897 = vmatpush.msrb.mxu0 %v204_v22  ;;  %v190_v6 = vld [vmem:[#allocation2 + $0x418] sm:$0xff]  ;;  %v224_v7 = vld [vmem:[#allocation2 + $0x528] sm:$0xff] }
 0x14c   :  { %1916 = vmatpush.msrb.mxu1 %v238_v23  ;;  %1937 = vmatpush.msrb.mxu2 %v268_v24  ;;  %v254_v10 = vld [vmem:[#allocation2 + $0x618] sm:$0xff]  ;;  %v288_v11 = vld [vmem:[#allocation2 + $0x728] sm:$0xff] }
 0x14d   :  { %1956 = vmatpush.msrb.mxu3 %v302_v25  ;;  %1898 = vmatpush.msrb.mxu0 %v202_v29  ;;  %v188_v12 = vld [vmem:[#allocation2 + $0x408] sm:$0xff]  ;;  %v222_v13 = vld [vmem:[#allocation2 + $0x518] sm:$0xff] }
 0x14e   :  { %1917 = vmatpush.msrb.mxu1 %v236_v30  ;;  %1938 = vmatpush.msrb.mxu2 %v266_v32  ;;  %v252_v16 = vld [vmem:[#allocation2 + $0x608] sm:$0xff]  ;;  %v286_v17 = vld [vmem:[#allocation2 + $0x718] sm:$0xff] }
 0x14f   :  { %1957 = vmatpush.msrb.mxu3 %v300_v33  ;;  %1899 = vmatpush.msrb.mxu0 %v200_v34  ;;  %v346_v18 = vld [vmem:[#allocation2 + $0x8f8] sm:$0xff]  ;;  %v220_v20 = vld [vmem:[#allocation2 + $0x508] sm:$0xff] }
 0x150   :  { %1918 = vmatpush.msrb.mxu1 %v234_v35  ;;  %1939 = vmatpush.msrb.mxu2 %v264_v36  ;;  %v410_v19 = vld [vmem:[#allocation2 + $0xaf8] sm:$0xff]  ;;  %v284_v21 = vld [vmem:[#allocation2 + $0x708] sm:$0xff] }
 0x151   :  { %1958 = vmatpush.msrb.mxu3 %v298_v39  ;;  %1900 = vmatpush.msrb.mxu0 %v198_v43  ;;  %v344_v22 = vld [vmem:[#allocation2 + $0x8e8] sm:$0xff]  ;;  %v378_v23 = vld [vmem:[#allocation2 + $0x9f8] sm:$0xff] }
 0x152   :  { %1919 = vmatpush.msrb.mxu1 %v232_v44  ;;  %1940 = vmatpush.msrb.mxu2 %v262_v46  ;;  %v408_v24 = vld [vmem:[#allocation2 + $0xae8] sm:$0xff]  ;;  %v442_v25 = vld [vmem:[#allocation2 + $0xbf8] sm:$0xff] }
 0x153   :  { %1959 = vmatpush.msrb.mxu3 %v296_v53  ;;  %1901 = vmatpush.msrb.mxu0 %v196_v54  ;;  %v342_v29 = vld [vmem:[#allocation2 + $0x8d8] sm:$0xff]  ;;  %v376_v30 = vld [vmem:[#allocation2 + $0x9e8] sm:$0xff] }
 0x154   :  { %1920 = vmatpush.msrb.mxu1 %v230_v55  ;;  %1941 = vmatpush.msrb.mxu2 %v260_v56  ;;  %v406_v32 = vld [vmem:[#allocation2 + $0xad8] sm:$0xff]  ;;  %v404_v34 = vld [vmem:[#allocation2 + $0xac8] sm:$0xff] }
 0x155   :  { %1960 = vmatpush.msrb.mxu3 %v294_v57  ;;  %1902 = vmatpush.msrb.mxu0 %v194_v58  ;;  %v374_v33 = vld [vmem:[#allocation2 + $0x9d8] sm:$0xff]  ;;  %v436_v39 = vld [vmem:[#allocation2 + $0xbc8] sm:$0xff] }
 0x156   :  { %1921 = vmatpush.msrb.mxu1 %v228_v59  ;;  %1942 = vmatpush.msrb.mxu2 %v258_v60  ;;  %v438_v35 = vld [vmem:[#allocation2 + $0xbd8] sm:$0xff]  ;;  %v336_v43 = vld [vmem:[#allocation2 + $0x8a8] sm:$0xff] }
 0x157   :  { %1961 = vmatpush.msrb.mxu3 %v292_v61  ;;  %1903 = vmatpush.msrb.mxu0 %v192_v62  ;;  %v338_v36 = vld [vmem:[#allocation2 + $0x8b8] sm:$0xff]  ;;  %v400_v46 = vld [vmem:[#allocation2 + $0xaa8] sm:$0xff] }
 0x158   :  { %1922 = vmatpush.msrb.mxu1 %v226_v63  ;;  %1943 = vmatpush.msrb.mxu2 %v256_v4  ;;  %v370_v44 = vld [vmem:[#allocation2 + $0x9b8] sm:$0xff]  ;;  %v368_v55 = vld [vmem:[#allocation2 + $0x9a8] sm:$0xff] }
 0x159   :  { %1962 = vmatpush.msrb.mxu3 %v290_v5  ;;  %1904 = vmatpush.msrb.mxu0 %v190_v6  ;;  %v434_v53 = vld [vmem:[#allocation2 + $0xbb8] sm:$0xff]  ;;  %v432_v57 = vld [vmem:[#allocation2 + $0xba8] sm:$0xff] }
 0x15a   :  { %1923 = vmatpush.msrb.mxu1 %v224_v7  ;;  %1944 = vmatpush.msrb.mxu2 %v254_v10  ;;  %v334_v54 = vld [vmem:[#allocation2 + $0x898] sm:$0xff]  ;;  %v396_v59 = vld [vmem:[#allocation2 + $0xa88] sm:$0xff] }
 0x15b   :  { %1963 = vmatpush.msrb.mxu3 %v288_v11  ;;  %1905 = vmatpush.msrb.mxu0 %v188_v12  ;;  %v398_v56 = vld [vmem:[#allocation2 + $0xa98] sm:$0xff]  ;;  %v428_v62 = vld [vmem:[#allocation2 + $0xb88] sm:$0xff] }
 0x15c   :  { %1924 = vmatpush.msrb.mxu1 %v222_v13  ;;  %1945 = vmatpush.msrb.mxu2 %v252_v16  ;;  %v366_v58 = vld [vmem:[#allocation2 + $0x998] sm:$0xff]  ;;  %v328_v63 = vld [vmem:[#allocation2 + $0x868] sm:$0xff] }
 0x15d   :  { %1964 = vmatpush.msrb.mxu3 %v286_v17  ;;  %1826 = vmatmul.f32.vlgmr.msra.gmra.mxu0 %v2718_v48  ;;  %v440_v48 = vld [vmem:[#allocation2 + $0xbe8] sm:$0xff]  ;;  %v430_v60 = vld [vmem:[#allocation2 + $0xb98] sm:$0xff] }
 0x15e   :  { %1866 = vmatmul.f32.vlgmr.msra.gmra.mxu2 %v2720_v49  ;;  %1970 = vmatpush.msra.mxu0 %v346_v18  ;;  %v340_v49 = vld [vmem:[#allocation2 + $0x8c8] sm:$0xff]  ;;  %v394_v61 = vld [vmem:[#allocation2 + $0xa78] sm:$0xff] }
 0x15f   :  { %2010 = vmatpush.msra.mxu2 %v410_v19  ;;  %1925 = vmatpush.msrb.mxu1 %v220_v20  ;;  %v362_v4 = vld [vmem:[#allocation2 + $0x978] sm:$0xff]  ;;  %v360_v7 = vld [vmem:[#allocation2 + $0x968] sm:$0xff] }
 0x160   :  { %1965 = vmatpush.msrb.mxu3 %v284_v21  ;;  %1846 = vmatmul.f32.vlgmr.msra.gmra.mxu1 %v2722_v50  ;;  %v372_v50 = vld [vmem:[#allocation2 + $0x9c8] sm:$0xff]  ;;  %v426_v5 = vld [vmem:[#allocation2 + $0xb78] sm:$0xff] }
 0x161   :  { %1886 = vmatmul.f32.vlgmr.msra.gmra.mxu3 %v2724_v51  ;;  %1971 = vmatpush.msra.mxu0 %v344_v22  ;;  %v402_v51 = vld [vmem:[#allocation2 + $0xab8] sm:$0xff]  ;;  %v424_v11 = vld [vmem:[#allocation2 + $0xb68] sm:$0xff] }
 0x162   :  { %1990 = vmatpush.msra.mxu1 %v378_v23  ;;  %2011 = vmatpush.msra.mxu2 %v408_v24  ;;  %v326_v6 = vld [vmem:[#allocation2 + $0x858] sm:$0xff]  ;;  %v324_v12 = vld [vmem:[#allocation2 + $0x848] sm:$0xff] }
 0x163   :  { %2030 = vmatpush.msra.mxu3 %v442_v25  ;;  %1972 = vmatpush.msra.mxu0 %v342_v29  ;;  %v390_v10 = vld [vmem:[#allocation2 + $0xa58] sm:$0xff]  ;;  %v388_v16 = vld [vmem:[#allocation2 + $0xa48] sm:$0xff] }
 0x164   :  { %1991 = vmatpush.msra.mxu1 %v376_v30  ;;  %2012 = vmatpush.msra.mxu2 %v406_v32  ;;  %v358_v13 = vld [vmem:[#allocation2 + $0x958] sm:$0xff]  ;;  %v356_v19 = vld [vmem:[#allocation2 + $0x948] sm:$0xff] }
 0x165   :  { %2031 = vmatpush.msra.mxu3 %v440_v48  ;;  %1973 = vmatpush.msra.mxu0 %v340_v49  ;;  %v422_v17 = vld [vmem:[#allocation2 + $0xb58] sm:$0xff]  ;;  %v420_v21 = vld [vmem:[#allocation2 + $0xb48] sm:$0xff] }
 0x166   :  { %1992 = vmatpush.msra.mxu1 %v374_v33  ;;  %2013 = vmatpush.msra.mxu2 %v404_v34  ;;  %v322_v18 = vld [vmem:[#allocation2 + $0x838] sm:$0xff]  ;;  %v320_v22 = vld [vmem:[#allocation2 + $0x828] sm:$0xff] }
 0x167   :  { %2032 = vmatpush.msra.mxu3 %v438_v35  ;;  %1946 = vmatmul.f32.vlgmr.msrb.gmra.mxu2 %v2729_v0  ;;  %v332_v0 = vld [vmem:[#allocation2 + $0x888] sm:$0xff]  ;;  %v386_v20 = vld [vmem:[#allocation2 + $0xa38] sm:$0xff] }
 0x168   :  { %1974 = vmatpush.msra.mxu0 %v338_v36  ;;  %1993 = vmatpush.msra.mxu1 %v372_v50  ;;  %v354_v23 = vld [vmem:[#allocation2 + $0x938] sm:$0xff]  ;;  %v384_v24 = vld [vmem:[#allocation2 + $0xa28] sm:$0xff] }
 0x169   :  { %2014 = vmatpush.msra.mxu2 %v402_v51  ;;  %2033 = vmatpush.msra.mxu3 %v436_v39  ;;  %v418_v25 = vld [vmem:[#allocation2 + $0xb38] sm:$0xff]  ;;  %v352_v30 = vld [vmem:[#allocation2 + $0x928] sm:$0xff] }
 0x16a   :  { %1906 = vmatmul.f32.vlgmr.msrb.gmra.mxu0 %v2731_v1  ;;  %1966 = vmatmul.f32.vlgmr.msrb.gmra.mxu3 %v2733_v2  ;;  %v330_v1 = vld [vmem:[#allocation2 + $0x878] sm:$0xff]  ;;  %v364_v2 = vld [vmem:[#allocation2 + $0x988] sm:$0xff] }
 0x16b   :  { %1975 = vmatpush.msra.mxu0 %v336_v43  ;;  %1994 = vmatpush.msra.mxu1 %v370_v44  ;;  %v318_v29 = vld [vmem:[#allocation2 + $0x818] sm:$0xff]  ;;  %v416_v48 = vld [vmem:[#allocation2 + $0xb28] sm:$0xff] }
 0x16c   :  { %2015 = vmatpush.msra.mxu2 %v400_v46  ;;  %2034 = vmatpush.msra.mxu3 %v434_v53  ;;  %v382_v32 = vld [vmem:[#allocation2 + $0xa18] sm:$0xff]  ;;  %v316_v49 = vld [vmem:[#allocation2 + $0x808] sm:$0xff] }
 0x16d   :  { %1926 = vmatmul.f32.vlgmr.msrb.gmra.mxu1 %v2735_v3  ;;  %1976 = vmatpush.msra.mxu0 %v334_v54  ;;  %v392_v3 = vld [vmem:[#allocation2 + $0xa68] sm:$0xff]  ;;  %v350_v33 = vld [vmem:[#allocation2 + $0x918] sm:$0xff] }
 0x16e   :  { %1995 = vmatpush.msra.mxu1 %v368_v55  ;;  %2016 = vmatpush.msra.mxu2 %v398_v56  ;;  %v380_v34 = vld [vmem:[#allocation2 + $0xa08] sm:$0xff]  ;;  %v414_v35 = vld [vmem:[#allocation2 + $0xb18] sm:$0xff] }
 0x16f   :  { %2035 = vmatpush.msra.mxu3 %v432_v57  ;;  %1977 = vmatpush.msra.mxu0 %v332_v0  ;;  %v474_v36 = vld [vmem:[#allocation2 + $0xcf8] sm:$0xff]  ;;  %v348_v51 = vld [vmem:[#allocation2 + $0x908] sm:$0xff] }
 0x170   :  { %1996 = vmatpush.msra.mxu1 %v366_v58  ;;  %2017 = vmatpush.msra.mxu2 %v396_v59  ;;  %v538_v50 = vld [vmem:[#allocation2 + $0xef8] sm:$0xff]  ;;  %v412_v39 = vld [vmem:[#allocation2 + $0xb08] sm:$0xff] }
 0x171   :  { %2036 = vmatpush.msra.mxu3 %v430_v60  ;;  %1978 = vmatpush.msra.mxu0 %v330_v1  ;;  %v472_v43 = vld [vmem:[#allocation2 + $0xce8] sm:$0xff]  ;;  %v506_v44 = vld [vmem:[#allocation2 + $0xdf8] sm:$0xff] }
 0x172   :  { %1997 = vmatpush.msra.mxu1 %v364_v2  ;;  %2018 = vmatpush.msra.mxu2 %v394_v61  ;;  %v536_v46 = vld [vmem:[#allocation2 + $0xee8] sm:$0xff]  ;;  %v570_v53 = vld [vmem:[#allocation2 + $0xff8] sm:$0xff] }
 0x173   :  { %2037 = vmatpush.msra.mxu3 %v428_v62  ;;  %1979 = vmatpush.msra.mxu0 %v328_v63  ;;  %v470_v54 = vld [vmem:[#allocation2 + $0xcd8] sm:$0xff]  ;;  %v504_v55 = vld [vmem:[#allocation2 + $0xde8] sm:$0xff] }
 0x174   :  { %1998 = vmatpush.msra.mxu1 %v362_v4  ;;  %2019 = vmatpush.msra.mxu2 %v392_v3  ;;  %v534_v56 = vld [vmem:[#allocation2 + $0xed8] sm:$0xff]  ;;  %v532_v0 = vld [vmem:[#allocation2 + $0xec8] sm:$0xff] }
 0x175   :  { %2038 = vmatpush.msra.mxu3 %v426_v5  ;;  %1980 = vmatpush.msra.mxu0 %v326_v6  ;;  %v502_v57 = vld [vmem:[#allocation2 + $0xdd8] sm:$0xff]  ;;  %v564_v60 = vld [vmem:[#allocation2 + $0xfc8] sm:$0xff] }
 0x176   :  { %1999 = vmatpush.msra.mxu1 %v360_v7  ;;  %2020 = vmatpush.msra.mxu2 %v390_v10  ;;  %v566_v58 = vld [vmem:[#allocation2 + $0xfd8] sm:$0xff]  ;;  %v464_v1 = vld [vmem:[#allocation2 + $0xca8] sm:$0xff] }
 0x177   :  { %2039 = vmatpush.msra.mxu3 %v424_v11  ;;  %1981 = vmatpush.msra.mxu0 %v324_v12  ;;  %v466_v59 = vld [vmem:[#allocation2 + $0xcb8] sm:$0xff]  ;;  %v528_v61 = vld [vmem:[#allocation2 + $0xea8] sm:$0xff] }
 0x178   :  { %2000 = vmatpush.msra.mxu1 %v358_v13  ;;  %2021 = vmatpush.msra.mxu2 %v388_v16  ;;  %v498_v2 = vld [vmem:[#allocation2 + $0xdb8] sm:$0xff]  ;;  %v496_v4 = vld [vmem:[#allocation2 + $0xda8] sm:$0xff] }
 0x179   :  { %2040 = vmatpush.msra.mxu3 %v422_v17  ;;  %1982 = vmatpush.msra.mxu0 %v322_v18  ;;  %v562_v62 = vld [vmem:[#allocation2 + $0xfb8] sm:$0xff]  ;;  %v560_v5 = vld [vmem:[#allocation2 + $0xfa8] sm:$0xff] }
 0x17a   :  { %2001 = vmatpush.msra.mxu1 %v356_v19  ;;  %2022 = vmatpush.msra.mxu2 %v386_v20  ;;  %v462_v63 = vld [vmem:[#allocation2 + $0xc98] sm:$0xff]  ;;  %v460_v6 = vld [vmem:[#allocation2 + $0xc88] sm:$0xff] }
 0x17b   :  { %2041 = vmatpush.msra.mxu3 %v420_v21  ;;  %1983 = vmatpush.msra.mxu0 %v320_v22  ;;  %v526_v3 = vld [vmem:[#allocation2 + $0xe98] sm:$0xff]  ;;  %v524_v10 = vld [vmem:[#allocation2 + $0xe88] sm:$0xff] }
 0x17c   :  { %2002 = vmatpush.msra.mxu1 %v354_v23  ;;  %2023 = vmatpush.msra.mxu2 %v384_v24  ;;  %v494_v7 = vld [vmem:[#allocation2 + $0xd98] sm:$0xff]  ;;  %v492_v13 = vld [vmem:[#allocation2 + $0xd88] sm:$0xff] }
 0x17d   :  { %2042 = vmatpush.msra.mxu3 %v418_v25  ;;  %1984 = vmatpush.msra.mxu0 %v318_v29  ;;  %v558_v11 = vld [vmem:[#allocation2 + $0xf98] sm:$0xff]  ;;  %v556_v17 = vld [vmem:[#allocation2 + $0xf88] sm:$0xff] }
 0x17e   :  { %2003 = vmatpush.msra.mxu1 %v352_v30  ;;  %2024 = vmatpush.msra.mxu2 %v382_v32  ;;  %v458_v12 = vld [vmem:[#allocation2 + $0xc78] sm:$0xff]  ;;  %v456_v18 = vld [vmem:[#allocation2 + $0xc68] sm:$0xff] }
 0x17f   :  { %2043 = vmatpush.msra.mxu3 %v416_v48  ;;  %1985 = vmatpush.msra.mxu0 %v316_v49  ;;  %v522_v16 = vld [vmem:[#allocation2 + $0xe78] sm:$0xff]  ;;  %v520_v20 = vld [vmem:[#allocation2 + $0xe68] sm:$0xff] }
 0x180   :  { %2004 = vmatpush.msra.mxu1 %v350_v33  ;;  %2025 = vmatpush.msra.mxu2 %v380_v34  ;;  %v490_v19 = vld [vmem:[#allocation2 + $0xd78] sm:$0xff]  ;;  %v488_v23 = vld [vmem:[#allocation2 + $0xd68] sm:$0xff] }
 0x181   :  { %2044 = vmatpush.msra.mxu3 %v414_v35  ;;  %1986 = vmatmul.f32.vlgmr.msra.gmra.mxu0 %v2741_v26  ;;  %v568_v26 = vld [vmem:[#allocation2 + $0xfe8] sm:$0xff]  ;;  %v554_v21 = vld [vmem:[#allocation2 + $0xf78] sm:$0xff] }
 0x182   :  { %2026 = vmatmul.f32.vlgmr.msra.gmra.mxu2 %v2743_v27  ;;  %2050 = vmatpush.msrb.mxu0 %v474_v36  ;;  %v468_v27 = vld [vmem:[#allocation2 + $0xcc8] sm:$0xff]  ;;  %v454_v22 = vld [vmem:[#allocation2 + $0xc58] sm:$0xff] }
 0x183   :  { %2090 = vmatpush.msrb.mxu2 %v538_v50  ;;  %2005 = vmatpush.msra.mxu1 %v348_v51  ;;  %v518_v24 = vld [vmem:[#allocation2 + $0xe58] sm:$0xff]  ;;  %v552_v25 = vld [vmem:[#allocation2 + $0xf68] sm:$0xff] }
 0x184   :  { %2045 = vmatpush.msra.mxu3 %v412_v39  ;;  %2006 = vmatmul.f32.vlgmr.msra.gmra.mxu1 %v2745_v28  ;;  %v500_v28 = vld [vmem:[#allocation2 + $0xdc8] sm:$0xff]  ;;  %v486_v30 = vld [vmem:[#allocation2 + $0xd58] sm:$0xff] }
 0x185   :  { %2046 = vmatmul.f32.vlgmr.msra.gmra.mxu3 %v2750_v31  ;;  %2051 = vmatpush.msrb.mxu0 %v472_v43  ;;  %v530_v31 = vld [vmem:[#allocation2 + $0xeb8] sm:$0xff]  ;;  %v452_v29 = vld [vmem:[#allocation2 + $0xc48] sm:$0xff] }
 0x186   :  { %2070 = vmatpush.msrb.mxu1 %v506_v44  ;;  %2091 = vmatpush.msrb.mxu2 %v536_v46  ;;  %v516_v32 = vld [vmem:[#allocation2 + $0xe48] sm:$0xff]  ;;  %v550_v48 = vld [vmem:[#allocation2 + $0xf58] sm:$0xff] }
 0x187   :  { %2110 = vmatpush.msrb.mxu3 %v570_v53  ;;  %2052 = vmatpush.msrb.mxu0 %v470_v54  ;;  %v450_v49 = vld [vmem:[#allocation2 + $0xc38] sm:$0xff]  ;;  %v484_v33 = vld [vmem:[#allocation2 + $0xd48] sm:$0xff] }
 0x188   :  { %2071 = vmatpush.msrb.mxu1 %v504_v55  ;;  %2092 = vmatpush.msrb.mxu2 %v534_v56  ;;  %v514_v34 = vld [vmem:[#allocation2 + $0xe38] sm:$0xff]  ;;  %v548_v35 = vld [vmem:[#allocation2 + $0xf48] sm:$0xff] }
 0x189   :  { %2111 = vmatpush.msrb.mxu3 %v568_v26  ;;  %2053 = vmatpush.msrb.mxu0 %v468_v27  ;;  %v448_v36 = vld [vmem:[#allocation2 + $0xc28] sm:$0xff]  ;;  %v482_v50 = vld [vmem:[#allocation2 + $0xd38] sm:$0xff] }
 0x18a   :  { %2072 = vmatpush.msrb.mxu1 %v502_v57  ;;  %2093 = vmatpush.msrb.mxu2 %v532_v0  ;;  %v512_v51 = vld [vmem:[#allocation2 + $0xe28] sm:$0xff]  ;;  %v546_v39 = vld [vmem:[#allocation2 + $0xf38] sm:$0xff] }
 0x18b   :  { %2112 = vmatpush.msrb.mxu3 %v566_v58  ;;  %2054 = vmatpush.msrb.mxu0 %v466_v59  ;;  %v446_v43 = vld [vmem:[#allocation2 + $0xc18] sm:$0xff]  ;;  %v480_v44 = vld [vmem:[#allocation2 + $0xd28] sm:$0xff] }
 0x18c   :  { %2073 = vmatpush.msrb.mxu1 %v500_v28  ;;  %2094 = vmatpush.msrb.mxu2 %v530_v31  ;;  %v510_v46 = vld [vmem:[#allocation2 + $0xe18] sm:$0xff]  ;;  %v544_v53 = vld [vmem:[#allocation2 + $0xf28] sm:$0xff] }
 0x18d   :  { %2113 = vmatpush.msrb.mxu3 %v564_v60  ;;  %2055 = vmatpush.msrb.mxu0 %v464_v1  ;;  %v444_v54 = vld [vmem:[#allocation2 + $0xc08] sm:$0xff]  ;;  %v478_v55 = vld [vmem:[#allocation2 + $0xd18] sm:$0xff] }
 0x18e   :  { %2074 = vmatpush.msrb.mxu1 %v498_v2  ;;  %2095 = vmatpush.msrb.mxu2 %v528_v61  ;;  %v508_v56 = vld [vmem:[#allocation2 + $0xe08] sm:$0xff]  ;;  %v542_v26 = vld [vmem:[#allocation2 + $0xf18] sm:$0xff] }
 0x18f   :  { %2114 = vmatpush.msrb.mxu3 %v562_v62  ;;  %2056 = vmatpush.msrb.mxu0 %v462_v63  ;;  %v602_v27 = vld [vmem:[#allocation2 + $0x10f8] sm:$0xff]  ;;  %v476_v0 = vld [vmem:[#allocation2 + $0xd08] sm:$0xff] }
 0x190   :  { %2075 = vmatpush.msrb.mxu1 %v496_v4  ;;  %2096 = vmatpush.msrb.mxu2 %v526_v3  ;;  %v666_v57 = vld [vmem:[#allocation2 + $0x12f8] sm:$0xff]  ;;  %v540_v58 = vld [vmem:[#allocation2 + $0xf08] sm:$0xff] }
 0x191   :  { %2115 = vmatpush.msrb.mxu3 %v560_v5  ;;  %2057 = vmatpush.msrb.mxu0 %v460_v6  ;;  %v600_v59 = vld [vmem:[#allocation2 + $0x10e8] sm:$0xff]  ;;  %v634_v28 = vld [vmem:[#allocation2 + $0x11f8] sm:$0xff] }
 0x192   :  { %2076 = vmatpush.msrb.mxu1 %v494_v7  ;;  %2097 = vmatpush.msrb.mxu2 %v524_v10  ;;  %v664_v31 = vld [vmem:[#allocation2 + $0x12e8] sm:$0xff]  ;;  %v698_v60 = vld [vmem:[#allocation2 + $0x13f8] sm:$0xff] }
 0x193   :  { %2116 = vmatpush.msrb.mxu3 %v558_v11  ;;  %2058 = vmatpush.msrb.mxu0 %v458_v12  ;;  %v598_v1 = vld [vmem:[#allocation2 + $0x10d8] sm:$0xff]  ;;  %v632_v2 = vld [vmem:[#allocation2 + $0x11e8] sm:$0xff] }
 0x194   :  { %2077 = vmatpush.msrb.mxu1 %v492_v13  ;;  %2098 = vmatpush.msrb.mxu2 %v522_v16  ;;  %v662_v61 = vld [vmem:[#allocation2 + $0x12d8] sm:$0xff]  ;;  %v660_v63 = vld [vmem:[#allocation2 + $0x12c8] sm:$0xff] }
 0x195   :  { %2117 = vmatpush.msrb.mxu3 %v556_v17  ;;  %2059 = vmatpush.msrb.mxu0 %v456_v18  ;;  %v630_v62 = vld [vmem:[#allocation2 + $0x11d8] sm:$0xff]  ;;  %v692_v5 = vld [vmem:[#allocation2 + $0x13c8] sm:$0xff] }
 0x196   :  { %2078 = vmatpush.msrb.mxu1 %v490_v19  ;;  %2099 = vmatpush.msrb.mxu2 %v520_v20  ;;  %v694_v4 = vld [vmem:[#allocation2 + $0x13d8] sm:$0xff]  ;;  %v592_v6 = vld [vmem:[#allocation2 + $0x10a8] sm:$0xff] }
 0x197   :  { %2118 = vmatpush.msrb.mxu3 %v554_v21  ;;  %2060 = vmatpush.msrb.mxu0 %v454_v22  ;;  %v594_v3 = vld [vmem:[#allocation2 + $0x10b8] sm:$0xff]  ;;  %v656_v10 = vld [vmem:[#allocation2 + $0x12a8] sm:$0xff] }
 0x198   :  { %2079 = vmatpush.msrb.mxu1 %v488_v23  ;;  %2100 = vmatpush.msrb.mxu2 %v518_v24  ;;  %v626_v7 = vld [vmem:[#allocation2 + $0x11b8] sm:$0xff]  ;;  %v624_v13 = vld [vmem:[#allocation2 + $0x11a8] sm:$0xff] }
 0x199   :  { %2119 = vmatpush.msrb.mxu3 %v552_v25  ;;  %2061 = vmatpush.msrb.mxu0 %v452_v29  ;;  %v690_v11 = vld [vmem:[#allocation2 + $0x13b8] sm:$0xff]  ;;  %v688_v17 = vld [vmem:[#allocation2 + $0x13a8] sm:$0xff] }
 0x19a   :  { %2080 = vmatpush.msrb.mxu1 %v486_v30  ;;  %2101 = vmatpush.msrb.mxu2 %v516_v32  ;;  %v590_v12 = vld [vmem:[#allocation2 + $0x1098] sm:$0xff]  ;;  %v588_v18 = vld [vmem:[#allocation2 + $0x1088] sm:$0xff] }
 0x19b   :  { %2120 = vmatpush.msrb.mxu3 %v550_v48  ;;  %2062 = vmatpush.msrb.mxu0 %v450_v49  ;;  %v654_v16 = vld [vmem:[#allocation2 + $0x1298] sm:$0xff]  ;;  %v652_v20 = vld [vmem:[#allocation2 + $0x1288] sm:$0xff] }
 0x19c   :  { %2081 = vmatpush.msrb.mxu1 %v484_v33  ;;  %2102 = vmatpush.msrb.mxu2 %v514_v34  ;;  %v622_v19 = vld [vmem:[#allocation2 + $0x1198] sm:$0xff]  ;;  %v620_v23 = vld [vmem:[#allocation2 + $0x1188] sm:$0xff] }
 0x19d   :  { %2121 = vmatpush.msrb.mxu3 %v548_v35  ;;  %2063 = vmatpush.msrb.mxu0 %v448_v36  ;;  %v686_v21 = vld [vmem:[#allocation2 + $0x1398] sm:$0xff]  ;;  %v684_v25 = vld [vmem:[#allocation2 + $0x1388] sm:$0xff] }
 0x19e   :  { %2082 = vmatpush.msrb.mxu1 %v482_v50  ;;  %2103 = vmatpush.msrb.mxu2 %v512_v51  ;;  %v586_v22 = vld [vmem:[#allocation2 + $0x1078] sm:$0xff]  ;;  %v584_v29 = vld [vmem:[#allocation2 + $0x1068] sm:$0xff] }
 0x19f   :  { %2122 = vmatpush.msrb.mxu3 %v546_v39  ;;  %2064 = vmatpush.msrb.mxu0 %v446_v43  ;;  %v650_v24 = vld [vmem:[#allocation2 + $0x1278] sm:$0xff]  ;;  %v648_v32 = vld [vmem:[#allocation2 + $0x1268] sm:$0xff] }
 0x1a0   :  { %2083 = vmatpush.msrb.mxu1 %v480_v44  ;;  %2104 = vmatpush.msrb.mxu2 %v510_v46  ;;  %v618_v30 = vld [vmem:[#allocation2 + $0x1178] sm:$0xff]  ;;  %v616_v33 = vld [vmem:[#allocation2 + $0x1168] sm:$0xff] }
 0x1a1   :  { %2123 = vmatpush.msrb.mxu3 %v544_v53  ;;  %2065 = vmatpush.msrb.mxu0 %v444_v54  ;;  %v682_v48 = vld [vmem:[#allocation2 + $0x1378] sm:$0xff]  ;;  %v680_v35 = vld [vmem:[#allocation2 + $0x1368] sm:$0xff] }
 0x1a2   :  { %2084 = vmatpush.msrb.mxu1 %v478_v55  ;;  %2105 = vmatpush.msrb.mxu2 %v508_v56  ;;  %v582_v49 = vld [vmem:[#allocation2 + $0x1058] sm:$0xff]  ;;  %v580_v36 = vld [vmem:[#allocation2 + $0x1048] sm:$0xff] }
 0x1a3   :  { %2124 = vmatpush.msrb.mxu3 %v542_v26  ;;  %2066 = vmatmul.f32.vlgmr.msrb.gmra.mxu0 %v2760_v40  ;;  %v696_v40 = vld [vmem:[#allocation2 + $0x13e8] sm:$0xff]  ;;  %v646_v34 = vld [vmem:[#allocation2 + $0x1258] sm:$0xff] }
 0x1a4   :  { %2106 = vmatmul.f32.vlgmr.msrb.gmra.mxu2 %v2762_v41  ;;  %2130 = vmatpush.msra.mxu0 %v602_v27  ;;  %v596_v41 = vld [vmem:[#allocation2 + $0x10c8] sm:$0xff]  ;;  %v614_v50 = vld [vmem:[#allocation2 + $0x1158] sm:$0xff] }
 0x1a5   :  { %2170 = vmatpush.msra.mxu2 %v666_v57  ;;  %2085 = vmatpush.msrb.mxu1 %v476_v0  ;;  %v644_v51 = vld [vmem:[#allocation2 + $0x1248] sm:$0xff]  ;;  %v678_v39 = vld [vmem:[#allocation2 + $0x1358] sm:$0xff] }
 0x1a6   :  { %2125 = vmatpush.msrb.mxu3 %v540_v58  ;;  %2086 = vmatmul.f32.vlgmr.msrb.gmra.mxu1 %v2764_v42  ;;  %v628_v42 = vld [vmem:[#allocation2 + $0x11c8] sm:$0xff]  ;;  %v578_v43 = vld [vmem:[#allocation2 + $0x1038] sm:$0xff] }
 0x1a7   :  { %2126 = vmatmul.f32.vlgmr.msrb.gmra.mxu3 %v2769_v45  ;;  %2131 = vmatpush.msra.mxu0 %v600_v59  ;;  %v658_v45 = vld [vmem:[#allocation2 + $0x12b8] sm:$0xff]  ;;  %v612_v44 = vld [vmem:[#allocation2 + $0x1148] sm:$0xff] }
 0x1a8   :  { %2150 = vmatpush.msra.mxu1 %v634_v28  ;;  %2171 = vmatpush.msra.mxu2 %v664_v31  ;;  %v642_v46 = vld [vmem:[#allocation2 + $0x1238] sm:$0xff]  ;;  %v676_v53 = vld [vmem:[#allocation2 + $0x1348] sm:$0xff] }
 0x1a9   :  { %2190 = vmatpush.msra.mxu3 %v698_v60  ;;  %2132 = vmatpush.msra.mxu0 %v598_v1  ;;  %v576_v54 = vld [vmem:[#allocation2 + $0x1028] sm:$0xff]  ;;  %v610_v55 = vld [vmem:[#allocation2 + $0x1138] sm:$0xff]  ;;  %v1083_v1 = vld [vmem:[#allocation5] sm:$0x3] }
 0x1aa   :  { %2151 = vmatpush.msra.mxu1 %v632_v2  ;;  %2172 = vmatpush.msra.mxu2 %v662_v61  ;;  %v640_v56 = vld [vmem:[#allocation2 + $0x1228] sm:$0xff]  ;;  %v674_v26 = vld [vmem:[#allocation2 + $0x1338] sm:$0xff] }
 0x1ab   :  { %2191 = vmatpush.msra.mxu3 %v696_v40  ;;  %2133 = vmatpush.msra.mxu0 %v596_v41  ;;  %v574_v27 = vld [vmem:[#allocation2 + $0x1018] sm:$0xff]  ;;  %v608_v57 = vld [vmem:[#allocation2 + $0x1128] sm:$0xff] }
 0x1ac   :  { %2152 = vmatpush.msra.mxu1 %v630_v62  ;;  %2173 = vmatpush.msra.mxu2 %v660_v63  ;;  %v638_v0 = vld [vmem:[#allocation2 + $0x1218] sm:$0xff]  ;;  %v672_v58 = vld [vmem:[#allocation2 + $0x1328] sm:$0xff]  ;;  %v1085_v62 = vperm.slane %v1083_v1, 0  ;;  %v1187_v63 = vpop.f32.mrf.mxu0 }
 0x1ad   :  { %2192 = vmatpush.msra.mxu3 %v694_v4  ;;  %2134 = vmatpush.msra.mxu0 %v594_v3  ;;  %v572_v59 = vld [vmem:[#allocation2 + $0x1008] sm:$0xff]  ;;  %v606_v28 = vld [vmem:[#allocation2 + $0x1118] sm:$0xff] }
 0x1ae   :  { %2153 = vmatpush.msra.mxu1 %v628_v42  ;;  %2174 = vmatpush.msra.mxu2 %v658_v45  ;;  %v636_v31 = vld [vmem:[#allocation2 + $0x1208] sm:$0xff]  ;;  %v670_v60 = vld [vmem:[#allocation2 + $0x1318] sm:$0xff] }
 0x1af   :  { %2193 = vmatpush.msra.mxu3 %v692_v5  ;;  %2135 = vmatpush.msra.mxu0 %v592_v6  ;;  %v730_v2 = vld [vmem:[#allocation2 + $0x14f8] sm:$0xff]  ;;  %v604_v40 = vld [vmem:[#allocation2 + $0x1108] sm:$0xff] }
 0x1b0   :  { %2154 = vmatpush.msra.mxu1 %v626_v7  ;;  %2175 = vmatpush.msra.mxu2 %v656_v10  ;;  %v794_v61 = vld [vmem:[#allocation2 + $0x16f8] sm:$0xff]  ;;  %v668_v41 = vld [vmem:[#allocation2 + $0x1308] sm:$0xff]  ;;  %v1188_v7 = vadd.f32 %v1187_v63, %v1085_v62  ;;  %v1207_v10 = vpop.f32.mrf.mxu1 }
 0x1b1   :  { %2194 = vmatpush.msra.mxu3 %v690_v11  ;;  %2136 = vmatpush.msra.mxu0 %v590_v12  ;;  %v728_v4 = vld [vmem:[#allocation2 + $0x14e8] sm:$0xff]  ;;  %v762_v3 = vld [vmem:[#allocation2 + $0x15f8] sm:$0xff] }
 0x1b2   :  { %2155 = vmatpush.msra.mxu1 %v624_v13  ;;  %2176 = vmatpush.msra.mxu2 %v654_v16  ;;  %v792_v42 = vld [vmem:[#allocation2 + $0x16e8] sm:$0xff]  ;;  %v826_v45 = vld [vmem:[#allocation2 + $0x17f8] sm:$0xff] }
 0x1b3   :  { %2195 = vmatpush.msra.mxu3 %v688_v17  ;;  %2137 = vmatpush.msra.mxu0 %v588_v18  ;;  %v726_v5 = vld [vmem:[#allocation2 + $0x14d8] sm:$0xff]  ;;  %v760_v6 = vld [vmem:[#allocation2 + $0x15e8] sm:$0xff]  ;;  %v1208_v17 = vadd.f32 %v1207_v10, %v1188_v7 }
 0x1b4   :  { %2156 = vmatpush.msra.mxu1 %v622_v19  ;;  %2177 = vmatpush.msra.mxu2 %v652_v20  ;;  %v724_v11 = vld [vmem:[#allocation2 + $0x14c8] sm:$0xff]  ;;  %v758_v12 = vld [vmem:[#allocation2 + $0x15d8] sm:$0xff]  ;;  %v1227_v20 = vpop.f32.mrf.mxu2 }
 0x1b5   :  { %2196 = vmatpush.msra.mxu3 %v686_v21  ;;  %2138 = vmatpush.msra.mxu0 %v586_v22  ;;  %v788_v13 = vld [vmem:[#allocation2 + $0x16c8] sm:$0xff]  ;;  %v822_v16 = vld [vmem:[#allocation2 + $0x17d8] sm:$0xff] }
 0x1b6   :  { %2157 = vmatpush.msra.mxu1 %v620_v23  ;;  %2178 = vmatpush.msra.mxu2 %v650_v24  ;;  %v786_v18 = vld [vmem:[#allocation2 + $0x16b8] sm:$0xff]  ;;  %v820_v19 = vld [vmem:[#allocation2 + $0x17c8] sm:$0xff] }
 0x1b7   :  { %2197 = vmatpush.msra.mxu3 %v684_v25  ;;  %2139 = vmatpush.msra.mxu0 %v584_v29  ;;  %v720_v21 = vld [vmem:[#allocation2 + $0x14a8] sm:$0xff]  ;;  %v754_v22 = vld [vmem:[#allocation2 + $0x15b8] sm:$0xff] }
 0x1b8   :  { %2158 = vmatpush.msra.mxu1 %v618_v30  ;;  %2179 = vmatpush.msra.mxu2 %v648_v32  ;;  %v784_v23 = vld [vmem:[#allocation2 + $0x16a8] sm:$0xff]  ;;  %v818_v24 = vld [vmem:[#allocation2 + $0x17b8] sm:$0xff]  ;;  %v1228_v30 = vadd.f32 %v1227_v20, %v1208_v17 }
 0x1b9   :  { %2198 = vmatpush.msra.mxu3 %v682_v48  ;;  %2140 = vmatpush.msra.mxu0 %v582_v49  ;;  %v718_v25 = vld [vmem:[#allocation2 + $0x1498] sm:$0xff]  ;;  %v752_v29 = vld [vmem:[#allocation2 + $0x15a8] sm:$0xff]  ;;  %v1247_v49 = vpop.f32.mrf.mxu3 }
 0x1ba   :  { %2159 = vmatpush.msra.mxu1 %v616_v33  ;;  %2180 = vmatpush.msra.mxu2 %v646_v34  ;;  %v782_v32 = vld [vmem:[#allocation2 + $0x1698] sm:$0xff]  ;;  %v816_v48 = vld [vmem:[#allocation2 + $0x17a8] sm:$0xff] }
 0x1bb   :  { %2199 = vmatpush.msra.mxu3 %v680_v35  ;;  %2141 = vmatpush.msra.mxu0 %v580_v36  ;;  %v716_v33 = vld [vmem:[#allocation2 + $0x1488] sm:$0xff]  ;;  %v750_v34 = vld [vmem:[#allocation2 + $0x1598] sm:$0xff] }
 0x1bc   :  { %2160 = vmatpush.msra.mxu1 %v614_v50  ;;  %2181 = vmatpush.msra.mxu2 %v644_v51  ;;  %v780_v35 = vld [vmem:[#allocation2 + $0x1688] sm:$0xff]  ;;  %v814_v36 = vld [vmem:[#allocation2 + $0x1798] sm:$0xff]  ;;  %v1307_v63 = vpop.f32.mrf.mxu2 }
 0x1bd   :  { %2200 = vmatpush.msra.mxu3 %v678_v39  ;;  %2142 = vmatpush.msra.mxu0 %v578_v43  ;;  %v714_v50 = vld [vmem:[#allocation2 + $0x1478] sm:$0xff]  ;;  %v748_v51 = vld [vmem:[#allocation2 + $0x1588] sm:$0xff]  ;;  %v1248_v39 = vadd.f32 %v1247_v49, %v1228_v30 }
 0x1be   :  { %2161 = vmatpush.msra.mxu1 %v612_v44  ;;  %2182 = vmatpush.msra.mxu2 %v642_v46  ;;  %v778_v43 = vld [vmem:[#allocation2 + $0x1678] sm:$0xff]  ;;  %v812_v44 = vld [vmem:[#allocation2 + $0x1788] sm:$0xff]  ;;  %v1267_v46 = vpop.f32.mrf.mxu0 }
 0x1bf   :  { %2201 = vmatpush.msra.mxu3 %v676_v53  ;;  %2143 = vmatpush.msra.mxu0 %v576_v54  ;;  %v712_v53 = vld [vmem:[#allocation2 + $0x1468] sm:$0xff]  ;;  %v746_v54 = vld [vmem:[#allocation2 + $0x1578] sm:$0xff] }
 0x1c0   :  { %2162 = vmatpush.msra.mxu1 %v610_v55  ;;  %2183 = vmatpush.msra.mxu2 %v640_v56  ;;  %v776_v55 = vld [vmem:[#allocation2 + $0x1668] sm:$0xff]  ;;  %v810_v56 = vld [vmem:[#allocation2 + $0x1778] sm:$0xff] }
 0x1c1   :  { %2202 = vmatpush.msra.mxu3 %v674_v26  ;;  %2144 = vmatpush.msra.mxu0 %v574_v27  ;;  %v710_v26 = vld [vmem:[#allocation2 + $0x1458] sm:$0xff]  ;;  %v744_v27 = vld [vmem:[#allocation2 + $0x1568] sm:$0xff]  ;;  %v1327_v10 = vpop.f32.mrf.mxu3 }
 0x1c2   :  { %2163 = vmatpush.msra.mxu1 %v608_v57  ;;  %2184 = vmatpush.msra.mxu2 %v638_v0  ;;  %v1268_v57 = vadd.f32 %v1267_v46, %v1248_v39  ;;  %v774_v0 = vld [vmem:[#allocation2 + $0x1658] sm:$0xff]  ;;  %v804_v62 = vld [vmem:[#allocation2 + $0x1748] sm:$0xff] }
 0x1c3   :  { %2203 = vmatpush.msra.mxu3 %v672_v58  ;;  %2145 = vmatpush.msra.mxu0 %v572_v59  ;;  %v808_v58 = vld [vmem:[#allocation2 + $0x1768] sm:$0xff]  ;;  %v1287_v59 = vpop.f32.mrf.mxu1  ;;  %v806_v1 = vld [vmem:[#allocation2 + $0x1758] sm:$0xff] }
 0x1c4   :  { %2164 = vmatpush.msra.mxu1 %v606_v28  ;;  %2185 = vmatpush.msra.mxu2 %v636_v31  ;;  %v708_v28 = vld [vmem:[#allocation2 + $0x1448] sm:$0xff]  ;;  %v742_v31 = vld [vmem:[#allocation2 + $0x1558] sm:$0xff]  ;;  %v1387_v30 = vpop.f32.mrf.mxu2 }
 0x1c5   :  { %2204 = vmatpush.msra.mxu3 %v670_v60  ;;  %2146 = vmatmul.f32.vlgmr.msra.gmra.mxu0 %v2775_v8  ;;  %v790_v8 = vld [vmem:[#allocation2 + $0x16d8] sm:$0xff]  ;;  %v772_v60 = vld [vmem:[#allocation2 + $0x1648] sm:$0xff] }
 0x1c6   :  { %2186 = vmatmul.f32.vlgmr.msra.gmra.mxu2 %v2777_v9  ;;  %2210 = vmatpush.msrb.mxu0 %v730_v2  ;;  %v824_v9 = vld [vmem:[#allocation2 + $0x17e8] sm:$0xff]  ;;  %v706_v2 = vld [vmem:[#allocation2 + $0x1438] sm:$0xff] }
 0x1c7   :  { %2250 = vmatpush.msrb.mxu2 %v794_v61  ;;  %2165 = vmatpush.msra.mxu1 %v604_v40  ;;  %v740_v61 = vld [vmem:[#allocation2 + $0x1548] sm:$0xff]  ;;  %v1288_v40 = vadd.f32 %v1287_v59, %v1268_v57  ;;  %v858_v17 = vld [vmem:[#allocation2 + $0x18f8] sm:$0xff] }
 0x1c8   :  { %2205 = vmatpush.msra.mxu3 %v668_v41  ;;  %2166 = vmatmul.f32.vlgmr.msra.gmra.mxu1 %v2781_v14  ;;  %v722_v14 = vld [vmem:[#allocation2 + $0x14b8] sm:$0xff]  ;;  %v796_v20 = vld [vmem:[#allocation2 + $0x1708] sm:$0xff] }
 0x1c9   :  { %2206 = vmatmul.f32.vlgmr.msra.gmra.mxu3 %v2783_v15  ;;  %2211 = vmatpush.msrb.mxu0 %v728_v4  ;;  %v756_v15 = vld [vmem:[#allocation2 + $0x15c8] sm:$0xff]  ;;  %v770_v41 = vld [vmem:[#allocation2 + $0x1638] sm:$0xff]  ;;  %v1308_v7 = vadd.f32 %v1307_v63, %v1288_v40 }
 0x1ca   :  { %2230 = vmatpush.msrb.mxu1 %v762_v3  ;;  %2251 = vmatpush.msrb.mxu2 %v792_v42  ;;  %v704_v4 = vld [vmem:[#allocation2 + $0x1428] sm:$0xff]  ;;  %v738_v3 = vld [vmem:[#allocation2 + $0x1538] sm:$0xff] }
 0x1cb   :  { %2270 = vmatpush.msrb.mxu3 %v826_v45  ;;  %2212 = vmatpush.msrb.mxu0 %v726_v5  ;;  %v768_v42 = vld [vmem:[#allocation2 + $0x1628] sm:$0xff]  ;;  %v802_v45 = vld [vmem:[#allocation2 + $0x1738] sm:$0xff] }
 0x1cc   :  { %2231 = vmatpush.msrb.mxu1 %v760_v6  ;;  %2252 = vmatpush.msrb.mxu2 %v790_v8  ;;  %v702_v5 = vld [vmem:[#allocation2 + $0x1418] sm:$0xff]  ;;  %v736_v6 = vld [vmem:[#allocation2 + $0x1528] sm:$0xff] }
 0x1cd   :  { %2271 = vmatpush.msrb.mxu3 %v824_v9  ;;  %2213 = vmatpush.msrb.mxu0 %v724_v11  ;;  %v766_v8 = vld [vmem:[#allocation2 + $0x1618] sm:$0xff]  ;;  %v800_v9 = vld [vmem:[#allocation2 + $0x1728] sm:$0xff] }
 0x1ce   :  { %2232 = vmatpush.msrb.mxu1 %v758_v12  ;;  %2253 = vmatpush.msrb.mxu2 %v788_v13  ;;  %v700_v11 = vld [vmem:[#allocation2 + $0x1408] sm:$0xff]  ;;  %v734_v12 = vld [vmem:[#allocation2 + $0x1518] sm:$0xff] }
 0x1cf   :  { %2272 = vmatpush.msrb.mxu3 %v822_v16  ;;  %2214 = vmatpush.msrb.mxu0 %v722_v14  ;;  %v764_v13 = vld [vmem:[#allocation2 + $0x1608] sm:$0xff]  ;;  %v798_v16 = vld [vmem:[#allocation2 + $0x1718] sm:$0xff]  ;;  %v1347_v14 = vpop.f32.mrf.mxu0 }
 0x1d0   :  { %2233 = vmatpush.msrb.mxu1 %v756_v15  ;;  %2254 = vmatpush.msrb.mxu2 %v786_v18  ;;  %v1328_v15 = vadd.f32 %v1327_v10, %v1308_v7  ;;  %v922_v18 = vld [vmem:[#allocation2 + $0x1af8] sm:$0xff]  ;;  %v848_v46 = vld [vmem:[#allocation2 + $0x18a8] sm:$0xff] }
 0x1d1   :  { %2273 = vmatpush.msrb.mxu3 %v820_v19  ;;  %2215 = vmatpush.msrb.mxu0 %v720_v21  ;;  %v732_v19 = vld [vmem:[#allocation2 + $0x1508] sm:$0xff]  ;;  %v914_v39 = vld [vmem:[#allocation2 + $0x1ab8] sm:$0xff] }
 0x1d2   :  { %2234 = vmatpush.msrb.mxu1 %v754_v22  ;;  %2255 = vmatpush.msrb.mxu2 %v784_v23  ;;  %v1348_v21 = vadd.f32 %v1347_v14, %v1328_v15  ;;  %v1367_v22 = vpop.f32.mrf.mxu1  ;;  %v856_v23 = vld [vmem:[#allocation2 + $0x18e8] sm:$0xff]  ;;  %v838_v7 = vld [vmem:[#allocation2 + $0x1858] sm:$0xff] }
 0x1d3   :  { %2274 = vmatpush.msrb.mxu3 %v818_v24  ;;  %2216 = vmatpush.msrb.mxu0 %v718_v25  ;;  %v890_v24 = vld [vmem:[#allocation2 + $0x19f8] sm:$0xff]  ;;  %v920_v25 = vld [vmem:[#allocation2 + $0x1ae8] sm:$0xff] }
 0x1d4   :  { %2235 = vmatpush.msrb.mxu1 %v752_v29  ;;  %2256 = vmatpush.msrb.mxu2 %v782_v32  ;;  %v954_v29 = vld [vmem:[#allocation2 + $0x1bf8] sm:$0xff]  ;;  %v1368_v49 = vadd.f32 %v1367_v22, %v1348_v21  ;;  %v876_v40 = vld [vmem:[#allocation2 + $0x1988] sm:$0xff] }
 0x1d5   :  { %2275 = vmatpush.msrb.mxu3 %v816_v48  ;;  %2217 = vmatpush.msrb.mxu0 %v716_v33  ;;  %v854_v32 = vld [vmem:[#allocation2 + $0x18d8] sm:$0xff]  ;;  %v888_v48 = vld [vmem:[#allocation2 + $0x19e8] sm:$0xff] }
 0x1d6   :  { %2236 = vmatpush.msrb.mxu1 %v750_v34  ;;  %2257 = vmatpush.msrb.mxu2 %v780_v35  ;;  %v852_v33 = vld [vmem:[#allocation2 + $0x18c8] sm:$0xff]  ;;  %v886_v34 = vld [vmem:[#allocation2 + $0x19d8] sm:$0xff]  ;;  %v1388_v35 = vadd.f32 %v1387_v30, %v1368_v49 }
 0x1d7   :  { %2276 = vmatpush.msrb.mxu3 %v814_v36  ;;  %2218 = vmatpush.msrb.mxu0 %v714_v50  ;;  %v916_v36 = vld [vmem:[#allocation2 + $0x1ac8] sm:$0xff]  ;;  %v950_v50 = vld [vmem:[#allocation2 + $0x1bd8] sm:$0xff] }
 0x1d8   :  { %2237 = vmatpush.msrb.mxu1 %v748_v51  ;;  %2258 = vmatpush.msrb.mxu2 %v778_v43  ;;  %v1407_v51 = vpop.f32.mrf.mxu3  ;;  %v948_v43 = vld [vmem:[#allocation2 + $0x1bc8] sm:$0xff]  ;;  %v934_v15 = vld [vmem:[#allocation2 + $0x1b58] sm:$0xff] }
 0x1d9   :  { %2277 = vmatpush.msrb.mxu3 %v812_v44  ;;  %2219 = vmatpush.msrb.mxu0 %v712_v53  ;;  %v1427_v44 = vpop.f32.mrf.mxu0  ;;  %v882_v53 = vld [vmem:[#allocation2 + $0x19b8] sm:$0xff]  ;;  %v940_v63 = vld [vmem:[#allocation2 + $0x1b88] sm:$0xff] }
 0x1da   :  { %2238 = vmatpush.msrb.mxu1 %v746_v54  ;;  %2259 = vmatpush.msrb.mxu2 %v776_v55  ;;  %v1408_v54 = vadd.f32 %v1407_v51, %v1388_v35  ;;  %v912_v55 = vld [vmem:[#allocation2 + $0x1aa8] sm:$0xff]  ;;  %v1447_v59 = vpop.f32.mrf.mxu1 }
 0x1db   :  { %2278 = vmatpush.msrb.mxu3 %v810_v56  ;;  %2220 = vmatpush.msrb.mxu0 %v710_v26  ;;  %v946_v56 = vld [vmem:[#allocation2 + $0x1bb8] sm:$0xff]  ;;  %v936_v10 = vld [vmem:[#allocation2 + $0x1b68] sm:$0xff] }
 0x1dc   :  { %2239 = vmatpush.msrb.mxu1 %v744_v27  ;;  %2260 = vmatpush.msrb.mxu2 %v774_v0  ;;  %v846_v26 = vld [vmem:[#allocation2 + $0x1898] sm:$0xff]  ;;  %v880_v27 = vld [vmem:[#allocation2 + $0x19a8] sm:$0xff]  ;;  %v1428_v57 = vadd.f32 %v1427_v44, %v1408_v54 }
 0x1dd   :  { %2279 = vmatpush.msrb.mxu3 %v808_v58  ;;  %2221 = vmatpush.msrb.mxu0 %v708_v28  ;;  %v910_v0 = vld [vmem:[#allocation2 + $0x1a98] sm:$0xff]  ;;  %v944_v58 = vld [vmem:[#allocation2 + $0x1ba8] sm:$0xff] }
 0x1de   :  { %2240 = vmatpush.msrb.mxu1 %v742_v31  ;;  %2261 = vmatpush.msrb.mxu2 %v772_v60  ;;  %v844_v28 = vld [vmem:[#allocation2 + $0x1888] sm:$0xff]  ;;  %v878_v31 = vld [vmem:[#allocation2 + $0x1998] sm:$0xff] }
 0x1df   :  { %2280 = vmatpush.msrb.mxu3 %v806_v1  ;;  %2222 = vmatpush.msrb.mxu0 %v706_v2  ;;  %v908_v60 = vld [vmem:[#allocation2 + $0x1a88] sm:$0xff]  ;;  %v942_v1 = vld [vmem:[#allocation2 + $0x1b98] sm:$0xff]  ;;  %v1467_v2 = vpop.f32.mrf.mxu2 }
 0x1e0   :  { %2241 = vmatpush.msrb.mxu1 %v740_v61  ;;  %2262 = vmatpush.msrb.mxu2 %v770_v41  ;;  %v842_v61 = vld [vmem:[#allocation2 + $0x1878] sm:$0xff]  ;;  %v1448_v41 = vadd.f32 %v1447_v59, %v1428_v57  ;;  %v900_v14 = vld [vmem:[#allocation2 + $0x1a48] sm:$0xff]  ;;  %v2584_v59 = vld.sshfl [vmem:[#allocation1 + $0x18] sm:$0xff pattern:$0x73625140] }
 0x1e1   :  { %2281 = vmatpush.msrb.mxu3 %v804_v62  ;;  %2223 = vmatpush.msrb.mxu0 %v704_v4  ;;  %v906_v62 = vld [vmem:[#allocation2 + $0x1a78] sm:$0xff]  ;;  %v840_v4 = vld [vmem:[#allocation2 + $0x1868] sm:$0xff] }
 0x1e2   :  { %2242 = vmatpush.msrb.mxu1 %v738_v3  ;;  %2263 = vmatpush.msrb.mxu2 %v768_v42  ;;  %v874_v3 = vld [vmem:[#allocation2 + $0x1978] sm:$0xff]  ;;  %v1468_v42 = vadd.f32 %v1467_v2, %v1448_v41  ;;  %v932_v21 = vld [vmem:[#allocation2 + $0x1b48] sm:$0xff]  ;;  %v1527_v22 = vpop.f32.mrf.mxu1 }
 0x1e3   :  { %2282 = vmatpush.msrb.mxu3 %v802_v45  ;;  %2224 = vmatpush.msrb.mxu0 %v702_v5  ;;  %v904_v45 = vld [vmem:[#allocation2 + $0x1a68] sm:$0xff]  ;;  %v938_v5 = vld [vmem:[#allocation2 + $0x1b78] sm:$0xff] }
 0x1e4   :  { %2243 = vmatpush.msrb.mxu1 %v736_v6  ;;  %2264 = vmatpush.msrb.mxu2 %v766_v8  ;;  %v1487_v6 = vpop.f32.mrf.mxu3  ;;  %v872_v8 = vld [vmem:[#allocation2 + $0x1968] sm:$0xff]  ;;  %v1082_v57 = vld [vmem:[#allocation2 + $0x1ff8] sm:$0xff] }
 0x1e5   :  { %2283 = vmatpush.msrb.mxu3 %v800_v9  ;;  %2225 = vmatpush.msrb.mxu0 %v700_v11  ;;  %v902_v9 = vld [vmem:[#allocation2 + $0x1a58] sm:$0xff]  ;;  %v1507_v11 = vpop.f32.mrf.mxu0  ;;  %v924_v44 = vld [vmem:[#allocation2 + $0x1b08] sm:$0xff] }
 0x1e6   :  { %2244 = vmatpush.msrb.mxu1 %v734_v12  ;;  %2265 = vmatpush.msrb.mxu2 %v764_v13  ;;  %v836_v12 = vld [vmem:[#allocation2 + $0x1848] sm:$0xff]  ;;  %v870_v13 = vld [vmem:[#allocation2 + $0x1958] sm:$0xff] }
 0x1e7   :  { %2284 = vmatpush.msrb.mxu3 %v798_v16  ;;  %2226 = vmatmul.f32.vlgmr.msrb.gmra.mxu0 %v2790_v37  ;;  %v918_v37 = vld [vmem:[#allocation2 + $0x1ad8] sm:$0xff]  ;;  %v1488_v16 = vadd.f32 %v1487_v6, %v1468_v42  ;;  %v1547_v30 = vpop.f32.mrf.mxu2  ;;  %v2582_v54 = vld.sshfl [vmem:[#allocation1 + $0x10] sm:$0xff pattern:$0x73625140] }
 0x1e8   :  { %2266 = vmatmul.f32.vlgmr.msrb.gmra.mxu2 %v2792_v38  ;;  %2290 = vmatpush.msra.mxu0 %v858_v17  ;;  %v952_v38 = vld [vmem:[#allocation2 + $0x1be8] sm:$0xff]  ;;  %v834_v17 = vld [vmem:[#allocation2 + $0x1838] sm:$0xff] }
 0x1e9   :  { %2330 = vmatpush.msra.mxu2 %v922_v18  ;;  %2245 = vmatpush.msrb.mxu1 %v732_v19  ;;  %v868_v18 = vld [vmem:[#allocation2 + $0x1948] sm:$0xff]  ;;  %v1508_v19 = vadd.f32 %v1507_v11, %v1488_v16 }
 0x1ea   :  { %2285 = vmatpush.msrb.mxu3 %v796_v20  ;;  %2246 = vmatmul.f32.vlgmr.msrb.gmra.mxu1 %v2796_v47  ;;  %v850_v47 = vld [vmem:[#allocation2 + $0x18b8] sm:$0xff] }
 0x1eb   :  { %2286 = vmatmul.f32.vlgmr.msrb.gmra.mxu3 %v2798_v52  ;;  %2291 = vmatpush.msra.mxu0 %v856_v23  ;;  %v884_v52 = vld [vmem:[#allocation2 + $0x19c8] sm:$0xff]  ;;  %v898_v20 = vld [vmem:[#allocation2 + $0x1a38] sm:$0xff]  ;;  %v1528_v49 = vadd.f32 %v1527_v22, %v1508_v19 }
 0x1ec   :  { %2310 = vmatpush.msra.mxu1 %v890_v24  ;;  %2331 = vmatpush.msra.mxu2 %v920_v25  ;;  %v832_v23 = vld [vmem:[#allocation2 + $0x1828] sm:$0xff]  ;;  %v866_v24 = vld [vmem:[#allocation2 + $0x1938] sm:$0xff]  ;;  %v1567_v51 = vpop.f32.mrf.mxu3 }
 0x1ed   :  { %2350 = vmatpush.msra.mxu3 %v954_v29  ;;  %2292 = vmatpush.msra.mxu0 %v854_v32  ;;  %v896_v25 = vld [vmem:[#allocation2 + $0x1a28] sm:$0xff]  ;;  %v930_v29 = vld [vmem:[#allocation2 + $0x1b38] sm:$0xff]  ;;  %v1548_v35 = vadd.f32 %v1547_v30, %v1528_v49 }
 0x1ee   :  { %2311 = vmatpush.msra.mxu1 %v888_v48  ;;  %2332 = vmatpush.msra.mxu2 %v918_v37  ;;  %v830_v32 = vld [vmem:[#allocation2 + $0x1818] sm:$0xff]  ;;  %v864_v48 = vld [vmem:[#allocation2 + $0x1928] sm:$0xff] }
 0x1ef   :  { %2351 = vmatpush.msra.mxu3 %v952_v38  ;;  %2293 = vmatpush.msra.mxu0 %v852_v33  ;;  %v894_v37 = vld [vmem:[#allocation2 + $0x1a18] sm:$0xff]  ;;  %v928_v38 = vld [vmem:[#allocation2 + $0x1b28] sm:$0xff]  ;;  %v1627_v2 = vpop.f32.mrf.mxu2 }
 0x1f0   :  { %2312 = vmatpush.msra.mxu1 %v886_v34  ;;  %2333 = vmatpush.msra.mxu2 %v916_v36  ;;  %v828_v33 = vld [vmem:[#allocation2 + $0x1808] sm:$0xff]  ;;  %v862_v34 = vld [vmem:[#allocation2 + $0x1918] sm:$0xff] }
 0x1f1   :  { %2352 = vmatpush.msra.mxu3 %v950_v50  ;;  %2294 = vmatpush.msra.mxu0 %v850_v47  ;;  %v892_v36 = vld [vmem:[#allocation2 + $0x1a08] sm:$0xff]  ;;  %v926_v50 = vld [vmem:[#allocation2 + $0x1b18] sm:$0xff] }
 0x1f2   :  { %2313 = vmatpush.msra.mxu1 %v884_v52  ;;  %2334 = vmatpush.msra.mxu2 %v914_v39  ;;  %v986_v47 = vld [vmem:[#allocation2 + $0x1cf8] sm:$0xff]  ;;  %v1587_v39 = vpop.f32.mrf.mxu0 }
 0x1f3   :  { %2353 = vmatpush.msra.mxu3 %v948_v43  ;;  %2295 = vmatpush.msra.mxu0 %v848_v46  ;;  %v1050_v52 = vld [vmem:[#allocation2 + $0x1ef8] sm:$0xff]  ;;  %v860_v43 = vld [vmem:[#allocation2 + $0x1908] sm:$0xff]  ;;  %v1568_v46 = vadd.f32 %v1567_v51, %v1548_v35 }
 0x1f4   :  { %2314 = vmatpush.msra.mxu1 %v882_v53  ;;  %2335 = vmatpush.msra.mxu2 %v912_v55  ;;  %v2581_v53 = vld.sshfl [vmem:[#allocation1] sm:$0xff pattern:$0x73625140]  ;;  %v984_v55 = vld [vmem:[#allocation2 + $0x1ce8] sm:$0xff]  ;;  %v1647_v6 = vpop.f32.mrf.mxu3 }
 0x1f5   :  { %2354 = vmatpush.msra.mxu3 %v946_v56  ;;  %2296 = vmatpush.msra.mxu0 %v846_v26  ;;  %v1018_v56 = vld [vmem:[#allocation2 + $0x1df8] sm:$0xff]  ;;  %v1588_v26 = vadd.f32 %v1587_v39, %v1568_v46  ;;  %v1028_v39 = vld [vmem:[#allocation2 + $0x1e48] sm:$0xff] }
 0x1f6   :  { %2315 = vmatpush.msra.mxu1 %v880_v27  ;;  %2336 = vmatpush.msra.mxu2 %v910_v0  ;;  %v1048_v27 = vld [vmem:[#allocation2 + $0x1ee8] sm:$0xff]  ;;  %v1607_v0 = vpop.f32.mrf.mxu1  ;;  %v962_v46 = vld [vmem:[#allocation2 + $0x1c38] sm:$0xff] }
 0x1f7   :  { %2355 = vmatpush.msra.mxu3 %v944_v58  ;;  %2297 = vmatpush.msra.mxu0 %v844_v28  ;;  %v2583_v58 = vld.sshfl [vmem:[#allocation1 + $0x8] sm:$0xff pattern:$0x73625140]  ;;  %v982_v28 = vld [vmem:[#allocation2 + $0x1cd8] sm:$0xff]  ;;  %v1608_v41 = vadd.f32 %v1607_v0, %v1588_v26  ;;  %v1707_v30 = vpop.f32.mrf.mxu2  ;;  %v960_v26 = vld [vmem:[#allocation2 + $0x1c28] sm:$0xff] }
 0x1f8   :  { %2316 = vmatpush.msra.mxu1 %v878_v31  ;;  %2337 = vmatpush.msra.mxu2 %v908_v60  ;;  %v1016_v31 = vld [vmem:[#allocation2 + $0x1de8] sm:$0xff]  ;;  %v1046_v60 = vld [vmem:[#allocation2 + $0x1ed8] sm:$0xff] }
 0x1f9   :  { %2356 = vmatpush.msra.mxu3 %v942_v1  ;;  %2298 = vmatpush.msra.mxu0 %v842_v61  ;;  %v1080_v1 = vld [vmem:[#allocation2 + $0x1fe8] sm:$0xff]  ;;  %v1628_v42 = vadd.f32 %v1627_v2, %v1608_v41 }
 0x1fa   :  { %2317 = vmatpush.msra.mxu1 %v876_v40  ;;  %2338 = vmatpush.msra.mxu2 %v906_v62  ;;  %v980_v61 = vld [vmem:[#allocation2 + $0x1cc8] sm:$0xff]  ;;  %v1014_v40 = vld [vmem:[#allocation2 + $0x1dd8] sm:$0xff]  ;;  %v1667_v11 = vpop.f32.mrf.mxu0 }
 0x1fb   :  { %2357 = vmatpush.msra.mxu3 %v940_v63  ;;  %2299 = vmatpush.msra.mxu0 %v840_v4  ;;  %v1044_v62 = vld [vmem:[#allocation2 + $0x1ec8] sm:$0xff]  ;;  %v1078_v63 = vld [vmem:[#allocation2 + $0x1fd8] sm:$0xff]  ;;  %v1648_v16 = vadd.f32 %v1647_v6, %v1628_v42 }
 0x1fc   :  { %2318 = vmatpush.msra.mxu1 %v874_v3  ;;  %2339 = vmatpush.msra.mxu2 %v904_v45  ;;  %v978_v4 = vld [vmem:[#allocation2 + $0x1cb8] sm:$0xff]  ;;  %v1012_v3 = vld [vmem:[#allocation2 + $0x1dc8] sm:$0xff]  ;;  %v1727_v51 = vpop.f32.mrf.mxu3 }
 0x1fd   :  { %2358 = vmatpush.msra.mxu3 %v938_v5  ;;  %2300 = vmatpush.msra.mxu0 %v838_v7  ;;  %v1042_v45 = vld [vmem:[#allocation2 + $0x1eb8] sm:$0xff]  ;;  %v1076_v5 = vld [vmem:[#allocation2 + $0x1fc8] sm:$0xff]  ;;  %v1668_v19 = vadd.f32 %v1667_v11, %v1648_v16  ;;  %v2477_v11 = vld [vmem:[%s2934_s3 + $0x68] sm:$0xff] }
 0x1fe   :  { %2319 = vmatpush.msra.mxu1 %v872_v8  ;;  %2340 = vmatpush.msra.mxu2 %v902_v9  ;;  %v976_v7 = vld [vmem:[#allocation2 + $0x1ca8] sm:$0xff]  ;;  %v1010_v8 = vld [vmem:[#allocation2 + $0x1db8] sm:$0xff]  ;;  %v1687_v22 = vpop.f32.mrf.mxu1 }
 0x1ff   :  { %2359 = vmatpush.msra.mxu3 %v936_v10  ;;  %2301 = vmatpush.msra.mxu0 %v836_v12  ;;  %v1040_v9 = vld [vmem:[#allocation2 + $0x1ea8] sm:$0xff]  ;;  %v1074_v10 = vld [vmem:[#allocation2 + $0x1fb8] sm:$0xff]  ;;  %v1688_v49 = vadd.f32 %v1687_v22, %v1668_v19  ;;  %v1787_v2 = vpop.f32.mrf.mxu2  ;;  %v2471_v19 = vld [vmem:[%s2934_s3 + $0x38] sm:$0xff] }
 0x200   :  { %2320 = vmatpush.msra.mxu1 %v870_v13  ;;  %2341 = vmatpush.msra.mxu2 %v900_v14  ;;  %v974_v12 = vld [vmem:[#allocation2 + $0x1c98] sm:$0xff]  ;;  %v1008_v13 = vld [vmem:[#allocation2 + $0x1da8] sm:$0xff]  ;;  %v2469_v22 = vld [vmem:[%s2934_s3 + $0x28] sm:$0xff] }
 0x201   :  { %2360 = vmatpush.msra.mxu3 %v934_v15  ;;  %2302 = vmatpush.msra.mxu0 %v834_v17  ;;  %v1038_v14 = vld [vmem:[#allocation2 + $0x1e98] sm:$0xff]  ;;  %v1072_v15 = vld [vmem:[#allocation2 + $0x1fa8] sm:$0xff]  ;;  %v1708_v35 = vadd.f32 %v1707_v30, %v1688_v49 }
 0x202   :  { %2321 = vmatpush.msra.mxu1 %v868_v18  ;;  %2342 = vmatpush.msra.mxu2 %v898_v20  ;;  %v972_v17 = vld [vmem:[#allocation2 + $0x1c88] sm:$0xff]  ;;  %v1006_v18 = vld [vmem:[#allocation2 + $0x1d98] sm:$0xff] }
 0x203   :  { %2361 = vmatpush.msra.mxu3 %v932_v21  ;;  %2303 = vmatpush.msra.mxu0 %v832_v23  ;;  %v1036_v20 = vld [vmem:[#allocation2 + $0x1e88] sm:$0xff]  ;;  %v1070_v21 = vld [vmem:[#allocation2 + $0x1f98] sm:$0xff] }
 0x204   :  { %2322 = vmatpush.msra.mxu1 %v866_v24  ;;  %2343 = vmatpush.msra.mxu2 %v896_v25  ;;  %v970_v23 = vld [vmem:[#allocation2 + $0x1c78] sm:$0xff]  ;;  %v1004_v24 = vld [vmem:[#allocation2 + $0x1d88] sm:$0xff] }
 0x205   :  { %2362 = vmatpush.msra.mxu3 %v930_v29  ;;  %2304 = vmatpush.msra.mxu0 %v830_v32  ;;  %v1034_v25 = vld [vmem:[#allocation2 + $0x1e78] sm:$0xff]  ;;  %v1068_v29 = vld [vmem:[#allocation2 + $0x1f88] sm:$0xff] }
 0x206   :  { %2323 = vmatpush.msra.mxu1 %v864_v48  ;;  %2344 = vmatpush.msra.mxu2 %v894_v37  ;;  %v968_v32 = vld [vmem:[#allocation2 + $0x1c68] sm:$0xff]  ;;  %v1002_v48 = vld [vmem:[#allocation2 + $0x1d78] sm:$0xff] }
 0x207   :  { %2363 = vmatpush.msra.mxu3 %v928_v38  ;;  %2305 = vmatpush.msra.mxu0 %v828_v33  ;;  %v1032_v37 = vld [vmem:[#allocation2 + $0x1e68] sm:$0xff]  ;;  %v1066_v38 = vld [vmem:[#allocation2 + $0x1f78] sm:$0xff] }
 0x208   :  { %2324 = vmatpush.msra.mxu1 %v862_v34  ;;  %2345 = vmatpush.msra.mxu2 %v892_v36  ;;  %v966_v33 = vld [vmem:[#allocation2 + $0x1c58] sm:$0xff]  ;;  %v1000_v34 = vld [vmem:[#allocation2 + $0x1d68] sm:$0xff] }
 0x209   :  { %2364 = vmatpush.msra.mxu3 %v926_v50  ;;  %2306 = vmatmul.f32.vlgmr.msra.gmra.mxu0 %v2581_v53  ;;  %v1030_v36 = vld [vmem:[#allocation2 + $0x1e58] sm:$0xff]  ;;  %v1064_v50 = vld [vmem:[#allocation2 + $0x1f68] sm:$0xff] }
 0x20a   :  { %2346 = vmatmul.f32.vlgmr.msra.gmra.mxu2 %v2582_v54  ;;  %2370 = vmatpush.msrb.mxu0 %v986_v47  ;;  %v964_v47 = vld [vmem:[#allocation2 + $0x1c48] sm:$0xff]  ;;  %v1728_v54 = vadd.f32 %v1727_v51, %v1708_v35  ;;  %v2585_v6 = vld.sshfl [vmem:[#allocation1 + $0x20] sm:$0xff pattern:$0x73625140]  ;;  %v1867_v51 = vpop.f32.mrf.mxu2 }
 0x20b   :  { %2410 = vmatpush.msrb.mxu2 %v1050_v52  ;;  %2325 = vmatpush.msra.mxu1 %v860_v43  ;;  %v998_v52 = vld [vmem:[#allocation2 + $0x1d58] sm:$0xff]  ;;  %v996_v53 = vld [vmem:[#allocation2 + $0x1d48] sm:$0xff] }
 0x20c   :  { %2365 = vmatpush.msra.mxu3 %v924_v44  ;;  %2326 = vmatmul.f32.vlgmr.msra.gmra.mxu1 %v2583_v58  ;;  %v1062_v43 = vld [vmem:[#allocation2 + $0x1f58] sm:$0xff]  ;;  %v1747_v44 = vpop.f32.mrf.mxu0  ;;  %v1024_v0 = vld [vmem:[#allocation2 + $0x1e28] sm:$0xff] }
 0x20d   :  { %2366 = vmatmul.f32.vlgmr.msra.gmra.mxu3 %v2584_v59  ;;  %2371 = vmatpush.msrb.mxu0 %v984_v55  ;;  %v1026_v55 = vld [vmem:[#allocation2 + $0x1e38] sm:$0xff]  ;;  %v1767_v59 = vpop.f32.mrf.mxu1  ;;  %v988_v42 = vld [vmem:[#allocation2 + $0x1d08] sm:$0xff] }
 0x20e   :  { %2390 = vmatpush.msrb.mxu1 %v1018_v56  ;;  %2411 = vmatpush.msrb.mxu2 %v1048_v27  ;;  %v1060_v56 = vld [vmem:[#allocation2 + $0x1f48] sm:$0xff]  ;;  %v994_v27 = vld [vmem:[#allocation2 + $0x1d38] sm:$0xff] }
 0x20f   :  { %2430 = vmatpush.msrb.mxu3 %v1082_v57  ;;  %2372 = vmatpush.msrb.mxu0 %v982_v28  ;;  %v1748_v57 = vadd.f32 %v1747_v44, %v1728_v54  ;;  %v1058_v58 = vld [vmem:[#allocation2 + $0x1f38] sm:$0xff]  ;;  %v2466_v30 = vld [vmem:[%s2934_s3 + $0x10] sm:$0xff] }
 0x210   :  { %2391 = vmatpush.msrb.mxu1 %v1016_v31  ;;  %2412 = vmatpush.msrb.mxu2 %v1046_v60  ;;  %v958_v28 = vld [vmem:[#allocation2 + $0x1c18] sm:$0xff]  ;;  %v992_v31 = vld [vmem:[#allocation2 + $0x1d28] sm:$0xff] }
 0x211   :  { %2431 = vmatpush.msrb.mxu3 %v1080_v1  ;;  %2373 = vmatpush.msrb.mxu0 %v980_v61  ;;  %v1022_v60 = vld [vmem:[#allocation2 + $0x1e18] sm:$0xff]  ;;  %v1056_v1 = vld [vmem:[#allocation2 + $0x1f28] sm:$0xff]  ;;  %v1768_v41 = vadd.f32 %v1767_v59, %v1748_v57  ;;  %v2495_v59 = vld [vmem:[%s2934_s3 + $0xf8] sm:$0xff] }
 0x212   :  { %2392 = vmatpush.msrb.mxu1 %v1014_v40  ;;  %2413 = vmatpush.msrb.mxu2 %v1044_v62  ;;  %v956_v61 = vld [vmem:[#allocation2 + $0x1c08] sm:$0xff]  ;;  %v990_v40 = vld [vmem:[#allocation2 + $0x1d18] sm:$0xff]  ;;  %v1947_v54 = vpop.f32.mrf.mxu2 }
 0x213   :  { %2432 = vmatpush.msrb.mxu3 %v1078_v63  ;;  %2374 = vmatpush.msrb.mxu0 %v978_v4  ;;  %v1020_v62 = vld [vmem:[#allocation2 + $0x1e08] sm:$0xff]  ;;  %v1054_v63 = vld [vmem:[#allocation2 + $0x1f18] sm:$0xff]  ;;  %v1788_v4 = vadd.f32 %v1787_v2, %v1768_v41 }
 0x214   :  { %2393 = vmatpush.msrb.mxu1 %v1012_v3  ;;  %2414 = vmatpush.msrb.mxu2 %v1042_v45  ;;  %v2479_v3 = vld [vmem:[%s2934_s3 + $0x78] sm:$0xff]  ;;  %v1807_v45 = vpop.f32.mrf.mxu3  ;;  %v2464_v49 = vld [vmem:[%s2934_s3] sm:$0xff] }
 0x215   :  { %2433 = vmatpush.msrb.mxu3 %v1076_v5  ;;  %2375 = vmatpush.msrb.mxu0 %v976_v7  ;;  %v1052_v5 = vld [vmem:[#allocation2 + $0x1f08] sm:$0xff] }
 0x216   :  { %2394 = vmatpush.msrb.mxu1 %v1010_v8  ;;  %2415 = vmatpush.msrb.mxu2 %v1040_v9  ;;  %v2586_v7 = vld.sshfl [vmem:[#allocation1 + $0x30] sm:$0xff pattern:$0x73625140]  ;;  %v1808_v9 = vadd.f32 %v1807_v45, %v1788_v4 }
 0x217   :  { %2434 = vmatpush.msrb.mxu3 %v1074_v10  ;;  %2376 = vmatpush.msrb.mxu0 %v974_v12  ;;  %v2478_v8 = vld [vmem:[%s2934_s3 + $0x70] sm:$0xff]  ;;  %v2587_v10 = vld.sshfl [vmem:[#allocation1 + $0x28] sm:$0xff pattern:$0x73625140] }
 0x218   :  { %2395 = vmatpush.msrb.mxu1 %v1008_v13  ;;  %2416 = vmatpush.msrb.mxu2 %v1038_v14  ;;  %v2588_v12 = vld.sshfl [vmem:[#allocation1 + $0x38] sm:$0xff pattern:$0x73625140]  ;;  %v2476_v13 = vld [vmem:[%s2934_s3 + $0x60] sm:$0xff]  ;;  %v2452_v16 = vmul.f32 1.442695, %v1808_v9 }
 0x219   :  { %2435 = vmatpush.msrb.mxu3 %v1072_v15  ;;  %2377 = vmatpush.msrb.mxu0 %v972_v17  ;;  %v2475_v14 = vld [vmem:[%s2934_s3 + $0x58] sm:$0xff]  ;;  %v2474_v15 = vld [vmem:[%s2934_s3 + $0x50] sm:$0xff]  ;;  %v2473_v17 = vld [vmem:[%s2934_s3 + $0x48] sm:$0xff]  ;;  %vm2450_vm0 = vcmp.gt.f32.partialorder %v1808_v9, 0.0 }
 0x21a   :  { %2396 = vmatpush.msrb.mxu1 %v1006_v18  ;;  %2417 = vmatpush.msrb.mxu2 %v1036_v20  ;;  %2575 = vpow2.f32 %v2452_v16  ;;  %v2472_v18 = vld [vmem:[%s2934_s3 + $0x40] sm:$0xff] }
 0x21b   :  { %2436 = vmatpush.msrb.mxu3 %v1070_v21  ;;  %2378 = vmatpush.msrb.mxu0 %v970_v23  ;;  %v2470_v21 = vld [vmem:[%s2934_s3 + $0x30] sm:$0xff] }
 0x21c   :  { %2397 = vmatpush.msrb.mxu1 %v1004_v24  ;;  %2418 = vmatpush.msrb.mxu2 %v1034_v25  ;;  %v2468_v24 = vld [vmem:[%s2934_s3 + $0x20] sm:$0xff]  ;;  %v2467_v25 = vld [vmem:[%s2934_s3 + $0x18] sm:$0xff] }
 0x21d   :  { %2437 = vmatpush.msrb.mxu3 %v1068_v29  ;;  %2379 = vmatpush.msrb.mxu0 %v968_v32  ;;  %v2465_v32 = vld [vmem:[%s2934_s3 + $0x8] sm:$0xff] }
 0x21e   :  { %2398 = vmatpush.msrb.mxu1 %v1002_v48  ;;  %2419 = vmatpush.msrb.mxu2 %v1032_v37 }
 0x21f   :  { %2438 = vmatpush.msrb.mxu3 %v1066_v38  ;;  %2380 = vmatpush.msrb.mxu0 %v966_v33  ;;  %v2589_v38 = vld [vmem:[#allocation5] sm:$0x3] }
 0x220   :  { %2399 = vmatpush.msrb.mxu1 %v1000_v34  ;;  %2420 = vmatpush.msrb.mxu2 %v1030_v36  ;;  %v2576_v20 = vpop.eup %2575  ;;  %v1086_v33 = vperm.slane %v2589_v38, 1  ;;  %v1827_v34 = vpop.f32.mrf.mxu0 }
 0x221   :  { %2439 = vmatpush.msrb.mxu3 %v1064_v50  ;;  %2381 = vmatpush.msrb.mxu0 %v964_v47  ;;  %v2566_v23 = vadd.f32 -1.0, %v2576_v20  ;;  %v1847_v36 = vpop.f32.mrf.mxu1  ;;  %v2488_v20 = vld [vmem:[%s2934_s3 + $0xc0] sm:$0xff] }
 0x222   :  { %2400 = vmatpush.msrb.mxu1 %v998_v52  ;;  %2421 = vmatpush.msrb.mxu2 %v1028_v39  ;;  %v1828_v35 = vadd.f32 %v1827_v34, %v1086_v33  ;;  %v1887_v52 = vpop.f32.mrf.mxu3  ;;  %v2482_v34 = vld [vmem:[%s2934_s3 + $0x90] sm:$0xff] }
 0x223   :  { %2440 = vmatpush.msrb.mxu3 %v1062_v43  ;;  %2382 = vmatpush.msrb.mxu0 %v962_v46  ;;  %v2458_v29 = vmul.f32 1.6732632, %v2566_v23 }
 0x224   :  { %2401 = vmatpush.msrb.mxu1 %v996_v53  ;;  %2422 = vmatpush.msrb.mxu2 %v1026_v55  ;;  %v1848_v50 = vadd.f32 %v1847_v36, %v1828_v35  ;;  %v2481_v36 = vld [vmem:[%s2934_s3 + $0x88] sm:$0xff] }
 0x225   :  { %2441 = vmatpush.msrb.mxu3 %v1060_v56  ;;  %2383 = vmatpush.msrb.mxu0 %v960_v26  ;;  %v2460_v48 = vsel %vm2450_vm0, %v1808_v9, %v2458_v29 }
 0x226   :  { %2402 = vmatpush.msrb.mxu1 %v994_v27  ;;  %2423 = vmatpush.msrb.mxu2 %v1024_v0  ;;  %v2462_v37 = vmul.f32 1.050701, %v2460_v48  ;;  %v1868_v47 = vadd.f32 %v1867_v51, %v1848_v50  ;;  %v2484_v48 = vld [vmem:[%s2934_s3 + $0xa0] sm:$0xff] }
 0x227   :  { %2442 = vmatpush.msrb.mxu3 %v1058_v58  ;;  %2384 = vmatpush.msrb.mxu0 %v958_v28  ;;  %v2027_v58 = vpop.f32.mrf.mxu2  ;;  %v2494_v28 = vld [vmem:[%s2934_s3 + $0xf0] sm:$0xff]  ;;  %v2480_v51 = vld [vmem:[%s2934_s3 + $0x80] sm:$0xff] }
 0x228   :  { %2403 = vmatpush.msrb.mxu1 %v992_v31  ;;  %2424 = vmatpush.msrb.mxu2 %v1022_v60  ;;  %v1888_v39 = vadd.f32 %v1887_v52, %v1868_v47  ;;  %v1907_v43 = vpop.f32.mrf.mxu0 }
 0x229   :  { %2443 = vmatpush.msrb.mxu3 %v1056_v1  ;;  %2385 = vmatpush.msrb.mxu0 %v956_v61  ;;  %v1927_v46 = vpop.f32.mrf.mxu1 }
 0x22a   :  { %2404 = vmatpush.msrb.mxu1 %v990_v40  ;;  %2425 = vmatpush.msrb.mxu2 %v1020_v62  ;;  %v1908_v44 = vadd.f32 %v1907_v43, %v1888_v39  ;;  %v1967_v56 = vpop.f32.mrf.mxu3 }
 0x22b   :  { %2444 = vmatpush.msrb.mxu3 %v1054_v63  ;;  %2386 = vmatmul.f32.vlgmr.msrb.gmra.mxu0 %v2585_v6 }
 0x22c   :  { %2426 = vmatmul.f32.vlgmr.msrb.gmra.mxu2 %v2586_v7  ;;  %2500 = vmatpush.msra.mxu0 %v2479_v3  ;;  %v1928_v53 = vadd.f32 %v1927_v46, %v1908_v44 }
 0x22d   :  { %2405 = vmatpush.msrb.mxu1 %v988_v42  ;;  %2445 = vmatpush.msrb.mxu3 %v1052_v5 }
 0x22e   :  { %2406 = vmatmul.f32.vlgmr.msrb.gmra.mxu1 %v2587_v10  ;;  %2446 = vmatmul.f32.vlgmr.msrb.gmra.mxu3 %v2588_v12  ;;  %v1948_v55 = vadd.f32 %v1947_v54, %v1928_v53  ;;  %v2492_v10 = vld [vmem:[%s2934_s3 + $0xe0] sm:$0xff]  ;;  %v2491_v12 = vld [vmem:[%s2934_s3 + $0xd8] sm:$0xff] }
 0x22f   :  { %2501 = vmatpush.msra.mxu0 %v2478_v8  ;;  %2520 = vmatpush.msra.mxu1 %v2495_v59  ;;  %v2107_v62 = vpop.f32.mrf.mxu2  ;;  %v2493_v8 = vld [vmem:[%s2934_s3 + $0xe8] sm:$0xff] }
 0x230   :  { %v1987_v26 = vpop.f32.mrf.mxu0  ;;  %v1968_v27 = vadd.f32 %v1967_v56, %v1948_v55 }
 0x231   :  { %2502 = vmatpush.msra.mxu0 %v2477_v11  ;;  %v2007_v0 = vpop.f32.mrf.mxu1  ;;  %2521 = vmatpush.msra.mxu1 %v2494_v28 }
 0x232   :  { %v1988_v57 = vadd.f32 %v1987_v26, %v1968_v27  ;;  %v2047_v1 = vpop.f32.mrf.mxu3 }
 0x233   :  { %2503 = vmatpush.msra.mxu0 %v2476_v13  ;;  %2522 = vmatpush.msra.mxu1 %v2493_v8 }
 0x234   :  { %v2008_v31 = vadd.f32 %v2007_v0, %v1988_v57 }
 0x235   :  { %2504 = vmatpush.msra.mxu0 %v2475_v14  ;;  %2523 = vmatpush.msra.mxu1 %v2492_v10  ;;  %v2490_v14 = vld [vmem:[%s2934_s3 + $0xd0] sm:$0xff] }
 0x236   :  { %v2028_v60 = vadd.f32 %v2027_v58, %v2008_v31  ;;  %v2574_v31 = vld [vmem:[%s2935_s4] ss:$0 sm:$0xff] }
 0x237   :  { %2505 = vmatpush.msra.mxu0 %v2474_v15  ;;  %2524 = vmatpush.msra.mxu1 %v2491_v12 }
 0x238   :  { %v2067_v2 = vpop.f32.mrf.mxu0  ;;  %v2048_v61 = vadd.f32 %v2047_v1, %v2028_v60 }
 0x239   :  { %2506 = vmatpush.msra.mxu0 %v2473_v17  ;;  %v2087_v41 = vpop.f32.mrf.mxu1  ;;  %2525 = vmatpush.msra.mxu1 %v2490_v14  ;;  %v2489_v17 = vld [vmem:[%s2934_s3 + $0xc8] sm:$0xff] }
 0x23a   :  { %v2068_v40 = vadd.f32 %v2067_v2, %v2048_v61  ;;  %v2127_v3 = vpop.f32.mrf.mxu3 }
 0x23b   :  { %2507 = vmatpush.msra.mxu0 %v2472_v18  ;;  %2526 = vmatpush.msra.mxu1 %v2489_v17 }
 0x23c   :  { %v2088_v63 = vadd.f32 %v2087_v41, %v2068_v40 }
 0x23d   :  { %2508 = vmatpush.msra.mxu0 %v2471_v19  ;;  %2527 = vmatpush.msra.mxu1 %v2488_v20 }
 0x23e   :  { %v2108_v4 = vadd.f32 %v2107_v62, %v2088_v63 }
 0x23f   :  { %2509 = vmatpush.msra.mxu0 %v2470_v21 }
 0x240   :  { %v2128_v45 = vadd.f32 %v2127_v3, %v2108_v4 }
 0x241   :  { %2510 = vmatpush.msra.mxu0 %v2469_v22  ;;  %v2487_v22 = vld [vmem:[%s2934_s3 + $0xb8] sm:$0xff] }
 0x242   :  { %v2147_v42 = vpop.f32.mrf.mxu0  ;;  %2528 = vmatpush.msra.mxu1 %v2487_v22 }
 0x243   :  { %2511 = vmatpush.msra.mxu0 %v2468_v24  ;;  %v2148_v5 = vadd.f32 %v2147_v42, %v2128_v45  ;;  %v2486_v24 = vld [vmem:[%s2934_s3 + $0xb0] sm:$0xff] }
 0x244   :  { %2529 = vmatpush.msra.mxu1 %v2486_v24 }
 0x245   :  { %2512 = vmatpush.msra.mxu0 %v2467_v25  ;;  %v2167_v6 = vpop.f32.mrf.mxu1 }
 0x246   :  { %v2168_v9 = vadd.f32 %v2167_v6, %v2148_v5 }
 0x247   :  { %2513 = vmatpush.msra.mxu0 %v2466_v30  ;;  %v2485_v30 = vld [vmem:[%s2934_s3 + $0xa8] sm:$0xff] }
 0x248   :  { %2530 = vmatpush.msra.mxu1 %v2485_v30 }
 0x249   :  { %2514 = vmatpush.msra.mxu0 %v2465_v32  ;;  %v2187_v7 = vpop.f32.mrf.mxu2 }
 0x24a   :  { %v2188_v11 = vadd.f32 %v2187_v7, %v2168_v9  ;;  %2531 = vmatpush.msra.mxu1 %v2484_v48 }
 0x24b   :  { %2515 = vmatpush.msra.mxu0 %v2464_v49 }
 0x24c   :  { %2516 = vmatmul.f32.vlgmr.msra.gmra.mxu0 %v2462_v37  ;;  %v2207_v13 = vpop.f32.mrf.mxu3  ;;  %v2483_v37 = vld [vmem:[%s2934_s3 + $0x98] sm:$0xff] }
 0x24d   :  { %v2208_v15 = vadd.f32 %v2207_v13, %v2188_v11  ;;  %2532 = vmatpush.msra.mxu1 %v2483_v37 }
 0x24f   :  { %2533 = vmatpush.msra.mxu1 %v2482_v34 }
 0x251   :  { %2534 = vmatpush.msra.mxu1 %v2481_v36 }
 0x253   :  { %2535 = vmatpush.msra.mxu1 %v2480_v51 }
 0x264   :  { %v2227_v16 = vpop.f32.mrf.mxu0 }
 0x265   :  { %v2228_v18 = vadd.f32 %v2227_v16, %v2208_v15 }
 0x267   :  { %v2247_v19 = vpop.f32.mrf.mxu1 }
 0x268   :  { %v2248_v23 = vadd.f32 %v2247_v19, %v2228_v18 }
 0x26b   :  { %v2267_v21 = vpop.f32.mrf.mxu2 }
 0x26c   :  { %v2268_v25 = vadd.f32 %v2267_v21, %v2248_v23 }
 0x26e   :  { %v2287_v29 = vpop.f32.mrf.mxu3 }
 0x26f   :  { %v2288_v49 = vadd.f32 %v2287_v29, %v2268_v25 }
 0x286   :  { %v2307_v32 = vpop.f32.mrf.mxu0 }
 0x287   :  { %v2308_v38 = vadd.f32 %v2307_v32, %v2288_v49 }
 0x289   :  { %v2327_v33 = vpop.f32.mrf.mxu1 }
 0x28a   :  { %v2328_v50 = vadd.f32 %v2327_v33, %v2308_v38 }
 0x28d   :  { %v2347_v35 = vpop.f32.mrf.mxu2 }
 0x28e   :  { %v2348_v47 = vadd.f32 %v2347_v35, %v2328_v50 }
 0x290   :  { %v2367_v52 = vpop.f32.mrf.mxu3 }
 0x291   :  { %v2368_v39 = vadd.f32 %v2367_v52, %v2348_v47 }
 0x2a8   :  { %v2387_v43 = vpop.f32.mrf.mxu0 }
 0x2a9   :  { %v2388_v44 = vadd.f32 %v2387_v43, %v2368_v39 }
 0x2ab   :  { %v2407_v46 = vpop.f32.mrf.mxu1 }
 0x2ac   :  { %v2408_v53 = vadd.f32 %v2407_v46, %v2388_v44 }
 0x2af   :  { %v2427_v54 = vpop.f32.mrf.mxu2 }
 0x2b0   :  { %v2428_v55 = vadd.f32 %v2427_v54, %v2408_v53 }
 0x2b1   :  { %v2447_v56 = vpop.f32.mrf.mxu3 }
 0x2b2   :  { %v2448_v26 = vadd.f32 %v2447_v56, %v2428_v55 }
 0x2b4   :  { %v2454_v27 = vmul.f32 1.442695, %v2448_v26  ;;  %vm2451_vm1 = vcmp.gt.f32.partialorder %v2448_v26, 0.0 }
 0x2b6   :  { %2577 = vpow2.f32 %v2454_v27 }
 0x2bc   :  { %v2578_v57 = vpop.eup %2577 }
 0x2bd   :  { %v2567_v0 = vadd.f32 -1.0, %v2578_v57 }
 0x2bf   :  { %v2459_v58 = vmul.f32 1.6732632, %v2567_v0 }
 0x2c1   :  { %v2461_v59 = vsel %vm2451_vm1, %v2448_v26, %v2459_v58 }
 0x2c2   :  { %v2463_v28 = vmul.f32 1.050701, %v2461_v59 }
 0x2c4   :  { %2536 = vmatmul.f32.vlgmr.msra.gmra.mxu1 %v2463_v28 }
 0x2c9   :  { %v2517_v60 = vpop.f32.mrf.mxu0 }
 0x2ca   :  { %v2518_v1 = vadd.f32 %v2574_v31, %v2517_v60 }
 0x341   :  { %v2537_v2 = vpop.f32.mrf.mxu1 }
 0x342   :  { %v2538_v61 = vadd.f32 %v2537_v2, %v2518_v1 }
 0x344   :  { %v2541_v40 = vmul.f32 1.442695, %v2538_v61  ;;  %vm2540_vm2 = vcmp.gt.f32.partialorder %v2538_v61, 0.0 }
 0x346   :  { %2579 = vpow2.f32 %v2541_v40 }
 0x34c   :  { %v2580_v41 = vpop.eup %2579 }
 0x34d   :  { %v2568_v62 = vadd.f32 -1.0, %v2580_v41 }
 0x34f   :  { %v2544_v63 = vmul.f32 1.6732632, %v2568_v62 }
 0x351   :  { %v2545_v4 = vsel %vm2540_vm2, %v2538_v61, %v2544_v63 }
 0x352   :  { %v2546_v3 = vmul.f32 1.050701, %v2545_v4 }
 0x354   :  { %2547 = vst [vmem:[#allocation7] sm:$0x3] %v2546_v3 }
 0x355   :  { %2558 = dma.vmem_to_hbm [thread:$0]  %s2554_s28, 32, %s2556_s2, [#allocation4]  }
 0x356   :  { %2666 = dma.done.wait [#allocation4], 32  }
 0x357   :  { %2667 = vsyncadd [#allocation4], 4294967264 }
 0x358   :  { %2563 = vsyncpa [#allocation3], 1 }
 0x359   :  { %2564 = vsyncpa [#allocation6], 1 }
 0x35a   :  { %2565 = vsyncpa [#allocation4], 1 }

</bundles_post_ra>
